<compile_context>
chip_gen: v7x
topology: tpu7x:2x2x1
jax: 0.10.0
libtpu: 0.0.40
codegen_flags: <defaults>
</compile_context>

<pallas_src>
import jax
import jax.numpy as jnp
import numpy as np
from jax import lax
from jax.experimental import pallas as pl
from jax.experimental.pallas import tpu as pltpu


def _make_mha_kernel(G, D, GH, need_weights, compute_dtype):
    """Build the kernel for one (batch, L-tile, head-group) grid step.

    Blocks seen by the kernel:
      q_ref   (1, TL, E)        k_ref / v_ref (1, S, E)     mask_ref (1, 1, S)
      wq/wk/wv_ref (GH, E, G*D) resident, pre-transposed (wq pre-scaled)
      bq/bk/bv_ref (GH, 1, G*D) resident                    wo_ref (GH, G*D, E)
      bo_ref  (1, E)
      out_ref (1, TL, E)        -- revisited across the head-group axis
      attnw_ref (1, G, TL, S)   -- per-head double-softmaxed weights (optional)
      acc_ref (TL, E) f32 VMEM scratch (only when GH > 1)
    """

    def kernel(q_ref, k_ref, v_ref, mask_ref,
               wq_ref, wk_ref, wv_ref, bq_ref, bk_ref, bv_ref,
               wo_ref, bo_ref, out_ref, *rest):
        ri = 0
        attnw_ref = None
        acc_ref = None
        if need_weights:
            attnw_ref = rest[ri]
            ri += 1
        if GH > 1:
            acc_ref = rest[ri]
            ri += 1

        g = pl.program_id(2)                       # head-group index

        q = q_ref[0]                               # (TL, E)
        k = k_ref[0]                               # (S, E)
        v = v_ref[0]                               # (S, E)
        mask = mask_ref[0]                         # (1, S) additive

        # Group projections: full-width MXU matmuls, f32 accumulation.
        qg = jnp.dot(q, wq_ref[g], preferred_element_type=jnp.float32) + bq_ref[g]
        kg = jnp.dot(k, wk_ref[g], preferred_element_type=jnp.float32) + bk_ref[g]
        vg = jnp.dot(v, wv_ref[g], preferred_element_type=jnp.float32) + bv_ref[g]

        if compute_dtype is not None:
            qg = qg.astype(compute_dtype)
            kg = kg.astype(compute_dtype)
            vg = vg.astype(compute_dtype)

        ctx_parts = []
        for h in range(G):                         # statically unrolled
            lo = h * D
            qh = lax.slice_in_dim(qg, lo, lo + D, axis=1)   # (TL, D)
            kh = lax.slice_in_dim(kg, lo, lo + D, axis=1)   # (S, D)
            vh = lax.slice_in_dim(vg, lo, lo + D, axis=1)   # (S, D)

            # scores = qh @ kh^T : contract on D -- no XLU transpose.
            scores = lax.dot_general(qh, kh, (((1,), (1,)), ((), ())),
                                     preferred_element_type=jnp.float32)  # (TL, S)
            scores = scores + mask

            m = jnp.max(scores, axis=-1, keepdims=True)
            e = jnp.exp(scores - m)
            attn = e * pl.reciprocal(jnp.sum(e, axis=-1, keepdims=True),
                                     approx=True)                          # (TL, S)
            # TODO(synk): attention dropout (p=0.1) omitted -- eval-mode semantics.
            # NOTE: fully-masked key rows give a uniform row (like JAX softmax),
            # not PyTorch's NaN propagation.

            p = attn if compute_dtype is None else attn.astype(compute_dtype)
            ctx_parts.append(jnp.dot(p, vh, preferred_element_type=jnp.float32))

            if need_weights:
                # Module re-softmaxes already-softmaxed weights; attn is in
                # [0, 1] so the row-max subtraction is unnecessary.
                e2 = jnp.exp(attn)
                w2 = e2 * pl.reciprocal(jnp.sum(e2, axis=-1, keepdims=True),
                                        approx=True)
                attnw_ref[0, h] = w2.astype(attnw_ref.dtype)

        ctx = ctx_parts[0] if G == 1 else jnp.concatenate(ctx_parts, axis=-1)
        if compute_dtype is not None:
            ctx = ctx.astype(compute_dtype)

        # Output projection for this head group: full-depth K = G*D matmul.
        contrib = jnp.dot(ctx, wo_ref[g], preferred_element_type=jnp.float32)

        if GH == 1:
            out_ref[0] = (contrib + bo_ref[...]).astype(out_ref.dtype)
        else:
            @pl.when(g == 0)
            def _init():
                acc_ref[...] = contrib

            @pl.when(g > 0)
            def _accumulate():
                acc_ref[...] += contrib

            @pl.when(g == GH - 1)
            def _finalize():
                out_ref[0] = (acc_ref[...] + bo_ref[...]).astype(out_ref.dtype)

    return kernel


def multi_head_attention(query, key, value, params, num_heads,
                         attention_mask=None, need_weights=True,
                         compute_dtype=None, tile_l=None):
    """Pallas forward of MultiHeadAttention (batch_first=True, eval mode).

    query: (B, L, E), key/value: (B, S, E) float32.
    params: PyTorch-convention weights {wq,wk,wv,wo: (E,E), bq,bk,bv,bo: (E,)}.
    attention_mask: optional bool (B, S) key_padding_mask, True = ignore key.
    compute_dtype: optional MXU operand dtype (e.g. jnp.bfloat16 on v6e/v7x);
      softmax and all accumulation stay f32. Default (None) is full f32.
    """
    B, L, E = query.shape
    S = key.shape[1]
    H = num_heads
    assert E % H == 0, "embed_dim must be divisible by num_heads"
    D = E // H
    scale = 1.0 / float(D) ** 0.5

    # Heads per group so the projection output width is (ideally) a full
    # 128-lane MXU tile.
    G = max(1, min(H, 128 // max(D, 1)))
    while H % G != 0:
        G -= 1
    GH = H // G                 # number of head groups (innermost grid axis)
    GD = G * D

    # Query-length tile (bounds VMEM on v7x at large L; trivial at small L).
    if tile_l is None:
        tile_l = L
        for t in (512, 256, 128):
            if L % t == 0:
                tile_l = t
                break
    LT = L // tile_l

    wq, wk, wv, wo = params["wq"], params["wk"], params["wv"], params["wo"]
    bq, bk, bv, bo = params["bq"], params["bk"], params["bv"], params["bo"]

    # Host-side weight packing (once per call): transpose to (in, out), fold
    # 1/sqrt(D) into Wq/bq, split into per-head-group slabs. The kernel never
    # transposes anything.
    wq_g = (wq.T * scale).reshape(E, GH, GD).transpose(1, 0, 2)   # (GH, E, GD)
    wk_g = wk.T.reshape(E, GH, GD).transpose(1, 0, 2)             # (GH, E, GD)
    wv_g = wv.T.reshape(E, GH, GD).transpose(1, 0, 2)             # (GH, E, GD)
    wo_g = wo.T.reshape(GH, GD, E)                                # (GH, GD, E)
    bq_g = (bq * scale).reshape(GH, 1, GD).astype(jnp.float32)
    bk_g = bk.reshape(GH, 1, GD).astype(jnp.float32)
    bv_g = bv.reshape(GH, 1, GD).astype(jnp.float32)
    bo_2d = bo.reshape(1, E).astype(jnp.float32)

    if compute_dtype is not None:
        query, key, value = (x.astype(compute_dtype) for x in (query, key, value))
        wq_g, wk_g, wv_g, wo_g = (w.astype(compute_dtype)
                                  for w in (wq_g, wk_g, wv_g, wo_g))

    if attention_mask is None:
        add_mask = jnp.zeros((B, 1, S), jnp.float32)
    else:
        # bool (B, S), True = ignore this key position -> additive mask.
        add_mask = jnp.where(attention_mask, -1e30, 0.0).astype(jnp.float32)
        add_mask = add_mask.reshape(B, 1, S)

    # Weight slabs use a constant block index => DMAed once, VMEM-resident.
    in_specs = [
        pl.BlockSpec((1, tile_l, E), lambda b, lt, g: (b, lt, 0)),   # query
        pl.BlockSpec((1, S, E),      lambda b, lt, g: (b, 0, 0)),    # key
        pl.BlockSpec((1, S, E),      lambda b, lt, g: (b, 0, 0)),    # value
        pl.BlockSpec((1, 1, S),      lambda b, lt, g: (b, 0, 0)),    # additive mask
        pl.BlockSpec((GH, E, GD),    lambda b, lt, g: (0, 0, 0)),    # wq (resident)
        pl.BlockSpec((GH, E, GD),    lambda b, lt, g: (0, 0, 0)),    # wk (resident)
        pl.BlockSpec((GH, E, GD),    lambda b, lt, g: (0, 0, 0)),    # wv (resident)
        pl.BlockSpec((GH, 1, GD),    lambda b, lt, g: (0, 0, 0)),    # bq (resident)
        pl.BlockSpec((GH, 1, GD),    lambda b, lt, g: (0, 0, 0)),    # bk (resident)
        pl.BlockSpec((GH, 1, GD),    lambda b, lt, g: (0, 0, 0)),    # bv (resident)
        pl.BlockSpec((GH, GD, E),    lambda b, lt, g: (0, 0, 0)),    # wo (resident)
        pl.BlockSpec((1, E),         lambda b, lt, g: (0, 0)),       # bo (resident)
    ]

    out_block = pl.BlockSpec((1, tile_l, E), lambda b, lt, g: (b, lt, 0))
    if need_weights:
        out_shape = (jax.ShapeDtypeStruct((B, L, E), jnp.float32),
                     jax.ShapeDtypeStruct((B, H, L, S), jnp.float32))
        out_specs = (out_block,
                     pl.BlockSpec((1, G, tile_l, S), lambda b, lt, g: (b, g, lt, 0)))
    else:
        out_shape = jax.ShapeDtypeStruct((B, L, E), jnp.float32)
        out_specs = out_block

    scratch_shapes = ([pltpu.VMEM((tile_l, E), jnp.float32)] if GH > 1 else [])

    # Realistic VMEM budget: 2x double-buffering on every BlockSpec block,
    # plus scratch, plus headroom; capped below physical VMEM.
    act_item = 4 if compute_dtype is None else jnp.dtype(compute_dtype).itemsize
    block_bytes = (
        act_item * (tile_l * E + 2 * S * E)                 # q, k, v blocks
        + 4 * S                                             # mask block
        + act_item * (3 * GH * E * GD + GH * GD * E)        # resident weights
        + 4 * (3 * GH * GD + E)                             # biases
        + 4 * tile_l * E                                    # output block
        + (4 * G * tile_l * S if need_weights else 0)       # attn-weights block
    )
    budget = 2 * block_bytes + (4 * tile_l * E if GH > 1 else 0) + (4 << 20)
    try:
        vmem_cap = int(pltpu.get_tpu_info().vmem_capacity_bytes)
    except Exception:
        vmem_cap = 64 << 20                                  # v7x per-TC floor
    vmem_limit = int(min(vmem_cap - (8 << 20), max(32 << 20, budget)))

    kernel = _make_mha_kernel(G, D, GH, need_weights, compute_dtype)
    head_sem = "parallel" if GH == 1 else "arbitrary"

    result = pl.pallas_call(
        kernel,
        out_shape=out_shape,
        grid_spec=pltpu.PrefetchScalarGridSpec(
            num_scalar_prefetch=0,
            grid=(B, LT, GH),
            in_specs=in_specs,
            out_specs=out_specs,
            scratch_shapes=scratch_shapes,
        ),
        compiler_params=pltpu.CompilerParams(
            dimension_semantics=("parallel", "parallel", head_sem),
            vmem_limit_bytes=vmem_limit,
        ),
    )(query, key, value, add_mask,
      wq_g, wk_g, wv_g, bq_g, bk_g, bv_g, wo_g, bo_2d)

    if need_weights:
        return result
    return result, None


def ref_multi_head_attention(query, key, value, params, num_heads, attention_mask=None):
    """Pure-JAX reference of the same forward (eval mode)."""
    B, L, E = query.shape
    S = key.shape[1]
    H = num_heads
    D = E // H
    qp = query @ params["wq"].T + params["bq"]
    kp = key @ params["wk"].T + params["bk"]
    vp = value @ params["wv"].T + params["bv"]
    qh = qp.reshape(B, L, H, D).transpose(0, 2, 1, 3)
    kh = kp.reshape(B, S, H, D).transpose(0, 2, 1, 3)
    vh = vp.reshape(B, S, H, D).transpose(0, 2, 1, 3)
    scores = jnp.einsum("bhld,bhsd->bhls", qh, kh) / jnp.sqrt(jnp.float32(D))
    if attention_mask is not None:
        scores = scores + jnp.where(attention_mask, -1e30, 0.0)[:, None, None, :]
    attn = jax.nn.softmax(scores, axis=-1)
    ctx = jnp.einsum("bhls,bhsd->bhld", attn, vh).transpose(0, 2, 1, 3).reshape(B, L, E)
    out = ctx @ params["wo"].T + params["bo"]
    weights = jax.nn.softmax(attn, axis=-1)  # the module's extra softmax
    return out, weights


def _make_params(E, key):
    k_in_w, k_in_b, k_out_w, k_out_b = jax.random.split(key, 4)
    in_proj_weight = jax.random.normal(k_in_w, (3 * E, E), jnp.float32) * 0.05
    in_proj_bias = jax.random.normal(k_in_b, (3 * E,), jnp.float32) * 0.01
    out_proj_weight = jax.random.normal(k_out_w, (E, E), jnp.float32) * 0.05
    out_proj_bias = jax.random.normal(k_out_b, (E,), jnp.float32) * 0.01
    return {
        "wq": in_proj_weight[:E], "wk": in_proj_weight[E:2 * E], "wv": in_proj_weight[2 * E:],
        "bq": in_proj_bias[:E], "bk": in_proj_bias[E:2 * E], "bv": in_proj_bias[2 * E:],
        "wo": out_proj_weight, "bo": out_proj_bias,
    }


if __name__ == "__main__":
    root = jax.random.PRNGKey(0)
    k_p, k_q, k_k, k_v, k_p2, k_q2, k_k2, k_v2 = jax.random.split(root, 8)

    # --- Config 1: E=128, H=4 (D=32 -> one head-group of 4) ---------------
    B, L, S, E, H = 2, 128, 128, 128, 4
    params = _make_params(E, k_p)
    query = jax.random.normal(k_q, (B, L, E), jnp.float32)
    key = jax.random.normal(k_k, (B, S, E), jnp.float32)
    value = jax.random.normal(k_v, (B, S, E), jnp.float32)

    # unmasked
    out, attn_w = multi_head_attention(query, key, value, params, num_heads=H,
                                       attention_mask=None)
    jax.block_until_ready((out, attn_w))
    ref_out, ref_w = ref_multi_head_attention(query, key, value, params, num_heads=H,
                                              attention_mask=None)
    assert out.shape == (B, L, E) and attn_w.shape == (B, H, L, S)
    np.testing.assert_allclose(np.asarray(out), np.asarray(ref_out), rtol=1e-2, atol=1e-3)
    np.testing.assert_allclose(np.asarray(attn_w), np.asarray(ref_w), rtol=1e-2, atol=3e-4)

    # key_padding_mask (last 5 keys of batch element 1 masked)
    mask = jnp.zeros((B, S), jnp.bool_).at[1, S - 5:].set(True)
    out_m, attn_w_m = multi_head_attention(query, key, value, params, num_heads=H,
                                           attention_mask=mask)
    jax.block_until_ready((out_m, attn_w_m))
    ref_out_m, ref_w_m = ref_multi_head_attention(query, key, value, params, num_heads=H,
                                                  attention_mask=mask)
    np.testing.assert_allclose(np.asarray(out_m), np.asarray(ref_out_m), rtol=1e-2, atol=1e-3)
    np.testing.assert_allclose(np.asarray(attn_w_m), np.asarray(ref_w_m), rtol=1e-2, atol=3e-4)

    # --- Config 2: E=256, H=8 (D=32 -> 2 head-groups, exercises the ------
    # --- cross-group scratch accumulation path) ---------------------------
    B2, L2, S2, E2, H2 = 1, 128, 128, 256, 8
    params2 = _make_params(E2, k_p2)
    query2 = jax.random.normal(k_q2, (B2, L2, E2), jnp.float32)
    key2 = jax.random.normal(k_k2, (B2, S2, E2), jnp.float32)
    value2 = jax.random.normal(k_v2, (B2, S2, E2), jnp.float32)

    out2, attn_w2 = multi_head_attention(query2, key2, value2, params2, num_heads=H2,
                                         attention_mask=None)
    jax.block_until_ready((out2, attn_w2))
    ref_out2, ref_w2 = ref_multi_head_attention(query2, key2, value2, params2, num_heads=H2,
                                                attention_mask=None)
    assert out2.shape == (B2, L2, E2) and attn_w2.shape == (B2, H2, L2, S2)
    np.testing.assert_allclose(np.asarray(out2), np.asarray(ref_out2), rtol=1e-2, atol=2e-3)
    np.testing.assert_allclose(np.asarray(attn_w2), np.asarray(ref_w2), rtol=1e-2, atol=3e-4)

    print("KERNEL_OK")
</pallas_src>

<mosaic_0001>
module attributes {stable_mosaic.version = 11 : i64} {
  func.func @kernel(%arg0: i32, %arg1: i32, %arg2: i32, %arg3: memref<1x128x128xf32, #tpu.memory_space<vmem>>, %arg4: memref<1x128x128xf32, #tpu.memory_space<vmem>>, %arg5: memref<1x128x128xf32, #tpu.memory_space<vmem>>, %arg6: memref<1x1x128xf32, #tpu.memory_space<vmem>>, %arg7: memref<1x128x128xf32, #tpu.memory_space<vmem>>, %arg8: memref<1x128x128xf32, #tpu.memory_space<vmem>>, %arg9: memref<1x128x128xf32, #tpu.memory_space<vmem>>, %arg10: memref<1x1x128xf32, #tpu.memory_space<vmem>>, %arg11: memref<1x1x128xf32, #tpu.memory_space<vmem>>, %arg12: memref<1x1x128xf32, #tpu.memory_space<vmem>>, %arg13: memref<1x128x128xf32, #tpu.memory_space<vmem>>, %arg14: memref<1x128xf32, #tpu.memory_space<vmem>>, %arg15: memref<1x128x128xf32, #tpu.memory_space<vmem>>, %arg16: memref<1x4x128x128xf32, #tpu.memory_space<vmem>>) attributes {dimension_semantics = [#tpu.dimension_semantics<parallel>, #tpu.dimension_semantics<parallel>, #tpu.dimension_semantics<parallel>], iteration_bounds = array<i64: 2, 1, 1>, scalar_prefetch = 0 : i64, scratch_operands = 0 : i64, tpu.core_type = #tpu.core_type<tc>, window_params = [{transform_indices = @transform_0, window_bounds = array<i64: 1, 128, 128>}, {transform_indices = @transform_1, window_bounds = array<i64: 1, 128, 128>}, {transform_indices = @transform_2, window_bounds = array<i64: 1, 128, 128>}, {transform_indices = @transform_3, window_bounds = array<i64: 1, 1, 128>}, {pipeline_mode = #tpu.pipeline_mode<synchronous>, transform_indices = @transform_4, window_bounds = array<i64: 1, 128, 128>}, {pipeline_mode = #tpu.pipeline_mode<synchronous>, transform_indices = @transform_5, window_bounds = array<i64: 1, 128, 128>}, {pipeline_mode = #tpu.pipeline_mode<synchronous>, transform_indices = @transform_6, window_bounds = array<i64: 1, 128, 128>}, {pipeline_mode = #tpu.pipeline_mode<synchronous>, transform_indices = @transform_7, window_bounds = array<i64: 1, 1, 128>}, {pipeline_mode = #tpu.pipeline_mode<synchronous>, transform_indices = @transform_8, window_bounds = array<i64: 1, 1, 128>}, {pipeline_mode = #tpu.pipeline_mode<synchronous>, transform_indices = @transform_9, window_bounds = array<i64: 1, 1, 128>}, {pipeline_mode = #tpu.pipeline_mode<synchronous>, transform_indices = @transform_10, window_bounds = array<i64: 1, 128, 128>}, {pipeline_mode = #tpu.pipeline_mode<synchronous>, transform_indices = @transform_11, window_bounds = array<i64: 1, 128>}, {transform_indices = @transform_12, window_bounds = array<i64: 1, 128, 128>}, {transform_indices = @transform_13, window_bounds = array<i64: 1, 4, 128, 128>}]} {
    %c0 = arith.constant 0 : index
    %c0_0 = arith.constant 0 : index
    %c0_1 = arith.constant 0 : index
    %0 = vector.load %arg3[%c0, %c0_0, %c0_1] : memref<1x128x128xf32, #tpu.memory_space<vmem>>, vector<1x128x128xf32>
    %1 = vector.shape_cast %0 : vector<1x128x128xf32> to vector<128x128xf32>
    %c0_2 = arith.constant 0 : index
    %c0_3 = arith.constant 0 : index
    %c0_4 = arith.constant 0 : index
    %2 = vector.load %arg4[%c0_2, %c0_3, %c0_4] : memref<1x128x128xf32, #tpu.memory_space<vmem>>, vector<1x128x128xf32>
    %3 = vector.shape_cast %2 : vector<1x128x128xf32> to vector<128x128xf32>
    %c0_5 = arith.constant 0 : index
    %c0_6 = arith.constant 0 : index
    %c0_7 = arith.constant 0 : index
    %4 = vector.load %arg5[%c0_5, %c0_6, %c0_7] : memref<1x128x128xf32, #tpu.memory_space<vmem>>, vector<1x128x128xf32>
    %5 = vector.shape_cast %4 : vector<1x128x128xf32> to vector<128x128xf32>
    %c0_8 = arith.constant 0 : index
    %c0_9 = arith.constant 0 : index
    %c0_10 = arith.constant 0 : index
    %6 = vector.load %arg6[%c0_8, %c0_9, %c0_10] : memref<1x1x128xf32, #tpu.memory_space<vmem>>, vector<1x1x128xf32>
    %7 = vector.shape_cast %6 : vector<1x1x128xf32> to vector<1x128xf32>
    %8 = arith.index_cast %arg2 : i32 to index
    %c0_11 = arith.constant 0 : index
    %c0_12 = arith.constant 0 : index
    %9 = vector.load %arg7[%8, %c0_11, %c0_12] : memref<1x128x128xf32, #tpu.memory_space<vmem>>, vector<1x128x128xf32>
    %10 = vector.shape_cast %9 : vector<1x128x128xf32> to vector<128x128xf32>
    %cst = arith.constant dense<0.000000e+00> : vector<128x128xf32>
    %11 = tpu.matmul %1, %10, %cst {dimension_numbers = #tpu.dot_dimension_numbers<[1], [0], [0], [1], [0, 0, 1, 1], [], []>} : vector<128x128xf32>, vector<128x128xf32>, vector<128x128xf32> -> vector<128x128xf32>
    %12 = arith.index_cast %arg2 : i32 to index
    %c0_13 = arith.constant 0 : index
    %c0_14 = arith.constant 0 : index
    %13 = vector.load %arg10[%12, %c0_13, %c0_14] : memref<1x1x128xf32, #tpu.memory_space<vmem>>, vector<1x1x128xf32>
    %14 = vector.shape_cast %13 : vector<1x1x128xf32> to vector<1x128xf32>
    %15 = vector.broadcast %14 : vector<1x128xf32> to vector<128x128xf32>
    %16 = arith.addf %11, %15 : vector<128x128xf32>
    %17 = arith.index_cast %arg2 : i32 to index
    %c0_15 = arith.constant 0 : index
    %c0_16 = arith.constant 0 : index
    %18 = vector.load %arg8[%17, %c0_15, %c0_16] : memref<1x128x128xf32, #tpu.memory_space<vmem>>, vector<1x128x128xf32>
    %19 = vector.shape_cast %18 : vector<1x128x128xf32> to vector<128x128xf32>
    %cst_17 = arith.constant dense<0.000000e+00> : vector<128x128xf32>
    %20 = tpu.matmul %3, %19, %cst_17 {dimension_numbers = #tpu.dot_dimension_numbers<[1], [0], [0], [1], [0, 0, 1, 1], [], []>} : vector<128x128xf32>, vector<128x128xf32>, vector<128x128xf32> -> vector<128x128xf32>
    %21 = arith.index_cast %arg2 : i32 to index
    %c0_18 = arith.constant 0 : index
    %c0_19 = arith.constant 0 : index
    %22 = vector.load %arg11[%21, %c0_18, %c0_19] : memref<1x1x128xf32, #tpu.memory_space<vmem>>, vector<1x1x128xf32>
    %23 = vector.shape_cast %22 : vector<1x1x128xf32> to vector<1x128xf32>
    %24 = vector.broadcast %23 : vector<1x128xf32> to vector<128x128xf32>
    %25 = arith.addf %20, %24 : vector<128x128xf32>
    %26 = arith.index_cast %arg2 : i32 to index
    %c0_20 = arith.constant 0 : index
    %c0_21 = arith.constant 0 : index
    %27 = vector.load %arg9[%26, %c0_20, %c0_21] : memref<1x128x128xf32, #tpu.memory_space<vmem>>, vector<1x128x128xf32>
    %28 = vector.shape_cast %27 : vector<1x128x128xf32> to vector<128x128xf32>
    %cst_22 = arith.constant dense<0.000000e+00> : vector<128x128xf32>
    %29 = tpu.matmul %5, %28, %cst_22 {dimension_numbers = #tpu.dot_dimension_numbers<[1], [0], [0], [1], [0, 0, 1, 1], [], []>} : vector<128x128xf32>, vector<128x128xf32>, vector<128x128xf32> -> vector<128x128xf32>
    %30 = arith.index_cast %arg2 : i32 to index
    %c0_23 = arith.constant 0 : index
    %c0_24 = arith.constant 0 : index
    %31 = vector.load %arg12[%30, %c0_23, %c0_24] : memref<1x1x128xf32, #tpu.memory_space<vmem>>, vector<1x1x128xf32>
    %32 = vector.shape_cast %31 : vector<1x1x128xf32> to vector<1x128xf32>
    %33 = vector.broadcast %32 : vector<1x128xf32> to vector<128x128xf32>
    %34 = arith.addf %29, %33 : vector<128x128xf32>
    %35 = vector.extract_strided_slice %16 {offsets = [0, 0], sizes = [128, 32], strides = [1, 1]} : vector<128x128xf32> to vector<128x32xf32>
    %36 = vector.extract_strided_slice %25 {offsets = [0, 0], sizes = [128, 32], strides = [1, 1]} : vector<128x128xf32> to vector<128x32xf32>
    %37 = vector.extract_strided_slice %34 {offsets = [0, 0], sizes = [128, 32], strides = [1, 1]} : vector<128x128xf32> to vector<128x32xf32>
    %cst_25 = arith.constant dense<0.000000e+00> : vector<128x128xf32>
    %38 = tpu.matmul %35, %36, %cst_25 {dimension_numbers = #tpu.dot_dimension_numbers<[1], [1], [0], [0], [0, 0, 1, 0], [], []>} : vector<128x32xf32>, vector<128x32xf32>, vector<128x128xf32> -> vector<128x128xf32>
    %39 = vector.broadcast %7 : vector<1x128xf32> to vector<128x128xf32>
    %40 = arith.addf %38, %39 : vector<128x128xf32>
    %cst_26 = arith.constant dense<0xFF800000> : vector<128xf32>
    %41 = vector.multi_reduction <maximumf>, %40, %cst_26 [1] : vector<128x128xf32> to vector<128xf32>
    %42 = vector.shape_cast %41 : vector<128xf32> to vector<128x1xf32>
    %43 = vector.broadcast %42 : vector<128x1xf32> to vector<128x128xf32>
    %44 = arith.subf %40, %43 : vector<128x128xf32>
    %45 = math.exp %44 : vector<128x128xf32>
    %cst_27 = arith.constant dense<0.000000e+00> : vector<128xf32>
    %46 = vector.multi_reduction <add>, %45, %cst_27 [1] : vector<128x128xf32> to vector<128xf32>
    %47 = vector.shape_cast %46 : vector<128xf32> to vector<128x1xf32>
    %48 = tpu.reciprocal %47 {approx = true} : vector<128x1xf32> -> vector<128x1xf32>
    %49 = vector.broadcast %48 : vector<128x1xf32> to vector<128x128xf32>
    %50 = arith.mulf %45, %49 : vector<128x128xf32>
    %cst_28 = arith.constant dense<0.000000e+00> : vector<128x32xf32>
    %51 = tpu.matmul %50, %37, %cst_28 {dimension_numbers = #tpu.dot_dimension_numbers<[1], [0], [0], [1], [0, 0, 1, 1], [], []>} : vector<128x128xf32>, vector<128x32xf32>, vector<128x32xf32> -> vector<128x32xf32>
    %52 = math.exp %50 : vector<128x128xf32>
    %cst_29 = arith.constant dense<0.000000e+00> : vector<128xf32>
    %53 = vector.multi_reduction <add>, %52, %cst_29 [1] : vector<128x128xf32> to vector<128xf32>
    %54 = vector.shape_cast %53 : vector<128xf32> to vector<128x1xf32>
    %55 = tpu.reciprocal %54 {approx = true} : vector<128x1xf32> -> vector<128x1xf32>
    %56 = vector.broadcast %55 : vector<128x1xf32> to vector<128x128xf32>
    %57 = arith.mulf %52, %56 : vector<128x128xf32>
    %c0_30 = arith.constant 0 : index
    %c0_31 = arith.constant 0 : index
    %c0_32 = arith.constant 0 : index
    %c0_33 = arith.constant 0 : index
    %58 = vector.load %arg16[%c0_30, %c0_31, %c0_32, %c0_33] : memref<1x4x128x128xf32, #tpu.memory_space<vmem>>, vector<1x1x128x128xf32>
    %59 = vector.shape_cast %58 : vector<1x1x128x128xf32> to vector<128x128xf32>
    %60 = vector.shape_cast %57 : vector<128x128xf32> to vector<1x1x128x128xf32>
    tpu.vector_store %arg16[%c0_30, %c0_31, %c0_32, %c0_33], %60 {strides = array<i32>} : memref<1x4x128x128xf32, #tpu.memory_space<vmem>>, vector<1x1x128x128xf32>,
    %61 = vector.extract_strided_slice %16 {offsets = [0, 32], sizes = [128, 32], strides = [1, 1]} : vector<128x128xf32> to vector<128x32xf32>
    %62 = vector.extract_strided_slice %25 {offsets = [0, 32], sizes = [128, 32], strides = [1, 1]} : vector<128x128xf32> to vector<128x32xf32>
    %63 = vector.extract_strided_slice %34 {offsets = [0, 32], sizes = [128, 32], strides = [1, 1]} : vector<128x128xf32> to vector<128x32xf32>
    %cst_34 = arith.constant dense<0.000000e+00> : vector<128x128xf32>
    %64 = tpu.matmul %61, %62, %cst_34 {dimension_numbers = #tpu.dot_dimension_numbers<[1], [1], [0], [0], [0, 0, 1, 0], [], []>} : vector<128x32xf32>, vector<128x32xf32>, vector<128x128xf32> -> vector<128x128xf32>
    %65 = vector.broadcast %7 : vector<1x128xf32> to vector<128x128xf32>
    %66 = arith.addf %64, %65 : vector<128x128xf32>
    %cst_35 = arith.constant dense<0xFF800000> : vector<128xf32>
    %67 = vector.multi_reduction <maximumf>, %66, %cst_35 [1] : vector<128x128xf32> to vector<128xf32>
    %68 = vector.shape_cast %67 : vector<128xf32> to vector<128x1xf32>
    %69 = vector.broadcast %68 : vector<128x1xf32> to vector<128x128xf32>
    %70 = arith.subf %66, %69 : vector<128x128xf32>
    %71 = math.exp %70 : vector<128x128xf32>
    %cst_36 = arith.constant dense<0.000000e+00> : vector<128xf32>
    %72 = vector.multi_reduction <add>, %71, %cst_36 [1] : vector<128x128xf32> to vector<128xf32>
    %73 = vector.shape_cast %72 : vector<128xf32> to vector<128x1xf32>
    %74 = tpu.reciprocal %73 {approx = true} : vector<128x1xf32> -> vector<128x1xf32>
    %75 = vector.broadcast %74 : vector<128x1xf32> to vector<128x128xf32>
    %76 = arith.mulf %71, %75 : vector<128x128xf32>
    %cst_37 = arith.constant dense<0.000000e+00> : vector<128x32xf32>
    %77 = tpu.matmul %76, %63, %cst_37 {dimension_numbers = #tpu.dot_dimension_numbers<[1], [0], [0], [1], [0, 0, 1, 1], [], []>} : vector<128x128xf32>, vector<128x32xf32>, vector<128x32xf32> -> vector<128x32xf32>
    %78 = math.exp %76 : vector<128x128xf32>
    %cst_38 = arith.constant dense<0.000000e+00> : vector<128xf32>
    %79 = vector.multi_reduction <add>, %78, %cst_38 [1] : vector<128x128xf32> to vector<128xf32>
    %80 = vector.shape_cast %79 : vector<128xf32> to vector<128x1xf32>
    %81 = tpu.reciprocal %80 {approx = true} : vector<128x1xf32> -> vector<128x1xf32>
    %82 = vector.broadcast %81 : vector<128x1xf32> to vector<128x128xf32>
    %83 = arith.mulf %78, %82 : vector<128x128xf32>
    %c0_39 = arith.constant 0 : index
    %c1 = arith.constant 1 : index
    %c0_40 = arith.constant 0 : index
    %c0_41 = arith.constant 0 : index
    %84 = vector.load %arg16[%c0_39, %c1, %c0_40, %c0_41] : memref<1x4x128x128xf32, #tpu.memory_space<vmem>>, vector<1x1x128x128xf32>
    %85 = vector.shape_cast %84 : vector<1x1x128x128xf32> to vector<128x128xf32>
    %86 = vector.shape_cast %83 : vector<128x128xf32> to vector<1x1x128x128xf32>
    tpu.vector_store %arg16[%c0_39, %c1, %c0_40, %c0_41], %86 {strides = array<i32>} : memref<1x4x128x128xf32, #tpu.memory_space<vmem>>, vector<1x1x128x128xf32>,
    %87 = vector.extract_strided_slice %16 {offsets = [0, 64], sizes = [128, 32], strides = [1, 1]} : vector<128x128xf32> to vector<128x32xf32>
    %88 = vector.extract_strided_slice %25 {offsets = [0, 64], sizes = [128, 32], strides = [1, 1]} : vector<128x128xf32> to vector<128x32xf32>
    %89 = vector.extract_strided_slice %34 {offsets = [0, 64], sizes = [128, 32], strides = [1, 1]} : vector<128x128xf32> to vector<128x32xf32>
    %cst_42 = arith.constant dense<0.000000e+00> : vector<128x128xf32>
    %90 = tpu.matmul %87, %88, %cst_42 {dimension_numbers = #tpu.dot_dimension_numbers<[1], [1], [0], [0], [0, 0, 1, 0], [], []>} : vector<128x32xf32>, vector<128x32xf32>, vector<128x128xf32> -> vector<128x128xf32>
    %91 = vector.broadcast %7 : vector<1x128xf32> to vector<128x128xf32>
    %92 = arith.addf %90, %91 : vector<128x128xf32>
    %cst_43 = arith.constant dense<0xFF800000> : vector<128xf32>
    %93 = vector.multi_reduction <maximumf>, %92, %cst_43 [1] : vector<128x128xf32> to vector<128xf32>
    %94 = vector.shape_cast %93 : vector<128xf32> to vector<128x1xf32>
    %95 = vector.broadcast %94 : vector<128x1xf32> to vector<128x128xf32>
    %96 = arith.subf %92, %95 : vector<128x128xf32>
    %97 = math.exp %96 : vector<128x128xf32>
    %cst_44 = arith.constant dense<0.000000e+00> : vector<128xf32>
    %98 = vector.multi_reduction <add>, %97, %cst_44 [1] : vector<128x128xf32> to vector<128xf32>
    %99 = vector.shape_cast %98 : vector<128xf32> to vector<128x1xf32>
    %100 = tpu.reciprocal %99 {approx = true} : vector<128x1xf32> -> vector<128x1xf32>
    %101 = vector.broadcast %100 : vector<128x1xf32> to vector<128x128xf32>
    %102 = arith.mulf %97, %101 : vector<128x128xf32>
    %cst_45 = arith.constant dense<0.000000e+00> : vector<128x32xf32>
    %103 = tpu.matmul %102, %89, %cst_45 {dimension_numbers = #tpu.dot_dimension_numbers<[1], [0], [0], [1], [0, 0, 1, 1], [], []>} : vector<128x128xf32>, vector<128x32xf32>, vector<128x32xf32> -> vector<128x32xf32>
    %104 = math.exp %102 : vector<128x128xf32>
    %cst_46 = arith.constant dense<0.000000e+00> : vector<128xf32>
    %105 = vector.multi_reduction <add>, %104, %cst_46 [1] : vector<128x128xf32> to vector<128xf32>
    %106 = vector.shape_cast %105 : vector<128xf32> to vector<128x1xf32>
    %107 = tpu.reciprocal %106 {approx = true} : vector<128x1xf32> -> vector<128x1xf32>
    %108 = vector.broadcast %107 : vector<128x1xf32> to vector<128x128xf32>
    %109 = arith.mulf %104, %108 : vector<128x128xf32>
    %c0_47 = arith.constant 0 : index
    %c2 = arith.constant 2 : index
    %c0_48 = arith.constant 0 : index
    %c0_49 = arith.constant 0 : index
    %110 = vector.load %arg16[%c0_47, %c2, %c0_48, %c0_49] : memref<1x4x128x128xf32, #tpu.memory_space<vmem>>, vector<1x1x128x128xf32>
    %111 = vector.shape_cast %110 : vector<1x1x128x128xf32> to vector<128x128xf32>
    %112 = vector.shape_cast %109 : vector<128x128xf32> to vector<1x1x128x128xf32>
    tpu.vector_store %arg16[%c0_47, %c2, %c0_48, %c0_49], %112 {strides = array<i32>} : memref<1x4x128x128xf32, #tpu.memory_space<vmem>>, vector<1x1x128x128xf32>,
    %113 = vector.extract_strided_slice %16 {offsets = [0, 96], sizes = [128, 32], strides = [1, 1]} : vector<128x128xf32> to vector<128x32xf32>
    %114 = vector.extract_strided_slice %25 {offsets = [0, 96], sizes = [128, 32], strides = [1, 1]} : vector<128x128xf32> to vector<128x32xf32>
    %115 = vector.extract_strided_slice %34 {offsets = [0, 96], sizes = [128, 32], strides = [1, 1]} : vector<128x128xf32> to vector<128x32xf32>
    %cst_50 = arith.constant dense<0.000000e+00> : vector<128x128xf32>
    %116 = tpu.matmul %113, %114, %cst_50 {dimension_numbers = #tpu.dot_dimension_numbers<[1], [1], [0], [0], [0, 0, 1, 0], [], []>} : vector<128x32xf32>, vector<128x32xf32>, vector<128x128xf32> -> vector<128x128xf32>
    %117 = vector.broadcast %7 : vector<1x128xf32> to vector<128x128xf32>
    %118 = arith.addf %116, %117 : vector<128x128xf32>
    %cst_51 = arith.constant dense<0xFF800000> : vector<128xf32>
    %119 = vector.multi_reduction <maximumf>, %118, %cst_51 [1] : vector<128x128xf32> to vector<128xf32>
    %120 = vector.shape_cast %119 : vector<128xf32> to vector<128x1xf32>
    %121 = vector.broadcast %120 : vector<128x1xf32> to vector<128x128xf32>
    %122 = arith.subf %118, %121 : vector<128x128xf32>
    %123 = math.exp %122 : vector<128x128xf32>
    %cst_52 = arith.constant dense<0.000000e+00> : vector<128xf32>
    %124 = vector.multi_reduction <add>, %123, %cst_52 [1] : vector<128x128xf32> to vector<128xf32>
    %125 = vector.shape_cast %124 : vector<128xf32> to vector<128x1xf32>
    %126 = tpu.reciprocal %125 {approx = true} : vector<128x1xf32> -> vector<128x1xf32>
    %127 = vector.broadcast %126 : vector<128x1xf32> to vector<128x128xf32>
    %128 = arith.mulf %123, %127 : vector<128x128xf32>
    %cst_53 = arith.constant dense<0.000000e+00> : vector<128x32xf32>
    %129 = tpu.matmul %128, %115, %cst_53 {dimension_numbers = #tpu.dot_dimension_numbers<[1], [0], [0], [1], [0, 0, 1, 1], [], []>} : vector<128x128xf32>, vector<128x32xf32>, vector<128x32xf32> -> vector<128x32xf32>
    %130 = math.exp %128 : vector<128x128xf32>
    %cst_54 = arith.constant dense<0.000000e+00> : vector<128xf32>
    %131 = vector.multi_reduction <add>, %130, %cst_54 [1] : vector<128x128xf32> to vector<128xf32>
    %132 = vector.shape_cast %131 : vector<128xf32> to vector<128x1xf32>
    %133 = tpu.reciprocal %132 {approx = true} : vector<128x1xf32> -> vector<128x1xf32>
    %134 = vector.broadcast %133 : vector<128x1xf32> to vector<128x128xf32>
    %135 = arith.mulf %130, %134 : vector<128x128xf32>
    %c0_55 = arith.constant 0 : index
    %c3 = arith.constant 3 : index
    %c0_56 = arith.constant 0 : index
    %c0_57 = arith.constant 0 : index
    %136 = vector.load %arg16[%c0_55, %c3, %c0_56, %c0_57] : memref<1x4x128x128xf32, #tpu.memory_space<vmem>>, vector<1x1x128x128xf32>
    %137 = vector.shape_cast %136 : vector<1x1x128x128xf32> to vector<128x128xf32>
    %138 = vector.shape_cast %135 : vector<128x128xf32> to vector<1x1x128x128xf32>
    tpu.vector_store %arg16[%c0_55, %c3, %c0_56, %c0_57], %138 {strides = array<i32>} : memref<1x4x128x128xf32, #tpu.memory_space<vmem>>, vector<1x1x128x128xf32>,
    %139 = tpu.concatenate %51, %77, %103, %129 in 1 : vector<128x32xf32>, vector<128x32xf32>, vector<128x32xf32>, vector<128x32xf32> -> vector<128x128xf32>
    %140 = arith.index_cast %arg2 : i32 to index
    %c0_58 = arith.constant 0 : index
    %c0_59 = arith.constant 0 : index
    %141 = vector.load %arg13[%140, %c0_58, %c0_59] : memref<1x128x128xf32, #tpu.memory_space<vmem>>, vector<1x128x128xf32>
    %142 = vector.shape_cast %141 : vector<1x128x128xf32> to vector<128x128xf32>
    %cst_60 = arith.constant dense<0.000000e+00> : vector<128x128xf32>
    %143 = tpu.matmul %139, %142, %cst_60 {dimension_numbers = #tpu.dot_dimension_numbers<[1], [0], [0], [1], [0, 0, 1, 1], [], []>} : vector<128x128xf32>, vector<128x128xf32>, vector<128x128xf32> -> vector<128x128xf32>
    %c0_61 = arith.constant 0 : index
    %c0_62 = arith.constant 0 : index
    %144 = vector.load %arg14[%c0_61, %c0_62] : memref<1x128xf32, #tpu.memory_space<vmem>>, vector<1x128xf32>
    %145 = vector.broadcast %144 : vector<1x128xf32> to vector<128x128xf32>
    %146 = arith.addf %143, %145 : vector<128x128xf32>
    %c0_63 = arith.constant 0 : index
    %c0_64 = arith.constant 0 : index
    %c0_65 = arith.constant 0 : index
    %147 = vector.load %arg15[%c0_63, %c0_64, %c0_65] : memref<1x128x128xf32, #tpu.memory_space<vmem>>, vector<1x128x128xf32>
    %148 = vector.shape_cast %147 : vector<1x128x128xf32> to vector<128x128xf32>
    %149 = vector.shape_cast %146 : vector<128x128xf32> to vector<1x128x128xf32>
    tpu.vector_store %arg15[%c0_63, %c0_64, %c0_65], %149 {strides = array<i32>} : memref<1x128x128xf32, #tpu.memory_space<vmem>>, vector<1x128x128xf32>,
    return
  }
  func.func @transform_0(%arg0: i32, %arg1: i32, %arg2: i32) -> (i32, i32, i32) {
    %c0_i32 = arith.constant 0 : i32
    %c0_i32_0 = arith.constant 0 : i32
    return %arg0, %arg1, %c0_i32 : i32, i32, i32
  }
  func.func @transform_1(%arg0: i32, %arg1: i32, %arg2: i32) -> (i32, i32, i32) {
    %c0_i32 = arith.constant 0 : i32
    %c0_i32_0 = arith.constant 0 : i32
    %c0_i32_1 = arith.constant 0 : i32
    return %arg0, %c0_i32, %c0_i32_0 : i32, i32, i32
  }
  func.func @transform_2(%arg0: i32, %arg1: i32, %arg2: i32) -> (i32, i32, i32) {
    %c0_i32 = arith.constant 0 : i32
    %c0_i32_0 = arith.constant 0 : i32
    %c0_i32_1 = arith.constant 0 : i32
    return %arg0, %c0_i32, %c0_i32_0 : i32, i32, i32
  }
  func.func @transform_3(%arg0: i32, %arg1: i32, %arg2: i32) -> (i32, i32, i32) {
    %c0_i32 = arith.constant 0 : i32
    %c0_i32_0 = arith.constant 0 : i32
    %c0_i32_1 = arith.constant 0 : i32
    return %arg0, %c0_i32, %c0_i32_0 : i32, i32, i32
  }
  func.func @transform_4(%arg0: i32, %arg1: i32, %arg2: i32) -> (i32, i32, i32) {
    %c0_i32 = arith.constant 0 : i32
    %c0_i32_0 = arith.constant 0 : i32
    %c0_i32_1 = arith.constant 0 : i32
    %c0_i32_2 = arith.constant 0 : i32
    return %c0_i32, %c0_i32_0, %c0_i32_1 : i32, i32, i32
  }
  func.func @transform_5(%arg0: i32, %arg1: i32, %arg2: i32) -> (i32, i32, i32) {
    %c0_i32 = arith.constant 0 : i32
    %c0_i32_0 = arith.constant 0 : i32
    %c0_i32_1 = arith.constant 0 : i32
    %c0_i32_2 = arith.constant 0 : i32
    return %c0_i32, %c0_i32_0, %c0_i32_1 : i32, i32, i32
  }
  func.func @transform_6(%arg0: i32, %arg1: i32, %arg2: i32) -> (i32, i32, i32) {
    %c0_i32 = arith.constant 0 : i32
    %c0_i32_0 = arith.constant 0 : i32
    %c0_i32_1 = arith.constant 0 : i32
    %c0_i32_2 = arith.constant 0 : i32
    return %c0_i32, %c0_i32_0, %c0_i32_1 : i32, i32, i32
  }
  func.func @transform_7(%arg0: i32, %arg1: i32, %arg2: i32) -> (i32, i32, i32) {
    %c0_i32 = arith.constant 0 : i32
    %c0_i32_0 = arith.constant 0 : i32
    %c0_i32_1 = arith.constant 0 : i32
    %c0_i32_2 = arith.constant 0 : i32
    return %c0_i32, %c0_i32_0, %c0_i32_1 : i32, i32, i32
  }
  func.func @transform_8(%arg0: i32, %arg1: i32, %arg2: i32) -> (i32, i32, i32) {
    %c0_i32 = arith.constant 0 : i32
    %c0_i32_0 = arith.constant 0 : i32
    %c0_i32_1 = arith.constant 0 : i32
    %c0_i32_2 = arith.constant 0 : i32
    return %c0_i32, %c0_i32_0, %c0_i32_1 : i32, i32, i32
  }
  func.func @transform_9(%arg0: i32, %arg1: i32, %arg2: i32) -> (i32, i32, i32) {
    %c0_i32 = arith.constant 0 : i32
    %c0_i32_0 = arith.constant 0 : i32
    %c0_i32_1 = arith.constant 0 : i32
    %c0_i32_2 = arith.constant 0 : i32
    return %c0_i32, %c0_i32_0, %c0_i32_1 : i32, i32, i32
  }
  func.func @transform_10(%arg0: i32, %arg1: i32, %arg2: i32) -> (i32, i32, i32) {
    %c0_i32 = arith.constant 0 : i32
    %c0_i32_0 = arith.constant 0 : i32
    %c0_i32_1 = arith.constant 0 : i32
    %c0_i32_2 = arith.constant 0 : i32
    return %c0_i32, %c0_i32_0, %c0_i32_1 : i32, i32, i32
  }
  func.func @transform_11(%arg0: i32, %arg1: i32, %arg2: i32) -> (i32, i32) {
    %c0_i32 = arith.constant 0 : i32
    %c0_i32_0 = arith.constant 0 : i32
    %c0_i32_1 = arith.constant 0 : i32
    return %c0_i32, %c0_i32_0 : i32, i32
  }
  func.func @transform_12(%arg0: i32, %arg1: i32, %arg2: i32) -> (i32, i32, i32) {
    %c0_i32 = arith.constant 0 : i32
    %c0_i32_0 = arith.constant 0 : i32
    return %arg0, %arg1, %c0_i32 : i32, i32, i32
  }
  func.func @transform_13(%arg0: i32, %arg1: i32, %arg2: i32) -> (i32, i32, i32, i32) {
    %c0_i32 = arith.constant 0 : i32
    %c0_i32_0 = arith.constant 0 : i32
    return %arg0, %arg2, %arg1, %c0_i32 : i32, i32, i32, i32
  }
}

</mosaic_0001>

<bundles_post_ra>
// kernel: tpu_custom_call.1
= control target key start
LH: loop header
LB: loop body
LE: loop exit
PB: predicated region body
PF: predicated region fallthrough
CT: control target
= control target key end

     0   :  { %s10444_s0 = inlined_call_operand.hbm [shape: f32[2,128,128], index: 0, kind: input, shape index: {}]   ;;  %s10445_s1 = inlined_call_operand.hbm [shape: f32[2,128,128], index: 1, kind: input, shape index: {}]   ;;  %s10446_s2 = inlined_call_operand.hbm [shape: f32[2,128,128], index: 2, kind: input, shape index: {}]   ;;  %s10447_s3 = inlined_call_operand.vmem [shape: f32[2,1,128], index: 3, kind: input, shape index: {}]   ;;  %s10448_s4 = inlined_call_operand.hbm [shape: f32[1,128,128], index: 4, kind: input, shape index: {}]   ;;  %s10449_s5 = inlined_call_operand.hbm [shape: f32[1,128,128], index: 5, kind: input, shape index: {}]   ;;  %s10450_s6 = inlined_call_operand.hbm [shape: f32[1,128,128], index: 6, kind: input, shape index: {}]   ;;  %s10451_s7 = inlined_call_operand.vmem [shape: f32[1,1,128], index: 7, kind: input, shape index: {}]   ;;  %s10452_s8 = inlined_call_operand.vmem [shape: f32[1,1,128], index: 8, kind: input, shape index: {}]   ;;  %s10453_s9 = inlined_call_operand.vmem [shape: f32[1,1,128], index: 9, kind: input, shape index: {}]   ;;  %s10454_s10 = inlined_call_operand.hbm [shape: f32[1,128,128], index: 10, kind: input, shape index: {}]   ;;  %s10455_s11 = inlined_call_operand.vmem [shape: f32[1,128], index: 11, kind: input, shape index: {}]   ;;  %s10456_s12 = inlined_call_operand.hbm [shape: f32[2,128,128], index: 12, kind: output, shape index: {0}]   ;;  %s10457_s13 = inlined_call_operand.hbm [shape: f32[2,4,128,128], index: 13, kind: output, shape index: {1}]  }
   0x1   :  { %10581 = sst [smem:[#allocation98_spill]] %s10445_s1 }
   0x2   :  { %10582 = sst [smem:[#allocation99_spill]] %s10447_s3 }
   0x3   :  { %10583 = sst [smem:[#allocation100_spill]] %s10448_s4 }
   0x4   :  { %10584 = sst [smem:[#allocation101_spill]] %s10450_s6 }
   0x5   :  { %10585 = sst [smem:[#allocation102_spill]] %s10451_s7 }
   0x6   :  { %10586 = sst [smem:[#allocation103_spill]] %s10452_s8 }
   0x7   :  { %10587 = sst [smem:[#allocation104_spill]] %s10453_s9 }
   0x8   :  { %10588 = sst [smem:[#allocation105_spill]] %s10455_s11 }
   0x9   :  { %10589 = sst [smem:[#allocation106_spill]] %s10456_s12 }
   0xa   :  { %10590 = sst [smem:[#allocation107_spill]] %s10457_s13 }
   0xb   :  { %19 = vsyncpa [#allocation3], 0 }
   0xc   :  { %21 = vsyncpa [#allocation3 + $0x1], 0 }
   0xd   :  { %22 = vsyncpa [#allocation6], 0 }
   0xe   :  { %24 = vsyncpa [#allocation6 + $0x1], 0 }
   0xf   :  { %25 = vsyncpa [#allocation9], 0 }
  0x10   :  { %26 = vsyncpa [#allocation12], 0 }
  0x11   :  { %27 = vsyncpa [#allocation4], 0 }
  0x12   :  { %29 = vsyncpa [#allocation4 + $0x1], 0 }
  0x13   :  { %30 = vsyncpa [#allocation16], 0 }
  0x14   :  { %32 = vsyncpa [#allocation16 + $0x1], 0  ;;  %s7882_s25 = smov 0   ;;  %s7884_s26 = smov 0  }
  0x15   :  { %s7886_s27 = smov 0   ;;  %s7888_s28 = smov 0  }
  0x16   :  { %s7890_s29 = smov 0   ;;  %s7892_s30 = smov 0  }
  0x17 LB: > { %10591 = sst [smem:[#allocation23_spill]] %s7774_s25  ;;  %s7913_s14 = sadd.s32 4294967295, %s7794_s30   ;;  %s7794_s30 = sphi %s7892_s30, %s38_s30   ;;  %s7790_s29 = sphi %s7890_s29, %s10865_s29   ;;  %s7786_s28 = sphi %s7888_s28, %s10869_s28   ;;  %s7782_s27 = sphi %s7886_s27, %s10868_s27   ;;  %s7778_s26 = sphi %s7884_s26, %s10867_s26   ;;  %s7774_s25 = sphi %s7882_s25, %s10866_s25  }
  0x18   : > { %10592 = sst [smem:[#allocation24_spill]] %s7786_s28  ;;  %s4744_s15 = sadd.s32 4294967294, %s7794_s30  }
  0x19   : > { %10593 = sst [smem:[#allocation25_spill]] %s7790_s29  ;;  %p79_p0 = scmp.ne.s32.totalorder %s7778_s26, %s7774_s25 }
  0x1a   : > { %10594 = sst [smem:[#allocation26_spill]] %s7794_s30  ;;  %p10462_p1 = scmp.eq.s32.totalorder %s7913_s14, 0 }
  0x1b   : > { %p357_p3 = scmp.eq.s32.totalorder %s4744_s15, 1  ;;  %p4745_p5 = scmp.ge.s32.totalorder %s7794_s30, 1 }
  0x1c   : > { %p7922_p4 = por %p10462_p1, %p79_p0  ;;  %p394_p7 = scmp.lt.s32.totalorder %s7794_s30, 3 }
  0x1d   : > { %p7927_p6 = por %p357_p3, %p79_p0  ;;  %s7796_s19 = smov [#allocation8]  }
  0x1e   : > { %s10595_s16 = scalar_select %p7922_p4, 1, 0 }
  0x1f   : > { %s10596_s17 = scalar_select %p7927_p6, 1, 0 }
  0x20   : > { %p7932_p8 = pnand %p4745_p5, %p394_p7  ;;  %s406_s20 = sshll.u32 %s7796_s19, 4  ;;  %s7936_s20 = int_to_ptr.vmem [resolvable:$true] %s406_s20 }
  0x21   : > { %10597 = sst [smem:[#allocation27_spill]] %s10596_s17  ;;  %s7797_s22 = smov [#allocation11]  }
  0x22   : > { %s10598_s18 = scalar_select %p7932_p8, 1, 0 }
  0x23   : > { %p6494_p9 = pneg %p7932_p8  ;;  %s432_s23 = sshll.u32 %s7797_s22, 4  ;;  %s7947_s23 = int_to_ptr.vmem [resolvable:$true] %s432_s23 }
  0x24   : > { %s10600_s4 = sld [smem:[#allocation100_spill]] }
  0x25   : > { %p7943_p11 = pnand %p6494_p9, %p10462_p1 }
  0x27   : > { %s10599_s21 = scalar_select %p7943_p11, 1, 0 }
  0x28   : > { %p7957_p13 = pneg %p7943_p11 }
  0x2a   : > { %s7466_s17 = scalar_lea.hbm %s10600_s4, 2048 }
  0x2b   : > { %p7467_p12 = scmp.ne.s32.totalorder %s10600_s4, %s7466_s17  ;;  %p7473_p5 = scmp.lt.u32.totalorder %s7466_s17, %s10600_s4 }
  0x2c   : > { %s10601_s12 = scalar_select %p7957_p13, 1, 0 }
  0x2d   : > { %p7469_p0 = pnand %p7957_p13, %p7467_p12 }
  0x2f   : > { %p7470_p3 = pneg %p7469_p0 }
  0x31   : > { %p7475_p7 = pnand %p7473_p5, %p7470_p3 }
  0x33   : > { %7478 = shalt.err (!%p7475_p7)
}
  0x34   : > { %s7479_s25 = scalar_lea.vmem %s7936_s20, 2048  ;;  %p7487_p2 = scmp.lt.s32.totalorder %s7936_s20, %s7936_s20 }
  0x35   : > { %p7480_p9 = scmp.ne.s32.totalorder %s7936_s20, %s7479_s25  ;;  %p7488_p6 = scmp.lt.s32.totalorder %s7479_s25, %s7479_s25 }
  0x37   : > { %p7482_p10 = pnand %p7480_p9, %p7957_p13  ;;  %p7489_p12 = por %p7488_p6, %p7487_p2 }
  0x39   : > { %p7483_p1 = pneg %p7482_p10 }
  0x3b   : > { %p7490_p0 = pnand %p7489_p12, %p7483_p1 }
  0x3d   : > { %7493 = shalt.err (!%p7490_p0)
}
  0x3e   : > { %s10464_s24 = smov 128   ;;  %s10466_s13 = smov 8  }
  0x3f   : > { %6497 = dma.hbm_to_vmem [thread:$0]  (!%p7943_p11), %s10600_s4, 2048, %s7936_s20, [#allocation9], %s10464_s24, %s10464_s24, %s10466_s13  }
  0x40   : > { %s10602_s6 = sld [smem:[#allocation101_spill]] }
  0x46   : > { %s7494_s25 = scalar_lea.hbm %s10602_s6, 2048 }
  0x47   : > { %p7495_p1 = scmp.ne.s32.totalorder %s10602_s6, %s7494_s25  ;;  %p7501_p10 = scmp.lt.u32.totalorder %s7494_s25, %s10602_s6 }
  0x49   : > { %p7497_p2 = pnand %p7495_p1, %p7957_p13 }
  0x4b   : > { %p7498_p6 = pneg %p7497_p2 }
  0x4d   : > { %p7503_p3 = pnand %p7501_p10, %p7498_p6 }
  0x4f   : > { %7506 = shalt.err (!%p7503_p3)
}
  0x50   : > { %s7507_s20 = scalar_lea.vmem %s7947_s23, 2048  ;;  %p7515_p12 = scmp.lt.s32.totalorder %s7947_s23, %s7947_s23 }
  0x51   : > { %p7508_p5 = scmp.ne.s32.totalorder %s7947_s23, %s7507_s20  ;;  %p7516_p0 = scmp.lt.s32.totalorder %s7507_s20, %s7507_s20 }
  0x53   : > { %p7510_p7 = pnand %p7508_p5, %p7957_p13  ;;  %p7517_p1 = por %p7516_p0, %p7515_p12 }
  0x55   : > { %p7511_p9 = pneg %p7510_p7 }
  0x57   : > { %p7518_p2 = pnand %p7517_p1, %p7511_p9 }
  0x59   : > { %7521 = shalt.err (!%p7518_p2)
}
  0x5a   : > { %6503 = dma.hbm_to_vmem [thread:$0]  (!%p7943_p11), %s10602_s6, 2048, %s7947_s23, [#allocation12], %s10464_s24, %s10464_s24, %s10466_s13  }
  0x5b   : > { %s57_s11 = sadd.s32 1, %s7790_s29  ;;  %s66_s28 = sadd.s32 1, %s7782_s27 }
  0x5c   : > { %p59_p6 = scmp.ge.s32.totalorder %s57_s11, 2  ;;  %p73_p10 = scmp.ne.s32.totalorder %s7782_s27, %s7778_s26 }
  0x5d   : > { %p74_p3 = scmp.eq.s32.totalorder %s7794_s30, 0  ;;  %p6528_p5 = scmp.lt.s32.totalorder %s7794_s30, 2 }
  0x5e   : > { %s10871_s11 = smov (%p59_p6, %s57_s11), 0  ;;  %p10604_p9 = scmp.eq.s32.totalorder %s7913_s14, 1 }
  0x5f   : > { %10603 = sst [smem:[#allocation28_spill]] %s10871_s11  ;;  %p75_p7 = por %p74_p3, %p73_p10 }
  0x60   : > { %p8017_p12 = por %p10604_p9, %p73_p10  ;;  %s61_s15 = ssub.s32 %s7790_s29, %s10871_s11 }
  0x61   : > { %s10468_s19 = sand.u32 1, %s7782_s27   ;;  %p64_p0 = scmp.eq.s32.totalorder %s61_s15, 0 }
  0x62   : > { %s10605_s17 = scalar_select %p8017_p12, 1, 0 }
  0x63   : > { %s8026_s23 = sshll.u32 %s10468_s19, 7  ;;  %s8029_s22 = sshll.u32 %s7790_s29, 11 }
  0x64   : > { %10606 = sst [smem:[#allocation29_spill]] %s10605_s17  ;;  %p8031_p1 = pnand %p6528_p5, %p75_p7 }
  0x65   : > { %s8036_s20 = scalar_select %p64_p0, %s7782_s27, %s66_s28  }
  0x66   : > { %s10607_s25 = scalar_select %p8031_p1, 1, 0 }
  0x67   : > { %10608 = sst [smem:[#allocation30_spill]] %s8036_s20  ;;  %s494_s3 = sand.u32 1, %s7794_s30  }
  0x68   : > { %s10609_s1 = sld [smem:[#allocation98_spill]]  ;;  %s498_s15 = scalar_lea.vmem [#allocation5], %s8026_s23 }
  0x69   : > { %s505_s19 = sshll.u32 %s498_s15, 4  ;;  %s8048_s4 = scalar_lea.sflag [#allocation6], %s494_s3  ;;  %s8046_s19 = int_to_ptr.vmem [resolvable:$true] %s505_s19 }
  0x6a   : > { %p8054_p6 = pneg %p8031_p1 }
  0x6c   : > { %s10610_s28 = scalar_select %p8054_p6, 1, 0 }
  0x6e   : > { %s8043_s13 = scalar_lea.hbm %s10609_s1, %s8029_s22  ;;  %s7527_s11 = scalar_lea.hbm %s10609_s1, 4096 }
  0x6f   : > { %s7522_s6 = scalar_lea.hbm %s8043_s13, 2048  ;;  %p7528_p5 = scmp.lt.u32.totalorder %s8043_s13, %s10609_s1 }
  0x70   : > { %p7523_p2 = scmp.ne.s32.totalorder %s8043_s13, %s7522_s6  ;;  %p7529_p7 = scmp.lt.u32.totalorder %s7527_s11, %s7522_s6 }
  0x71   : > { %p7531_p0 = scmp.lt.u32.totalorder %s7522_s6, %s8043_s13 }
  0x72   : > { %p7525_p10 = pnand %p8054_p6, %p7523_p2  ;;  %p7530_p9 = por %p7529_p7, %p7528_p5 }
  0x74   : > { %p7526_p3 = pneg %p7525_p10  ;;  %p7532_p12 = por %p7531_p0, %p7530_p9 }
  0x76   : > { %p7533_p4 = pnand %p7532_p12, %p7526_p3 }
  0x78   : > { %7536 = shalt.err (!%p7533_p4)
}
  0x79   : > { %s7537_s3 = scalar_lea.vmem %s8046_s19, 2048  ;;  %s7800_s24 = smov [#allocation5]  }
  0x7a   : > { %p7538_p2 = scmp.ne.s32.totalorder %s8046_s19, %s7537_s3  ;;  %s7542_s9 = sshll.u32 %s7800_s24, 4  ;;  %s7543_s9 = int_to_ptr.vmem [resolvable:$false] %s7542_s9 }
  0x7b   : > { %s7544_s29 = scalar_lea.vmem %s7543_s9, 4096  ;;  %p7545_p11 = scmp.lt.s32.totalorder %s8046_s19, %s7543_s9 }
  0x7c   : > { %p7540_p10 = pnand %p7538_p2, %p8054_p6  ;;  %p7546_p13 = scmp.lt.s32.totalorder %s7544_s29, %s7537_s3 }
  0x7e   : > { %p7541_p8 = pneg %p7540_p10  ;;  %p7547_p5 = por %p7546_p13, %p7545_p11 }
  0x80   : > { %p7548_p7 = pnand %p7547_p5, %p7541_p8 }
  0x82   : > { %7551 = shalt.err (!%p7548_p7)
}
  0x83   : > { %s10611_s6 = smov 8   ;;  %s10612_s11 = smov 128  }
  0x84   : > { %6513 = dma.hbm_to_vmem [thread:$0]  (!%p8031_p1), %s8043_s13, 2048, %s8046_s19, %s8048_s4, %s10612_s11, %s10612_s11, %s10611_s6  }
  0x85   : > { %s7801_s15 = smov [#allocation10]   ;;  %s7802_s24 = smov [#allocation13]  }
  0x86   : > { %s419_s1 = sshll.u32 %s7801_s15, 4  ;;  %s454_s20 = sshll.u32 %s7802_s24, 4  ;;  %s420_s1 = int_to_ptr.vmem [resolvable:$true] %s419_s1  ;;  %s455_s20 = int_to_ptr.vmem [resolvable:$true] %s454_s20 }
  0x87   : > { %s7552_s29 = scalar_lea.hbm %s10449_s5, 2048  ;;  %p10613_p8 = scmp.ne.s32.totalorder %s10601_s12, 0 }
  0x88   : > { %p7553_p4 = scmp.ne.s32.totalorder %s10449_s5, %s7552_s29  ;;  %p7559_p12 = scmp.lt.u32.totalorder %s7552_s29, %s10449_s5 }
  0x8a   : > { %p7555_p11 = pnand %p7553_p4, %p10613_p8 }
  0x8c   : > { %p7556_p13 = pneg %p7555_p11 }
  0x8e   : > { %p7561_p3 = pnand %p7559_p12, %p7556_p13 }
  0x90   : > { %7564 = shalt.err (!%p7561_p3)
}
  0x91   : > { %s7565_s13 = scalar_lea.vmem %s420_s1, 2048  ;;  %p7573_p10 = scmp.lt.s32.totalorder %s420_s1, %s420_s1 }
  0x92   : > { %p7566_p9 = scmp.ne.s32.totalorder %s420_s1, %s7565_s13  ;;  %p7574_p5 = scmp.lt.s32.totalorder %s7565_s13, %s7565_s13 }
  0x94   : > { %p7568_p0 = pnand %p7566_p9, %p10613_p8  ;;  %p7575_p7 = por %p7574_p5, %p7573_p10 }
  0x96   : > { %p7569_p2 = pneg %p7568_p0 }
  0x98   : > { %p7576_p1 = pnand %p7575_p7, %p7569_p2 }
  0x9a   : > { %7579 = shalt.err (!%p7576_p1)
}
  0x9b   : > { %p10614_p4 = scmp.ne.s32.totalorder %s10599_s21, 0  ;;  %s7580_s19 = scalar_lea.hbm %s10454_s10, 2048 }
  0x9c   : > { %p7581_p11 = scmp.ne.s32.totalorder %s10454_s10, %s7580_s19  ;;  %p7587_p12 = scmp.lt.u32.totalorder %s7580_s19, %s10454_s10 }
  0x9d   : > { %6500 = dma.hbm_to_vmem [thread:$0]  (!%p10614_p4), %s10449_s5, 2048, %s420_s1, [#allocation9], %s10612_s11, %s10612_s11, %s10611_s6  }
  0x9e   : > { %p7583_p1 = pnand %p7581_p11, %p10613_p8 }
  0xa0   : > { %p7584_p13 = pneg %p7583_p1 }
  0xa2   : > { %p7589_p3 = pnand %p7587_p12, %p7584_p13 }
  0xa4   : > { %7592 = shalt.err (!%p7589_p3)
}
  0xa5   : > { %s7593_s29 = scalar_lea.vmem %s455_s20, 2048  ;;  %p7601_p10 = scmp.lt.s32.totalorder %s455_s20, %s455_s20 }
  0xa6   : > { %p7594_p9 = scmp.ne.s32.totalorder %s455_s20, %s7593_s29  ;;  %p7602_p5 = scmp.lt.s32.totalorder %s7593_s29, %s7593_s29 }
  0xa8   : > { %p7596_p0 = pnand %p7594_p9, %p10613_p8  ;;  %p7603_p7 = por %p7602_p5, %p7601_p10 }
  0xaa   : > { %p7597_p2 = pneg %p7596_p0 }
  0xac   : > { %p7604_p6 = pnand %p7603_p7, %p7597_p2 }
  0xae   : > { %7607 = shalt.err (!%p7604_p6)
}
  0xaf   : > { %6506 = dma.hbm_to_vmem [thread:$0]  (!%p10614_p4), %s10454_s10, 2048, %s455_s20, [#allocation12], %s10612_s11, %s10612_s11, %s10611_s6  }
  0xb0   : > { %s8127_s8 = scalar_lea.hbm %s10444_s0, %s8029_s22  ;;  %s475_s21 = scalar_lea.vmem [#allocation2], %s8026_s23 }
  0xb1   : > { %s484_s30 = sshll.u32 %s475_s21, 4  ;;  %s8136_s15 = scalar_lea.hbm %s10446_s2, %s8029_s22  ;;  %s8130_s30 = int_to_ptr.vmem [resolvable:$true] %s484_s30 }
  0xb2   : > { %s10615_s24 = sand.u32 1, %s7782_s27   ;;  %s7608_s9 = scalar_lea.hbm %s8127_s8, 2048 }
  0xb3   : > { %s8140_s20 = scalar_lea.sflag [#allocation3], %s10615_s24  ;;  %p7609_p6 = scmp.ne.s32.totalorder %s8127_s8, %s7608_s9 }
  0xb4   : > { %p10616_p8 = scmp.ne.s32.totalorder %s10610_s28, 0  ;;  %s7613_s1 = scalar_lea.hbm %s10444_s0, 4096 }
  0xb5   : > { %p7614_p1 = scmp.lt.u32.totalorder %s8127_s8, %s10444_s0  ;;  %p7615_p13 = scmp.lt.u32.totalorder %s7613_s1, %s7608_s9 }
  0xb6   : > { %p7611_p4 = pnand %p7609_p6, %p10616_p8  ;;  %p7617_p3 = scmp.lt.u32.totalorder %s7608_s9, %s8127_s8 }
  0xb7   : > { %p7616_p12 = por %p7615_p13, %p7614_p1 }
  0xb8   : > { %p7612_p11 = pneg %p7611_p4 }
  0xb9   : > { %p7618_p9 = por %p7617_p3, %p7616_p12 }
  0xbb   : > { %p7619_p0 = pnand %p7618_p9, %p7612_p11 }
  0xbd   : > { %7622 = shalt.err (!%p7619_p0)
}
  0xbe   : > { %s7623_s22 = scalar_lea.vmem %s8130_s30, 2048  ;;  %s7803_s7 = smov [#allocation2]  }
  0xbf   : > { %p7624_p2 = scmp.ne.s32.totalorder %s8130_s30, %s7623_s22  ;;  %s7628_s21 = sshll.u32 %s7803_s7, 4  ;;  %s7629_s21 = int_to_ptr.vmem [resolvable:$false] %s7628_s21 }
  0xc0   : > { %s7630_s17 = scalar_lea.vmem %s7629_s21, 4096  ;;  %p7631_p7 = scmp.lt.s32.totalorder %s8130_s30, %s7629_s21 }
  0xc1   : > { %p7626_p10 = pnand %p7624_p2, %p10616_p8  ;;  %p7632_p6 = scmp.lt.s32.totalorder %s7630_s17, %s7623_s22 }
  0xc3   : > { %p7627_p5 = pneg %p7626_p10  ;;  %p7633_p4 = por %p7632_p6, %p7631_p7 }
  0xc5   : > { %p7634_p1 = pnand %p7633_p4, %p7627_p5 }
  0xc7   : > { %7637 = shalt.err (!%p7634_p1)
}
  0xc8   : > { %p10617_p11 = scmp.ne.s32.totalorder %s10607_s25, 0  ;;  %s519_s19 = scalar_lea.vmem [#allocation7], %s8026_s23 }
  0xc9   : > { %s526_s24 = sshll.u32 %s519_s19, 4  ;;  %s7638_s9 = scalar_lea.hbm %s8136_s15, 2048  ;;  %s8168_s24 = int_to_ptr.vmem [resolvable:$true] %s526_s24 }
  0xca   : > { %6510 = dma.hbm_to_vmem [thread:$0]  (!%p10617_p11), %s8127_s8, 2048, %s8130_s30, %s8140_s20, %s10612_s11, %s10612_s11, %s10611_s6  }
  0xcb   : > { %p7639_p13 = scmp.ne.s32.totalorder %s8136_s15, %s7638_s9  ;;  %s7643_s1 = scalar_lea.hbm %s10446_s2, 4096 }
  0xcc   : > { %p7644_p9 = scmp.lt.u32.totalorder %s8136_s15, %s10446_s2  ;;  %p7645_p0 = scmp.lt.u32.totalorder %s7643_s1, %s7638_s9 }
  0xcd   : > { %p7641_p12 = pnand %p7639_p13, %p10616_p8  ;;  %p7647_p10 = scmp.lt.u32.totalorder %s7638_s9, %s8136_s15 }
  0xce   : > { %p7646_p2 = por %p7645_p0, %p7644_p9 }
  0xcf   : > { %p7642_p3 = pneg %p7641_p12 }
  0xd0   : > { %p7648_p5 = por %p7647_p10, %p7646_p2 }
  0xd2   : > { %p7649_p7 = pnand %p7648_p5, %p7642_p3 }
  0xd4   : > { %7652 = shalt.err (!%p7649_p7)
}
  0xd5   : > { %s7653_s23 = scalar_lea.vmem %s8168_s24, 2048  ;;  %s7804_s8 = smov [#allocation7]  }
  0xd6   : > { %p7654_p6 = scmp.ne.s32.totalorder %s8168_s24, %s7653_s23  ;;  %s7658_s30 = sshll.u32 %s7804_s8, 4  ;;  %s7659_s30 = int_to_ptr.vmem [resolvable:$false] %s7658_s30 }
  0xd7   : > { %s7660_s20 = scalar_lea.vmem %s7659_s30, 4096  ;;  %p7661_p13 = scmp.lt.s32.totalorder %s8168_s24, %s7659_s30 }
  0xd8   : > { %p7656_p4 = pnand %p7654_p6, %p10616_p8  ;;  %p7662_p12 = scmp.lt.s32.totalorder %s7660_s20, %s7653_s23 }
  0xda   : > { %p7657_p1 = pneg %p7656_p4  ;;  %p7663_p9 = por %p7662_p12, %p7661_p13 }
  0xdc   : > { %p7664_p0 = pnand %p7663_p9, %p7657_p1 }
  0xde   : > { %7667 = shalt.err (!%p7664_p0)
}
  0xdf   : > { %6516 = dma.hbm_to_vmem [thread:$0]  (!%p10617_p11), %s8136_s15, 2048, %s8168_s24, %s8048_s4, %s10612_s11, %s10612_s11, %s10611_s6  }
  0xe0   : > { %p10618_p8 = scmp.ne.s32.totalorder %s10598_s18, 0 }
  0xe2   : > { %544 = sbr.rel (%p10618_p8) target bundleno = 3584 (0xe00), region = 68 }
  0xe9   : > { %s8198_s28 = sand.u32 1, %s7778_s26   ;;  %p10619_p3 = scmp.ne.s32.totalorder %s10595_s16, 0 }
  0xea   : > { %s8201_s22 = sshll.u32 %s8198_s28, 7  ;;  %s547_s25 = scalar_lea.sflag [#allocation3], %s8198_s28 }
  0xeb   : > { %s8205_s7 = scalar_lea.vmem [#allocation2], %s8201_s22 }
  0xec   : > { %7749 = dma.done.wait (%p10619_p3), %s547_s25, 2048  }
  0xed   : > { %7751 = vsyncadd (%p10619_p3), %s547_s25, 4294965248  ;;  %s555_s4 = sand.u32 1, %s7913_s14   ;;  %s8213_s6 = scalar_lea.vmem [#allocation5], %s8201_s22 }
  0xee   : > { %s556_s18 = scalar_lea.sflag [#allocation6], %s555_s4 }
  0xef   : > { %7753 = dma.done.wait (%p10619_p3), %s556_s18, 4096  }
  0xf0   : > { %7755 = vsyncadd (%p10619_p3), %s556_s18, 4294963200  ;;  %s8220_s11 = scalar_lea.vmem [#allocation7], %s8201_s22  ;;  %p10620_p11 = scmp.eq.s32.totalorder %s7913_s14, 0 }
  0xf2   : > { %7757 = dma.done.wait (%p10620_p11), [#allocation9], 4096   ;;  %p10621_p2 = pmov %p10620_p11 }
  0xf4   : > { %7759 = vsyncadd (%p10621_p2), [#allocation9], 4294963200  ;;  %p10622_p10 = pmov %p10621_p2 }
  0xf5   : > { %p10623_p5 = pmov %p10621_p2 }
  0xf6   : > { %7761 = dma.done.wait (%p10622_p10), [#allocation12], 4096  }
  0xf7   : > { %7763 = vsyncadd (%p10623_p5), [#allocation12], 4294963200  ;;  %v873_v0 = vld [vmem:[#allocation10] sm:$0xff]  ;;  %v874_v1 = vld [vmem:[#allocation10 + $0x8] sm:$0xff]  ;;  %s10624_s15 = sld [smem:[#allocation103_spill]]  ;;  %vm1218_vm0 = vcmask 261120  }
  0xf8   : > { %v875_v2 = vld [vmem:[#allocation10 + $0x10] sm:$0xff]  ;;  %v6052_v3 = vpack.c.bf16 %v874_v1, %v873_v0  ;;  %v876_v4 = vld [vmem:[#allocation10 + $0x18] sm:$0xff]  ;;  %v877_v6 = vld [vmem:[#allocation10 + $0x20] sm:$0xff]  ;;  %s7805_s21 = smov 96   ;;  %s10629_s24 = sld [smem:[#allocation102_spill]]  ;;  %vm4254_vm2 = vcmask 523264  }
  0xf9   : > { %v6056_v5 = vpack.c.bf16 %v876_v4, %v875_v2  ;;  %v878_v7 = vld [vmem:[#allocation10 + $0x28] sm:$0xff]  ;;  %v668_v9 = vld [vmem:[%s8213_s6] sm:$0xff]  ;;  %v879_v10 = vld [vmem:[#allocation10 + $0x30] sm:$0xff]  ;;  %s10636_s29 = sld [smem:[#allocation104_spill]]  ;;  %s10641_s8 = sld [smem:[#allocation99_spill]]  ;;  %vm4271_vm3 = vcmask 785408  }
  0xfa   : > { %6053 = vmatprep.subr.bf16.mxu1 %v6052_v3  ;;  %v6060_v8 = vpack.c.bf16 %v878_v7, %v877_v6  ;;  %v880_v11 = vld [vmem:[#allocation10 + $0x38] sm:$0xff]  ;;  %5436 = vmatprep.mubr.f32.mxu1 %v668_v9  ;;  %v703_v12 = vld [vmem:[#allocation8] sm:$0xff]  ;;  %v704_v13 = vld [vmem:[#allocation8 + $0x8] sm:$0xff]  ;;  %s10639_s1 = sld [smem:[#allocation24_spill]]  ;;  %s7806_s20 = smov 64  }
  0xfb   : > { %6055 = vmatpush3.bf16.msra.mxu1 %v6052_v3  ;;  %v705_v14 = vld [vmem:[#allocation8 + $0x10] sm:$0xff]  ;;  %v6064_v15 = vpack.c.bf16 %v880_v11, %v879_v10  ;;  %v881_v16 = vld [vmem:[#allocation10 + $0x40] sm:$0xff]  ;;  %v6020_v17 = vpack.c.bf16 %v704_v13, %v703_v12  ;;  %v706_v18 = vld [vmem:[#allocation8 + $0x18] sm:$0xff]  ;;  %s7807_s25 = smov 32   ;;  %s10279_s14 = scalar_lea.vmem [#allocation14], %s8201_s22 }
  0xfc   : > { %6057 = vmatprep.subr.bf16.mxu1 %v6056_v5  ;;  %v882_v19 = vld [vmem:[#allocation10 + $0x48] sm:$0xff]  ;;  %v6024_v20 = vpack.c.bf16 %v706_v18, %v705_v14  ;;  %v707_v21 = vld [vmem:[#allocation8 + $0x20] sm:$0xff]  ;;  %v883_v24 = vld [vmem:[#allocation10 + $0x50] sm:$0xff]  ;;  %s10854_s22 = sld [smem:[#allocation29_spill]]  ;;  %s4479_s9 = scalar_lea.sflag [#allocation16], %s8198_s28 }
  0xfd   : > { %v708_v22 = vld [vmem:[#allocation8 + $0x28] sm:$0xff]  ;;  %6021 = vmatprep.subr.bf16.mxu0 %v6020_v17  ;;  %v6068_v23 = vpack.c.bf16 %v882_v19, %v881_v16  ;;  %v884_v26 = vld [vmem:[#allocation10 + $0x58] sm:$0xff]  ;;  %v709_v27 = vld [vmem:[#allocation8 + $0x30] sm:$0xff]  ;;  %s10855_s19 = sld [smem:[#allocation107_spill]] }
  0xfe   : > { %6023 = vmatpush3.bf16.msra.mxu0 %v6020_v17  ;;  %v6028_v25 = vpack.c.bf16 %v708_v22, %v707_v21  ;;  %v710_v28 = vld [vmem:[#allocation8 + $0x38] sm:$0xff]  ;;  %v652_v29 = vld [vmem:[%s8205_s7] sm:$0xff]  ;;  %v6072_v30 = vpack.c.bf16 %v884_v26, %v883_v24  ;;  %v886_v33 = vld [vmem:[#allocation10 + $0x68] sm:$0xff] }
  0xff   : > { %6059 = vmatpush3.bf16.msra.mxu1 %v6056_v5  ;;  %6025 = vmatprep.subr.bf16.mxu0 %v6024_v20  ;;  %v885_v31 = vld [vmem:[#allocation10 + $0x60] sm:$0xff]  ;;  %v6032_v32 = vpack.c.bf16 %v710_v28, %v709_v27  ;;  %v712_v35 = vld [vmem:[#allocation8 + $0x48] sm:$0xff]  ;;  %v887_v37 = vld [vmem:[#allocation10 + $0x70] sm:$0xff] }
 0x100   : > { %6061 = vmatprep.subr.bf16.mxu1 %v6060_v8  ;;  %v711_v34 = vld [vmem:[#allocation8 + $0x40] sm:$0xff]  ;;  %5380 = vmatprep.mubr.f32.mxu0 %v652_v29  ;;  %v6076_v36 = vpack.c.bf16 %v886_v33, %v885_v31  ;;  %v888_v39 = vld [vmem:[#allocation10 + $0x78] sm:$0xff]  ;;  %v713_v40 = vld [vmem:[#allocation8 + $0x50] sm:$0xff]  ;;  %p646_p7 = scmp.lt.s32.totalorder %s10639_s1, 1  ;;  %s4963_s16 = sshll.u32 %s10639_s1, 13 }
 0x101   : > { %v6036_v38 = vpack.c.bf16 %v712_v35, %v711_v34  ;;  %v714_v41 = vld [vmem:[#allocation8 + $0x58] sm:$0xff]  ;;  %v6080_v42 = vpack.c.bf16 %v888_v39, %v887_v37  ;;  %v715_v44 = vld [vmem:[#allocation8 + $0x60] sm:$0xff]  ;;  %v716_v45 = vld [vmem:[#allocation8 + $0x68] sm:$0xff] }
 0x102   : > { %6027 = vmatpush3.bf16.msra.mxu0 %v6024_v20  ;;  %v6040_v43 = vpack.c.bf16 %v714_v41, %v713_v40  ;;  %v6044_v46 = vpack.c.bf16 %v716_v45, %v715_v44  ;;  %v717_v47 = vld [vmem:[#allocation8 + $0x70] sm:$0xff]  ;;  %v718_v48 = vld [vmem:[#allocation8 + $0x78] sm:$0xff]  ;;  %v669_v49 = vld [vmem:[%s8213_s6 + $0x8] sm:$0xff]  ;;  %s647_s13 = scalar_select %p646_p7, %s10639_s1, 1 }
 0x103   : > { %6063 = vmatpush3.bf16.msra.mxu1 %v6060_v8  ;;  %6029 = vmatprep.subr.bf16.mxu0 %v6028_v25  ;;  %v670_v50 = vld [vmem:[%s8213_s6 + $0x10] sm:$0xff]  ;;  %v6048_v51 = vpack.c.bf16 %v718_v48, %v717_v47  ;;  %v1043_v52 = vld [vmem:[#allocation11] sm:$0xff]  ;;  %v1044_v53 = vld [vmem:[#allocation11 + $0x8] sm:$0xff]  ;;  %p10856_p4 = scmp.ne.s32.totalorder %s10854_s22, 0 }
 0x104   : > { %6065 = vmatprep.subr.bf16.mxu1 %v6064_v15  ;;  %v671_v54 = vld [vmem:[%s8213_s6 + $0x18] sm:$0xff]  ;;  %v672_v55 = vld [vmem:[%s8213_s6 + $0x20] sm:$0xff]  ;;  %v6084_v56 = vpack.c.bf16 %v1044_v53, %v1043_v52  ;;  %v1045_v57 = vld [vmem:[#allocation11 + $0x10] sm:$0xff]  ;;  %s8519_s30 = scalar_lea.vmem %s10641_s8, %s647_s13 }
 0x105   : > { %v1046_v58 = vld [vmem:[#allocation11 + $0x18] sm:$0xff]  ;;  %v673_v59 = vld [vmem:[%s8213_s6 + $0x28] sm:$0xff]  ;;  %v674_v61 = vld [vmem:[%s8213_s6 + $0x30] sm:$0xff] }
 0x106   : > { %6031 = vmatpush3.bf16.msra.mxu0 %v6028_v25  ;;  %v653_v60 = vld [vmem:[%s8205_s7 + $0x8] sm:$0xff]  ;;  %v6088_v62 = vpack.c.bf16 %v1046_v58, %v1045_v57  ;;  %v654_v63 = vld [vmem:[%s8205_s7 + $0x10] sm:$0xff]  ;;  %v1047_v0 = vld [vmem:[#allocation11 + $0x20] sm:$0xff] }
 0x107   : > { %6067 = vmatpush3.bf16.msra.mxu1 %v6064_v15  ;;  %6033 = vmatprep.subr.bf16.mxu0 %v6032_v32  ;;  %v1048_v1 = vld [vmem:[#allocation11 + $0x28] sm:$0xff]  ;;  %v675_v2 = vld [vmem:[%s8213_s6 + $0x38] sm:$0xff]  ;;  %v676_v4 = vld [vmem:[%s8213_s6 + $0x40] sm:$0xff] }
 0x108   : > { %6069 = vmatprep.subr.bf16.mxu1 %v6068_v23  ;;  %v655_v3 = vld [vmem:[%s8205_s7 + $0x18] sm:$0xff]  ;;  %v6092_v5 = vpack.c.bf16 %v1048_v1, %v1047_v0  ;;  %v656_v6 = vld [vmem:[%s8205_s7 + $0x20] sm:$0xff]  ;;  %v1049_v7 = vld [vmem:[#allocation11 + $0x30] sm:$0xff] }
 0x109   : > { %v1050_v8 = vld [vmem:[#allocation11 + $0x38] sm:$0xff]  ;;  %v677_v9 = vld [vmem:[%s8213_s6 + $0x48] sm:$0xff]  ;;  %v678_v11 = vld [vmem:[%s8213_s6 + $0x50] sm:$0xff] }
 0x10a   : > { %6035 = vmatpush3.bf16.msra.mxu0 %v6032_v32  ;;  %v657_v10 = vld [vmem:[%s8205_s7 + $0x28] sm:$0xff]  ;;  %v6096_v12 = vpack.c.bf16 %v1050_v8, %v1049_v7  ;;  %v658_v13 = vld [vmem:[%s8205_s7 + $0x30] sm:$0xff]  ;;  %v1051_v14 = vld [vmem:[#allocation11 + $0x40] sm:$0xff] }
 0x10b   : > { %6071 = vmatpush3.bf16.msra.mxu1 %v6068_v23  ;;  %6037 = vmatprep.subr.bf16.mxu0 %v6036_v38  ;;  %v1052_v15 = vld [vmem:[#allocation11 + $0x48] sm:$0xff]  ;;  %v679_v16 = vld [vmem:[%s8213_s6 + $0x58] sm:$0xff]  ;;  %v680_v18 = vld [vmem:[%s8213_s6 + $0x60] sm:$0xff] }
 0x10c   : > { %6073 = vmatprep.subr.bf16.mxu1 %v6072_v30  ;;  %v659_v17 = vld [vmem:[%s8205_s7 + $0x38] sm:$0xff]  ;;  %v6100_v19 = vpack.c.bf16 %v1052_v15, %v1051_v14  ;;  %v660_v20 = vld [vmem:[%s8205_s7 + $0x40] sm:$0xff]  ;;  %v1053_v21 = vld [vmem:[#allocation11 + $0x50] sm:$0xff] }
 0x10d   : > { %v1054_v22 = vld [vmem:[#allocation11 + $0x58] sm:$0xff]  ;;  %v681_v23 = vld [vmem:[%s8213_s6 + $0x68] sm:$0xff]  ;;  %v682_v25 = vld [vmem:[%s8213_s6 + $0x70] sm:$0xff] }
 0x10e   : > { %6039 = vmatpush3.bf16.msra.mxu0 %v6036_v38  ;;  %v661_v24 = vld [vmem:[%s8205_s7 + $0x48] sm:$0xff]  ;;  %v6104_v26 = vpack.c.bf16 %v1054_v22, %v1053_v21  ;;  %v662_v27 = vld [vmem:[%s8205_s7 + $0x50] sm:$0xff]  ;;  %v1055_v28 = vld [vmem:[#allocation11 + $0x60] sm:$0xff] }
 0x10f   : > { %6075 = vmatpush3.bf16.msra.mxu1 %v6072_v30  ;;  %6041 = vmatprep.subr.bf16.mxu0 %v6040_v43  ;;  %v1056_v29 = vld [vmem:[#allocation11 + $0x68] sm:$0xff]  ;;  %v683_v30 = vld [vmem:[%s8213_s6 + $0x78] sm:$0xff]  ;;  %v664_v32 = vld [vmem:[%s8205_s7 + $0x60] sm:$0xff] }
 0x110   : > { %6077 = vmatprep.subr.bf16.mxu1 %v6076_v36  ;;  %v663_v31 = vld [vmem:[%s8205_s7 + $0x58] sm:$0xff]  ;;  %v6108_v33 = vpack.c.bf16 %v1056_v29, %v1055_v28  ;;  %v1057_v34 = vld [vmem:[#allocation11 + $0x70] sm:$0xff]  ;;  %v684_v40 = vld [vmem:[%s8220_s11] sm:$0xff] }
 0x111   : > { %v1058_v35 = vld [vmem:[#allocation11 + $0x78] sm:$0xff]  ;;  %v666_v37 = vld [vmem:[%s8205_s7 + $0x70] sm:$0xff]  ;;  %v685_v41 = vld [vmem:[%s8220_s11 + $0x8] sm:$0xff] }
 0x112   : > { %6043 = vmatpush3.bf16.msra.mxu0 %v6040_v43  ;;  %v6112_v38 = vpack.c.bf16 %v1058_v35, %v1057_v34  ;;  %v667_v39 = vld [vmem:[%s8205_s7 + $0x78] sm:$0xff]  ;;  %v688_v44 = vld [vmem:[%s8220_s11 + $0x20] sm:$0xff]  ;;  %v689_v45 = vld [vmem:[%s8220_s11 + $0x28] sm:$0xff] }
 0x113   : > { %6079 = vmatpush3.bf16.msra.mxu1 %v6076_v36  ;;  %6045 = vmatprep.subr.bf16.mxu0 %v6044_v46  ;;  %v665_v36 = vld [vmem:[%s8205_s7 + $0x68] sm:$0xff]  ;;  %v687_v43 = vld [vmem:[%s8220_s11 + $0x18] sm:$0xff]  ;;  %v692_v48 = vld [vmem:[%s8220_s11 + $0x40] sm:$0xff]  ;;  %s4769_s7 = sshll.u32 %s8198_s28, 9 }
 0x114   : > { %6081 = vmatprep.subr.bf16.mxu1 %v6080_v42  ;;  %v691_v47 = vld [vmem:[%s8220_s11 + $0x38] sm:$0xff]  ;;  %v696_v52 = vld [vmem:[%s8220_s11 + $0x60] sm:$0xff]  ;;  %v697_v53 = vld [vmem:[%s8220_s11 + $0x68] sm:$0xff]  ;;  %s10180_s4 = scalar_lea.vmem [#allocation15], %s4769_s7 }
 0x115   : > { %vm8287_vm1 = vmpackc.low %vm1218_vm0, %vm1218_vm0 }
 0x116   : > { %6047 = vmatpush3.bf16.msra.mxu0 %v6044_v46  ;;  %v690_v46 = vld [vmem:[%s8220_s11 + $0x30] sm:$0xff] }
 0x117   : > { %6083 = vmatpush3.bf16.msra.mxu1 %v6080_v42  ;;  %6049 = vmatprep.subr.bf16.mxu0 %v6048_v51  ;;  %v686_v42 = vld [vmem:[%s8220_s11 + $0x10] sm:$0xff] }
 0x11a   : > { %5437 = vmatmul.mubr.f32.vlgmr.msra.gmra.mrb[0].mxu1 %v669_v49  ;;  %6051 = vmatpush3.bf16.msra.mxu0 %v6048_v51  ;;  %v693_v49 = vld [vmem:[%s8220_s11 + $0x48] sm:$0xff]  ;;  %v695_v51 = vld [vmem:[%s8220_s11 + $0x58] sm:$0xff] }
 0x11b   : > { %5439 = vmatprep.mubr.f32.mxu1 %v670_v50  ;;  %6085 = vmatprep.subr.bf16.mxu0 %v6084_v56  ;;  %v694_v50 = vld [vmem:[%s8220_s11 + $0x50] sm:$0xff] }
 0x11d   : > { %5381 = vmatmul.mubr.f32.vlgmr.msra.gmra.mrb[0].mxu0 %v653_v60 }
 0x11e   : > { %5440 = vmatmul.mubr.f32.gmra.mrb[2].mxu1 %v671_v54  ;;  %6087 = vmatpush3.bf16.msra.mxu0 %v6084_v56  ;;  %v698_v54 = vld [vmem:[%s8220_s11 + $0x70] sm:$0xff]  ;;  %v8281_v56 = vld [vmem:[%s10624_s15] ss:$0 sm:$0xff]  ;;  %s4515_s15 = sshll.u32 %s10180_s4, 4  ;;  %s10347_s15 = int_to_ptr.vmem [resolvable:$true] %s4515_s15 }
 0x11f   : > { %5442 = vmatprep.mubr.f32.mxu1 %v672_v55  ;;  %5383 = vmatprep.mubr.f32.mxu0 %v654_v63  ;;  %v699_v55 = vld [vmem:[%s8220_s11 + $0x78] sm:$0xff]  ;;  %s10853_s11 = sld [smem:[#allocation105_spill]]  ;;  %s7668_s3 = scalar_lea.vmem %s10347_s15, 8192 }
 0x120   : > { %6089 = vmatprep.subr.bf16.mxu0 %v6088_v62  ;;  %p7669_p6 = scmp.ne.s32.totalorder %s10347_s15, %s7668_s3 }
 0x121   : > { %5384 = vmatmul.mubr.f32.gmra.mrb[2].mxu0 %v655_v3 }
 0x122   : > { %5443 = vmatmul.mubr.f32.gmra.mrb[4].mxu1 %v673_v59  ;;  %6091 = vmatpush3.bf16.msra.mxu0 %v6088_v62  ;;  %p7670_p1 = pnand %p7669_p6, %p10856_p4 }
 0x123   : > { %5445 = vmatprep.mubr.f32.mxu1 %v674_v61  ;;  %5386 = vmatprep.mubr.f32.mxu0 %v656_v6  ;;  %v10625_v61 = vmov 0 }
 0x124   : > { %6093 = vmatprep.subr.bf16.mxu0 %v6092_v5  ;;  %v10626_v61 = vsel %vm8287_vm1, 4294967295, %v10625_v61  ;;  %p7671_p13 = pneg %p7670_p1 }
 0x125   : > { %5387 = vmatmul.mubr.f32.gmra.mrb[4].mxu0 %v657_v10  ;;  %10627 = vst [vmem:[#allocation31_spill] sm:$0xff] %v10626_v61 }
 0x126   : > { %5446 = vmatmul.mubr.f32.gmra.mrb[6].mxu1 %v675_v2  ;;  %6095 = vmatpush3.bf16.msra.mxu0 %v6092_v5 }
 0x127   : > { %5448 = vmatprep.mubr.f32.mxu1 %v676_v4  ;;  %5389 = vmatprep.mubr.f32.mxu0 %v658_v13  ;;  %v8304_v4 = vld [vmem:[%s10629_s24] ss:$0 sm:$0xff]  ;;  %s10345_s24 = scalar_lea.hbm %s10855_s19, %s4963_s16 }
 0x128   : > { %6097 = vmatprep.subr.bf16.mxu0 %v6096_v12 }
 0x129   : > { %5390 = vmatmul.mubr.f32.gmra.mrb[6].mxu0 %v659_v17 }
 0x12a   : > { %5449 = vmatmul.mubr.f32.gmra.mrb[8].mxu1 %v677_v9  ;;  %6099 = vmatpush3.bf16.msra.mxu0 %v6096_v12 }
 0x12b   : > { %5451 = vmatprep.mubr.f32.mxu1 %v678_v11  ;;  %5392 = vmatprep.mubr.f32.mxu0 %v660_v20 }
 0x12c   : > { %6101 = vmatprep.subr.bf16.mxu0 %v6100_v19 }
 0x12d   : > { %5393 = vmatmul.mubr.f32.gmra.mrb[8].mxu0 %v661_v24 }
 0x12e   : > { %5452 = vmatmul.mubr.f32.gmra.mrb[10].mxu1 %v679_v16  ;;  %6103 = vmatpush3.bf16.msra.mxu0 %v6100_v19 }
 0x12f   : > { %5454 = vmatprep.mubr.f32.mxu1 %v680_v18  ;;  %5395 = vmatprep.mubr.f32.mxu0 %v662_v27 }
 0x130   : > { %6105 = vmatprep.subr.bf16.mxu0 %v6104_v26 }
 0x131   : > { %5396 = vmatmul.mubr.f32.gmra.mrb[10].mxu0 %v663_v31 }
 0x132   : > { %5455 = vmatmul.mubr.f32.gmra.mrb[12].mxu1 %v681_v23  ;;  %6107 = vmatpush3.bf16.msra.mxu0 %v6104_v26 }
 0x133   : > { %5457 = vmatprep.mubr.f32.mxu1 %v682_v25  ;;  %5398 = vmatprep.mubr.f32.mxu0 %v664_v32 }
 0x134   : > { %6109 = vmatprep.subr.bf16.mxu0 %v6108_v33 }
 0x135   : > { %5399 = vmatmul.mubr.f32.gmra.mrb[12].mxu0 %v665_v36 }
 0x136   : > { %5458 = vmatmul.mubr.f32.gmra.mrb[14].mxu1 %v683_v30  ;;  %6111 = vmatpush3.bf16.msra.mxu0 %v6108_v33 }
 0x137   : > { %5401 = vmatprep.mubr.f32.mxu0 %v666_v37  ;;  %6113 = vmatprep.subr.bf16.mxu0 %v6112_v38 }
 0x139   : > { %5402 = vmatmul.mubr.f32.gmra.mrb[14].mxu0 %v667_v39 }
 0x13a   : > { %6115 = vmatpush3.bf16.msra.mxu0 %v6112_v38  ;;  %5492 = vmatprep.mubr.f32.mxu0 %v684_v40 }
 0x13d   : > { %5493 = vmatmul.mubr.f32.vlgmr.msra.gmra.mrb[16].mxu0 %v685_v41 }
 0x13e   : > { %5495 = vmatprep.mubr.f32.mxu0 %v686_v42 }
 0x141   : > { %5496 = vmatmul.mubr.f32.gmra.mrb[18].mxu0 %v687_v43 }
 0x142   : > { %5498 = vmatprep.mubr.f32.mxu0 %v688_v44 }
 0x145   : > { %5499 = vmatmul.mubr.f32.gmra.mrb[20].mxu0 %v689_v45 }
 0x146   : > { %5501 = vmatprep.mubr.f32.mxu0 %v690_v46 }
 0x149   : > { %5502 = vmatmul.mubr.f32.gmra.mrb[22].mxu0 %v691_v47 }
 0x14a   : > { %5504 = vmatprep.mubr.f32.mxu0 %v692_v48 }
 0x14d   : > { %5505 = vmatmul.mubr.f32.gmra.mrb[24].mxu0 %v693_v49 }
 0x14e   : > { %5507 = vmatprep.mubr.f32.mxu0 %v694_v50 }
 0x151   : > { %5508 = vmatmul.mubr.f32.gmra.mrb[26].mxu0 %v695_v51 }
 0x152   : > { %5510 = vmatprep.mubr.f32.mxu0 %v696_v52 }
 0x155   : > { %5511 = vmatmul.mubr.f32.gmra.mrb[28].mxu0 %v697_v53 }
 0x156   : > { %5513 = vmatprep.mubr.f32.mxu0 %v698_v54 }
 0x159   : > { %5514 = vmatmul.mubr.f32.gmra.mrb[30].mxu0 %v699_v55 }
 0x1ed   : > { %v5438_v57 = vpop.f32.mrb[0].mxu1 }
 0x1ee   : > { %v969_v58 = vadd.f32 %v5438_v57, %v8281_v56  ;;  %v963_v59 = vpop.f32.mrb[1].mxu1 }
 0x1ef   : > { %v964_v60 = vadd.f32 %v8281_v56, %v963_v59 }
 0x1f0   : > { %v8308_v8 = vpop.f32.mrb[0].mxu0 }
 0x1f1   : > { %v8291_v62 = vpack.i.bf16 %v969_v58, %v964_v60  ;;  %v6116_v63 = vpack.c.bf16 %v969_v58, %v964_v60  ;;  %v5441_v0 = vpop.f32.mrb[2].mxu1  ;;  %v793_v11 = vpop.f32.mrb[1].mxu0 }
 0x1f2   : > { %v979_v1 = vadd.f32 %v5441_v0, %v8281_v56  ;;  %v973_v2 = vpop.f32.mrb[3].mxu1  ;;  %v8317_v13 = vadd.f32 %v8304_v4, %v793_v11 }
 0x1f3   : > { %10628 = vst [vmem:[#allocation32_spill] sm:$0xff] %v8291_v62  ;;  %6594 = vrot.lane.b32.xlu0 %v8291_v62, %s7805_s21  ;;  %6118 = vmatprep.subr.msk.bf16.mxu1 %vm8287_vm1, %v6116_v63  ;;  %v974_v3 = vadd.f32 %v8281_v56, %v973_v2 }
 0x1f4   : > { %6121 = vmatpush3.bf16.xpose.msk.msra.mxu1 %vm8287_vm1, %v6116_v63  ;;  %5548 = vmatprep.mubr.msk.f32.mxu1 %vm1218_vm0, %v8317_v13  ;;  %v8323_v17 = vpop.f32.mrb[2].mxu0 }
 0x1f5   : > { %v8306_v5 = vpack.i.bf16 %v979_v1, %v974_v3  ;;  %v6122_v6 = vpack.c.bf16 %v979_v1, %v974_v3  ;;  %v5444_v7 = vpop.f32.mrb[4].mxu1  ;;  %v8326_v20 = vpop.f32.mrb[3].mxu0 }
 0x1f6   : > { %v989_v9 = vadd.f32 %v5444_v7, %v8281_v56  ;;  %v983_v10 = vpop.f32.mrb[5].mxu1 }
 0x1f7   : > { %10630 = vst [vmem:[#allocation33_spill] sm:$0xff] %v8306_v5  ;;  %6599 = vrot.lane.b32.xlu1 %v8306_v5, %s7805_s21  ;;  %6124 = vmatprep.subr.msk.bf16.mxu1 %vm8287_vm1, %v6122_v6  ;;  %v984_v12 = vadd.f32 %v8281_v56, %v983_v10 }
 0x1f8   : > { %v5388_v25 = vpop.f32.mrb[4].mxu0 }
 0x1f9   : > { %v8319_v14 = vpack.i.bf16 %v989_v9, %v984_v12  ;;  %v6128_v15 = vpack.c.bf16 %v989_v9, %v984_v12  ;;  %v5447_v16 = vpop.f32.mrb[6].mxu1  ;;  %v8339_v28 = vadd.f32 %v5388_v25, %v8304_v4  ;;  %v8341_v29 = vpop.f32.mrb[5].mxu0  ;;  %v4772_v12 = vld [vmem:[%s10636_s29] ss:$0 sm:$0xff]  ;;  %s7808_s29 = smov [#allocation15]  }
 0x1fa   : > { %v999_v18 = vadd.f32 %v5447_v16, %v8281_v56  ;;  %v993_v19 = vpop.f32.mrb[7].mxu1  ;;  %s7672_s13 = sshll.u32 %s7808_s29, 4  ;;  %s7673_s13 = int_to_ptr.vmem [resolvable:$false] %s7672_s13 }
 0x1fb   : > { %10631 = vst [vmem:[#allocation34_spill] sm:$0xff] %v8319_v14  ;;  %6604 = vrot.lane.b32.xlu0 %v8319_v14, %s7805_s21  ;;  %v994_v21 = vadd.f32 %v8281_v56, %v993_v19  ;;  %s7674_s12 = scalar_lea.vmem %s7673_s13, 16384  ;;  %p7675_p12 = scmp.lt.s32.totalorder %s10347_s15, %s7673_s13 }
 0x1fc   : > { %6127 = vmatpush3.bf16.xpose.msk.msra.mxu1 %vm8287_vm1, %v6122_v6  ;;  %v5391_v33 = vpop.f32.mrb[6].mxu0  ;;  %p7676_p9 = scmp.lt.s32.totalorder %s7674_s12, %s7668_s3 }
 0x1fd   : > { %6130 = vmatprep.subr.msk.bf16.mxu1 %vm8287_vm1, %v6128_v15  ;;  %v8335_v22 = vpack.i.bf16 %v999_v18, %v994_v21  ;;  %v6134_v23 = vpack.c.bf16 %v999_v18, %v994_v21  ;;  %v5450_v24 = vpop.f32.mrb[8].mxu1  ;;  %v8350_v37 = vadd.f32 %v5391_v33, %v8304_v4  ;;  %v823_v38 = vpop.f32.mrb[7].mxu0 }
 0x1fe   : > { %v1009_v26 = vadd.f32 %v5450_v24, %v8281_v56  ;;  %v1003_v27 = vpop.f32.mrb[9].mxu1  ;;  %v8354_v40 = vadd.f32 %v8304_v4, %v823_v38  ;;  %p7677_p0 = por %p7676_p9, %p7675_p12 }
 0x1ff   : > { %10632 = vst [vmem:[#allocation35_spill] sm:$0xff] %v8335_v22  ;;  %6609 = vrot.lane.b32.xlu1 %v8335_v22, %s7805_s21  ;;  %v1004_v30 = vadd.f32 %v8281_v56, %v1003_v27 }
 0x200   : > { %v5394_v43 = vpop.f32.mrb[8].mxu0  ;;  %p7678_p8 = pnand %p7677_p0, %p7671_p13 }
 0x201   : > { %v6140_v31 = vpack.c.bf16 %v1009_v26, %v1004_v30  ;;  %v5453_v32 = vpop.f32.mrb[10].mxu1  ;;  %v8346_v34 = vpack.i.bf16 %v1009_v26, %v1004_v30  ;;  %v8364_v47 = vadd.f32 %v5394_v43, %v8304_v4  ;;  %v833_v48 = vpop.f32.mrb[9].mxu0 }
 0x202   : > { %v1019_v35 = vadd.f32 %v5453_v32, %v8281_v56  ;;  %v1013_v36 = vpop.f32.mrb[11].mxu1  ;;  %v8368_v50 = vadd.f32 %v8304_v4, %v833_v48 }
 0x203   : > { %10633 = vst [vmem:[#allocation36_spill] sm:$0xff] %v8346_v34  ;;  %v1014_v39 = vadd.f32 %v8281_v56, %v1013_v36 }
 0x204   : > { %6133 = vmatpush3.bf16.xpose.msk.msra.mxu1 %vm8287_vm1, %v6128_v15  ;;  %v5397_v53 = vpop.f32.mrb[10].mxu0 }
 0x205   : > { %6136 = vmatprep.subr.msk.bf16.mxu1 %vm8287_vm1, %v6134_v23  ;;  %v6146_v41 = vpack.c.bf16 %v1019_v35, %v1014_v39  ;;  %v5456_v42 = vpop.f32.mrb[12].mxu1  ;;  %v8360_v44 = vpack.i.bf16 %v1019_v35, %v1014_v39  ;;  %v8374_v58 = vadd.f32 %v5397_v53, %v8304_v4  ;;  %v843_v59 = vpop.f32.mrb[11].mxu0 }
 0x206   : > { %v1029_v45 = vadd.f32 %v5456_v42, %v8281_v56  ;;  %v1023_v46 = vpop.f32.mrb[13].mxu1  ;;  %v8378_v63 = vadd.f32 %v8304_v4, %v843_v59 }
 0x207   : > { %10634 = vst [vmem:[#allocation37_spill] sm:$0xff] %v8360_v44  ;;  %v1024_v49 = vadd.f32 %v8281_v56, %v1023_v46 }
 0x208   : > { %v5400_v1 = vpop.f32.mrb[12].mxu0 }
 0x209   : > { %v6152_v51 = vpack.c.bf16 %v1029_v45, %v1024_v49  ;;  %v5459_v52 = vpop.f32.mrb[14].mxu1  ;;  %v8370_v54 = vpack.i.bf16 %v1029_v45, %v1024_v49  ;;  %v8387_v3 = vadd.f32 %v5400_v1, %v8304_v4  ;;  %v853_v6 = vpop.f32.mrb[13].mxu0 }
 0x20a   : > { %v1039_v55 = vadd.f32 %v5459_v52, %v8281_v56  ;;  %v1033_v57 = vpop.f32.mrb[15].mxu1  ;;  %v8390_v7 = vadd.f32 %v8304_v4, %v853_v6 }
 0x20b   : > { %10635 = vst [vmem:[#allocation38_spill] sm:$0xff] %v8370_v54  ;;  %v1034_v60 = vadd.f32 %v8281_v56, %v1033_v57 }
 0x20c   : > { %6139 = vmatpush3.bf16.xpose.msk.msra.mxu1 %vm8287_vm1, %v6134_v23  ;;  %v5403_v56 = vpop.f32.mrb[14].mxu0 }
 0x20d   : > { %6142 = vmatprep.subr.msk.bf16.mxu1 %vm8287_vm1, %v6140_v31  ;;  %v6158_v0 = vpack.c.bf16 %v1039_v55, %v1034_v60  ;;  %v8384_v2 = vpack.i.bf16 %v1039_v55, %v1034_v60  ;;  %v8393_v9 = vadd.f32 %v5403_v56, %v8304_v4  ;;  %v863_v10 = vpop.f32.mrb[15].mxu0  ;;  %v8457_v56 = vadd.f32 %v8304_v4, %v8326_v20 }
 0x20e   : > { %v8396_v11 = vadd.f32 %v8304_v4, %v863_v10  ;;  %v8461_v10 = vadd.f32 %v8308_v8, %v8304_v4  ;;  %v8479_v8 = vadd.f32 %v8304_v4, %v8341_v29 }
 0x210   : > { %v5494_v15 = vpop.f32.mrb[16].mxu0 }
 0x211   : > { %v8405_v16 = vadd.f32 %v5494_v15, %v4772_v12  ;;  %v1133_v18 = vpop.f32.mrb[17].mxu0 }
 0x212   : > { %v8407_v19 = vadd.f32 %v4772_v12, %v1133_v18 }
 0x214   : > { %6145 = vmatpush3.bf16.xpose.msk.msra.mxu1 %vm8287_vm1, %v6140_v31  ;;  %v5497_v21 = vpop.f32.mrb[18].mxu0  ;;  %v6164_v23 = vpack.c.bf16 %v8405_v16, %v8407_v19 }
 0x215   : > { %6148 = vmatprep.subr.msk.bf16.mxu1 %vm8287_vm1, %v6146_v41  ;;  %v8411_v24 = vadd.f32 %v5497_v21, %v4772_v12  ;;  %v1143_v25 = vpop.f32.mrb[19].mxu0 }
 0x216   : > { %v8413_v26 = vadd.f32 %v4772_v12, %v1143_v25  ;;  %6165 = vmatprep.subr.bf16.mxu0 %v6164_v23 }
 0x217   : > { %6167 = vmatpush3.bf16.msra.mxu0 %v6164_v23  ;;  %v8469_v23 = vadd.f32 %v8323_v17, %v8304_v4 }
 0x218   : > { %v5500_v27 = vpop.f32.mrb[20].mxu0  ;;  %v6168_v30 = vpack.c.bf16 %v8411_v24, %v8413_v26 }
 0x219   : > { %v8421_v31 = vadd.f32 %v5500_v27, %v4772_v12  ;;  %v1153_v32 = vpop.f32.mrb[21].mxu0  ;;  %v8522_v27 = vld [vmem:[%s8519_s30] ss:$0 sm:$0xff] }
 0x21a   : > { %v8423_v33 = vadd.f32 %v4772_v12, %v1153_v32  ;;  %6169 = vmatprep.subr.bf16.mxu0 %v6168_v30  ;;  %10642 = vst [vmem:[#allocation42_spill] sm:$0xff] %v8522_v27 }
 0x21b   : > { %6171 = vmatpush3.bf16.msra.mxu0 %v6168_v30 }
 0x21c   : > { %6151 = vmatpush3.bf16.xpose.msk.msra.mxu1 %vm8287_vm1, %v6146_v41  ;;  %v5503_v35 = vpop.f32.mrb[22].mxu0  ;;  %v6172_v36 = vpack.c.bf16 %v8421_v31, %v8423_v33 }
 0x21d   : > { %6154 = vmatprep.subr.msk.bf16.mxu1 %vm8287_vm1, %v6152_v51  ;;  %v8427_v38 = vadd.f32 %v5503_v35, %v4772_v12  ;;  %v1163_v39 = vpop.f32.mrb[23].mxu0 }
 0x21e   : > { %v8429_v41 = vadd.f32 %v4772_v12, %v1163_v39  ;;  %6173 = vmatprep.subr.bf16.mxu0 %v6172_v36 }
 0x21f   : > { %6175 = vmatpush3.bf16.msra.mxu0 %v6172_v36 }
 0x220   : > { %v5506_v42 = vpop.f32.mrb[24].mxu0  ;;  %v6176_v43 = vpack.c.bf16 %v8427_v38, %v8429_v41 }
 0x221   : > { %v8437_v45 = vadd.f32 %v5506_v42, %v4772_v12  ;;  %v1173_v46 = vpop.f32.mrb[25].mxu0 }
 0x222   : > { %v8439_v48 = vadd.f32 %v4772_v12, %v1173_v46  ;;  %6177 = vmatprep.subr.bf16.mxu0 %v6176_v43 }
 0x223   : > { %6179 = vmatpush3.bf16.msra.mxu0 %v6176_v43 }
 0x224   : > { %6157 = vmatpush3.bf16.xpose.msk.msra.mxu1 %vm8287_vm1, %v6152_v51  ;;  %v5509_v49 = vpop.f32.mrb[26].mxu0  ;;  %v6180_v52 = vpack.c.bf16 %v8437_v45, %v8439_v48 }
 0x225   : > { %6160 = vmatprep.subr.msk.bf16.mxu1 %vm8287_vm1, %v6158_v0  ;;  %v8443_v51 = vadd.f32 %v5509_v49, %v4772_v12  ;;  %v1183_v53 = vpop.f32.mrb[27].mxu0 }
 0x226   : > { %v8445_v55 = vadd.f32 %v4772_v12, %v1183_v53  ;;  %6181 = vmatprep.subr.bf16.mxu0 %v6180_v52 }
 0x227   : > { %6183 = vmatpush3.bf16.msra.mxu0 %v6180_v52 }
 0x228   : > { %v5512_v57 = vpop.f32.mrb[28].mxu0  ;;  %v6184_v59 = vpack.c.bf16 %v8443_v51, %v8445_v55 }
 0x229   : > { %v8451_v60 = vadd.f32 %v5512_v57, %v4772_v12  ;;  %v1193_v1 = vpop.f32.mrb[29].mxu0 }
 0x22a   : > { %v8453_v6 = vadd.f32 %v4772_v12, %v1193_v1  ;;  %6185 = vmatprep.subr.bf16.mxu0 %v6184_v59 }
 0x22b   : > { %6187 = vmatpush3.bf16.msra.mxu0 %v6184_v59 }
 0x22c   : > { %6163 = vmatpush3.bf16.xpose.msk.msra.mxu1 %vm8287_vm1, %v6158_v0  ;;  %v5515_v0 = vpop.f32.mrb[30].mxu0  ;;  %v6188_v15 = vpack.c.bf16 %v8451_v60, %v8453_v6 }
 0x22d   : > { %v8465_v18 = vadd.f32 %v5515_v0, %v4772_v12  ;;  %v1203_v21 = vpop.f32.mrb[31].mxu0 }
 0x22e   : > { %v8473_v20 = vadd.f32 %v4772_v12, %v1203_v21  ;;  %6189 = vmatprep.subr.bf16.mxu0 %v6188_v15 }
 0x22f   : > { %10637 = vst [vmem:[#allocation39_spill] sm:$0xff] %v8465_v18  ;;  %6191 = vmatpush3.bf16.msra.mxu0 %v6188_v15 }
 0x230   : > { %10638 = vst [vmem:[#allocation40_spill] sm:$0xff] %v8473_v20  ;;  %v6192_v25 = vpack.c.bf16 %v8465_v18, %v8473_v20 }
 0x232   : > { %6193 = vmatprep.subr.bf16.mxu0 %v6192_v25 }
 0x233   : > { %5549 = vmatmul.mubr.msk.f32.vlgmr.msra.gmra.mrb[16].mxu1 %vm1218_vm0, %v8461_v10  ;;  %6195 = vmatpush3.bf16.msra.mxu0 %v6192_v25 }
 0x234   : > { %5551 = vmatprep.mubr.msk.f32.mxu1 %vm1218_vm0, %v8457_v56 }
 0x237   : > { %5552 = vmatmul.mubr.msk.f32.gmra.mrb[18].mxu1 %vm1218_vm0, %v8469_v23 }
 0x238   : > { %5554 = vmatprep.mubr.msk.f32.mxu1 %vm1218_vm0, %v8479_v8 }
 0x23b   : > { %5555 = vmatmul.mubr.msk.f32.gmra.mrb[20].mxu1 %vm1218_vm0, %v8339_v28 }
 0x23c   : > { %5557 = vmatprep.mubr.msk.f32.mxu1 %vm1218_vm0, %v8354_v40 }
 0x23f   : > { %5558 = vmatmul.mubr.msk.f32.gmra.mrb[22].mxu1 %vm1218_vm0, %v8350_v37 }
 0x240   : > { %5560 = vmatprep.mubr.msk.f32.mxu1 %vm1218_vm0, %v8368_v50 }
 0x243   : > { %5561 = vmatmul.mubr.msk.f32.gmra.mrb[24].mxu1 %vm1218_vm0, %v8364_v47 }
 0x244   : > { %5563 = vmatprep.mubr.msk.f32.mxu1 %vm1218_vm0, %v8378_v63 }
 0x247   : > { %5564 = vmatmul.mubr.msk.f32.gmra.mrb[26].mxu1 %vm1218_vm0, %v8374_v58 }
 0x248   : > { %5566 = vmatprep.mubr.msk.f32.mxu1 %vm1218_vm0, %v8390_v7 }
 0x24b   : > { %5567 = vmatmul.mubr.msk.f32.gmra.mrb[28].mxu1 %vm1218_vm0, %v8387_v3 }
 0x24c   : > { %5569 = vmatprep.mubr.msk.f32.mxu1 %vm1218_vm0, %v8396_v11 }
 0x24f   : > { %5570 = vmatmul.mubr.msk.f32.gmra.mrb[30].mxu1 %vm1218_vm0, %v8393_v9 }
 0x265   : > { %v6595_v4 = vpop.permute.xlu0 %6594 }
 0x266   : > { %v6597_v17 = vunpack.i.h.bf16 %v6595_v4  ;;  %v6596_v29 = vunpack.i.l.bf16 %v6595_v4 }
 0x268   : > { %v8509_v12 = vpack.c.bf16 %v6597_v17, %v6596_v29 }
 0x269   : > { %v8591_v5 = vpop.permute.xlu1 %6599 }
 0x26a   : > { %10640 = vst [vmem:[#allocation41_spill] sm:$0xff] %v8509_v12  ;;  %6198 = vmatprep.subr.msk.bf16.mxu0 %vm8287_vm1, %v8509_v12  ;;  %10646 = vst [vmem:[#allocation46_spill] sm:$0xff] %v8591_v5 }
 0x306   : > { %v5550_v30 = vpop.f32.mrb[16].mxu1 }
 0x307   : > { %v1387_v32 = vadd.f32 %v5550_v30, %v8522_v27  ;;  %v1381_v35 = vpop.f32.mrb[17].mxu1 }
 0x308   : > { %v1382_v39 = vadd.f32 %v8522_v27, %v1381_v35 }
 0x309   : > { %1462 = vmax.xlane.f32.xlu0 %v1387_v32 }
 0x30a   : > { %v5553_v36 = vpop.f32.mrb[18].mxu1 }
 0x30b   : > { %v8527_v42 = vadd.f32 %v5553_v36, %v8522_v27  ;;  %v1391_v43 = vpop.f32.mrb[19].mxu1 }
 0x30c   : > { %v8531_v46 = vadd.f32 %v8522_v27, %v1391_v43 }
 0x30d   : > { %1466 = vmax.xlane.f32.xlu1 %v8527_v42  ;;  %1460 = vmax.xlane.f32.xlu0 %v1382_v39 }
 0x30e   : > { %v5556_v49 = vpop.f32.mrb[20].mxu1 }
 0x30f   : > { %v1401_v52 = vpop.f32.mrb[21].mxu1  ;;  %v8537_v57 = vadd.f32 %v5556_v49, %v8522_v27 }
 0x310   : > { %v8534_v53 = vadd.f32 %v8522_v27, %v1401_v52 }
 0x311   : > { %1464 = vmax.xlane.f32.xlu1 %v8531_v46 }
 0x312   : > { %v5559_v59 = vpop.f32.mrb[22].mxu1  ;;  %1468 = vmax.xlane.f32.xlu0 %v8534_v53 }
 0x313   : > { %v1411_v1 = vpop.f32.mrb[23].mxu1  ;;  %v8545_v15 = vadd.f32 %v5559_v59, %v8522_v27 }
 0x314   : > { %v8542_v0 = vadd.f32 %v8522_v27, %v1411_v1 }
 0x315   : > { %1470 = vmax.xlane.f32.xlu1 %v8537_v57 }
 0x316   : > { %v5562_v21 = vpop.f32.mrb[24].mxu1  ;;  %1472 = vmax.xlane.f32.xlu0 %v8542_v0 }
 0x317   : > { %v1421_v25 = vpop.f32.mrb[25].mxu1  ;;  %v8553_v17 = vadd.f32 %v5562_v21, %v8522_v27 }
 0x318   : > { %v8550_v4 = vadd.f32 %v8522_v27, %v1421_v25 }
 0x319   : > { %1474 = vmax.xlane.f32.xlu1 %v8545_v15 }
 0x31a   : > { %v5565_v29 = vpop.f32.mrb[26].mxu1  ;;  %1476 = vmax.xlane.f32.xlu0 %v8550_v4 }
 0x31b   : > { %v1431_v30 = vpop.f32.mrb[27].mxu1  ;;  %v8561_v36 = vadd.f32 %v5565_v29, %v8522_v27 }
 0x31c   : > { %v8558_v35 = vadd.f32 %v8522_v27, %v1431_v30  ;;  %v8584_v30 = vpop.permute.xlu0 %6604 }
 0x31d   : > { %1478 = vmax.xlane.f32.xlu1 %v8553_v17  ;;  %10643 = vst [vmem:[#allocation43_spill] sm:$0xff] %v8584_v30 }
 0x31e   : > { %v5568_v43 = vpop.f32.mrb[28].mxu1  ;;  %1480 = vmax.xlane.f32.xlu0 %v8558_v35 }
 0x31f   : > { %v1441_v49 = vpop.f32.mrb[29].mxu1  ;;  %v8569_v59 = vadd.f32 %v5568_v43, %v8522_v27 }
 0x320   : > { %v8566_v52 = vadd.f32 %v8522_v27, %v1441_v49 }
 0x321   : > { %1482 = vmax.xlane.f32.xlu1 %v8561_v36 }
 0x322   : > { %v5571_v1 = vpop.f32.mrb[30].mxu1  ;;  %1484 = vmax.xlane.f32.xlu0 %v8566_v52 }
 0x323   : > { %v1451_v21 = vpop.f32.mrb[31].mxu1  ;;  %v8577_v29 = vadd.f32 %v5571_v1, %v8522_v27 }
 0x324   : > { %v8574_v25 = vadd.f32 %v8522_v27, %v1451_v21 }
 0x325   : > { %1486 = vmax.xlane.f32.xlu1 %v8569_v59 }
 0x326   : > { %1488 = vmax.xlane.f32.xlu0 %v8574_v25 }
 0x329   : > { %1490 = vmax.xlane.f32.xlu1 %v8577_v29 }
 0x33c   : > { %6614 = vrot.lane.b32.xlu0 %v8346_v34, %s7805_s21  ;;  %v8594_v34 = vpop.permute.xlu1 %6609 }
 0x33d   : > { %10647 = vst [vmem:[#allocation47_spill] sm:$0xff] %v8594_v34 }
 0x396   : > { %v1463_v43 = vpop.xlane.xlu0 %1462 }
 0x397   : > { %v1493_v49 = vsub.f32 %v1387_v32, %v1463_v43 }
 0x399   : > { %v1510_v22 = vmul.f32 1.442695, %v1493_v49 }
 0x39a   : > { %v1461_v61 = vpop.xlane.xlu0 %1460  ;;  %v1467_v30 = vpop.xlane.xlu1 %1466 }
 0x39b   : > { %6953 = vpow2.f32 %v1510_v22  ;;  %v1492_v21 = vsub.f32 %v1382_v39, %v1461_v61  ;;  %v1495_v34 = vsub.f32 %v8527_v42, %v1467_v30 }
 0x39d   : > { %v1508_v12 = vmul.f32 1.442695, %v1492_v21  ;;  %v1514_v18 = vmul.f32 1.442695, %v1495_v34 }
 0x39e   : > { %v1465_v22 = vpop.xlane.xlu1 %1464 }
 0x39f   : > { %6955 = vpow2.f32 %v1508_v12  ;;  %v1469_v32 = vpop.xlane.xlu0 %1468  ;;  %v1494_v43 = vsub.f32 %v8531_v46, %v1465_v22 }
 0x3a0   : > { %v1496_v20 = vsub.f32 %v8534_v53, %v1469_v32 }
 0x3a1   : > { %v1512_v21 = vmul.f32 1.442695, %v1494_v43 }
 0x3a2   : > { %v1471_v61 = vpop.xlane.xlu1 %1470  ;;  %v1516_v22 = vmul.f32 1.442695, %v1496_v20 }
 0x3a3   : > { %v1473_v39 = vpop.xlane.xlu0 %1472  ;;  %6957 = vpow2.f32 %v1512_v21 }
 0x3a4   : > { %v1498_v62 = vsub.f32 %v8542_v0, %v1473_v39 }
 0x3a5   : > { %v8586_v1 = vpop.eup %6953 }
 0x3a6   : > { %10644 = vst [vmem:[#allocation44_spill] sm:$0xff] %v8586_v1  ;;  %1542 = vadd.xlane.f32.xlu1 %v8586_v1  ;;  %v1475_v12 = vpop.xlane.xlu1 %1474  ;;  %v1497_v1 = vsub.f32 %v8537_v57, %v1471_v61  ;;  %v1520_v43 = vmul.f32 1.442695, %v1498_v62 }
 0x3a8   : > { %v1518_v5 = vmul.f32 1.442695, %v1497_v1 }
 0x3a9   : > { %v8589_v27 = vpop.eup %6955 }
 0x3aa   : > { %10645 = vst [vmem:[#allocation45_spill] sm:$0xff] %v8589_v27  ;;  %1540 = vadd.xlane.f32.xlu0 %v8589_v27  ;;  %v1479_v49 = vpop.xlane.xlu1 %1478  ;;  %v1477_v27 = vpop.xlane.xlu0 %1476  ;;  %6959 = vpow2.f32 %v1518_v5 }
 0x3ab   : > { %6961 = vpow2.f32 %v1514_v18  ;;  %v1501_v42 = vsub.f32 %v8553_v17, %v1479_v49  ;;  %v1500_v5 = vsub.f32 %v8550_v4, %v1477_v27 }
 0x3ad   : > { %v8609_v30 = vpop.eup %6957  ;;  %v1524_v0 = vmul.f32 1.442695, %v1500_v5 }
 0x3ae   : > { %v1483_v14 = vpop.xlane.xlu1 %1482 }
 0x3af   : > { %v1503_v17 = vsub.f32 %v8561_v36, %v1483_v14 }
 0x3b2   : > { %v1487_v61 = vpop.xlane.xlu1 %1486 }
 0x3b3   : > { %v1505_v34 = vsub.f32 %v8569_v59, %v1487_v61 }
 0x3b4   : > { %v8614_v18 = vpop.eup %6959 }
 0x3b5   : > { %v1534_v62 = vmul.f32 1.442695, %v1505_v34  ;;  %v8616_v20 = vpop.eup %6961 }
 0x3b6   : > { %v1491_v27 = vpop.xlane.xlu1 %1490 }
 0x3b7   : > { %6619 = vrot.lane.b32.xlu1 %v8360_v44, %s7805_s21  ;;  %v1499_v44 = vsub.f32 %v8545_v15, %v1475_v12  ;;  %v1507_v1 = vsub.f32 %v8577_v29, %v1491_v27  ;;  %v10658_v27 = vld [vmem:[#allocation41_spill] sm:$0xff] }
 0x3b9   : > { %v1522_v46 = vmul.f32 1.442695, %v1499_v44  ;;  %v1526_v44 = vmul.f32 1.442695, %v1501_v42  ;;  %v1538_v39 = vmul.f32 1.442695, %v1507_v1  ;;  %v8696_v42 = vpack.i.bf16 %v8411_v24, %v8413_v26 }
 0x3ba   : > { %v8720_v24 = vpack.i.bf16 %v8443_v51, %v8445_v55  ;;  %v10651_v55 = vld [vmem:[#allocation34_spill] sm:$0xff]  ;;  %v10660_v1 = vld [vmem:[#allocation43_spill] sm:$0xff] }
 0x3bb   : > { %6963 = vpow2.f32 %v1522_v46 }
 0x3bc   : > { %6965 = vpow2.f32 %v1516_v22 }
 0x3bd   : > { %6967 = vpow2.f32 %v1520_v43  ;;  %v8690_v43 = vpack.i.bf16 %v8405_v16, %v8407_v19  ;;  %v8708_v16 = vpack.i.bf16 %v8421_v31, %v8423_v33  ;;  %v8714_v19 = vpack.i.bf16 %v8437_v45, %v8439_v48  ;;  %v10649_v45 = vld [vmem:[#allocation40_spill] sm:$0xff]  ;;  %v10650_v48 = vld [vmem:[#allocation39_spill] sm:$0xff] }
 0x3be   : > { %v8728_v31 = vpack.i.bf16 %v8451_v60, %v8453_v6  ;;  %v8736_v51 = vpack.i.bf16 %v10650_v48, %v10649_v45  ;;  %v10652_v60 = vld [vmem:[#allocation33_spill] sm:$0xff] }
 0x3c0   : > { %6624 = vrot.lane.b32.xlu0 %v8370_v54, %s7805_s21  ;;  %v1481_v54 = vpop.xlane.xlu0 %1480 }
 0x3c1   : > { %v1502_v57 = vsub.f32 %v8558_v35, %v1481_v54 }
 0x3c3   : > { %v1528_v15 = vmul.f32 1.442695, %v1502_v57 }
 0x3c4   : > { %v1485_v53 = vpop.xlane.xlu0 %1484 }
 0x3c5   : > { %6969 = vpow2.f32 %v1528_v15  ;;  %v1504_v54 = vsub.f32 %v8566_v52, %v1485_v53  ;;  %v8621_v4 = vpop.eup %6963  ;;  %v1530_v52 = vmul.f32 1.442695, %v1503_v17  ;;  %v8702_v15 = vpack.i.bf16 %v8427_v38, %v8429_v41  ;;  %v10648_v38 = vld [vmem:[#allocation32_spill] sm:$0xff]  ;;  %v10653_v53 = vld [vmem:[#allocation46_spill] sm:$0xff] }
 0x3c6   : > { %6971 = vpow2.f32 %v1526_v44  ;;  %v8623_v59 = vpop.eup %6965  ;;  %v6602_v5 = vunpack.i.h.bf16 %v10653_v53  ;;  %v6601_v44 = vunpack.i.l.bf16 %v10653_v53 }
 0x3c7   : > { %v1532_v35 = vmul.f32 1.442695, %v1504_v54  ;;  %6973 = vpow2.f32 %v1534_v62  ;;  %v8628_v14 = vpop.eup %6967  ;;  %v10654_v54 = vld [vmem:[#allocation45_spill] sm:$0xff] }
 0x3c8   : > { %6975 = vpow2.f32 %v1524_v0  ;;  %v1489_v32 = vpop.xlane.xlu0 %1488  ;;  %v10656_v0 = vld [vmem:[#allocation44_spill] sm:$0xff] }
 0x3c9   : > { %6977 = vpow2.f32 %v1532_v35  ;;  %v1506_v12 = vsub.f32 %v8574_v25, %v1489_v32  ;;  %v6202_v35 = vpack.c.bf16 %v6602_v5, %v6601_v44  ;;  %v6607_v32 = vunpack.i.h.bf16 %v10660_v1 }
 0x3ca   : > { %6979 = vpow2.f32 %v1530_v52 }
 0x3cb   : > { %v1536_v29 = vmul.f32 1.442695, %v1506_v12  ;;  %6981 = vpow2.f32 %v1538_v39  ;;  %v6606_v12 = vunpack.i.l.bf16 %v10660_v1 }
 0x3cc   : > { %v6615_v26 = vpop.permute.xlu0 %6614 }
 0x3cd   : > { %6983 = vpow2.f32 %v1536_v29  ;;  %v6208_v39 = vpack.c.bf16 %v6607_v32, %v6606_v12  ;;  %v10661_v29 = vld [vmem:[#allocation47_spill] sm:$0xff]  ;;  %v6617_v48 = vunpack.i.h.bf16 %v6615_v26 }
 0x3cf   : > { %v8630_v36 = vpop.eup %6969 }
 0x3d0   : > { %v8635_v49 = vpop.eup %6971 }
 0x3d1   : > { %v8637_v21 = vpop.eup %6973 }
 0x3d2   : > { %v8641_v46 = vpop.eup %6975 }
 0x3d3   : > { %v8643_v22 = vpop.eup %6977 }
 0x3d4   : > { %v8647_v25 = vpop.eup %6979 }
 0x3d5   : > { %v8650_v57 = vpop.eup %6981 }
 0x3d7   : > { %v8653_v61 = vpop.eup %6983 }
 0x3db   : > { %1544 = vadd.xlane.f32.xlu1 %v8609_v30 }
 0x3df   : > { %1550 = vadd.xlane.f32.xlu1 %v8614_v18  ;;  %1546 = vadd.xlane.f32.xlu0 %v8616_v20 }
 0x3e3   : > { %1554 = vadd.xlane.f32.xlu1 %v8621_v4  ;;  %1548 = vadd.xlane.f32.xlu0 %v8623_v59 }
 0x3e7   : > { %1552 = vadd.xlane.f32.xlu1 %v8628_v14  ;;  %1560 = vadd.xlane.f32.xlu0 %v8630_v36 }
 0x3eb   : > { %1558 = vadd.xlane.f32.xlu1 %v8635_v49  ;;  %1566 = vadd.xlane.f32.xlu0 %v8637_v21 }
 0x3ef   : > { %1556 = vadd.xlane.f32.xlu1 %v8641_v46  ;;  %1564 = vadd.xlane.f32.xlu0 %v8643_v22 }
 0x3f3   : > { %1562 = vadd.xlane.f32.xlu1 %v8647_v25 }
 0x3f7   : > { %1570 = vadd.xlane.f32.xlu1 %v8650_v57 }
 0x3fb   : > { %1568 = vadd.xlane.f32.xlu1 %v8653_v61 }
 0x405   : > { %6629 = vrot.lane.b32.xlu0 %v8384_v2, %s7805_s21 }
 0x409   : > { %1861 = vrot.lane.b32.xlu0 %v8317_v13, %s7805_s21 }
 0x40c   : > { %1863 = vrot.lane.b32.xlu1 %v8461_v10, %s7805_s21 }
 0x40d   : > { %1865 = vrot.lane.b32.xlu0 %v8457_v56, %s7805_s21 }
 0x410   : > { %1867 = vrot.lane.b32.xlu1 %v8469_v23, %s7805_s21 }
 0x411   : > { %1869 = vrot.lane.b32.xlu0 %v8479_v8, %s7805_s21 }
 0x414   : > { %1871 = vrot.lane.b32.xlu1 %v8339_v28, %s7805_s21 }
 0x415   : > { %1873 = vrot.lane.b32.xlu0 %v8354_v40, %s7805_s21 }
 0x418   : > { %1875 = vrot.lane.b32.xlu1 %v8350_v37, %s7805_s21 }
 0x419   : > { %1877 = vrot.lane.b32.xlu0 %v8368_v50, %s7805_s21 }
 0x41c   : > { %1879 = vrot.lane.b32.xlu1 %v8364_v47, %s7805_s21 }
 0x41d   : > { %1881 = vrot.lane.b32.xlu0 %v8378_v63, %s7805_s21 }
 0x420   : > { %1883 = vrot.lane.b32.xlu1 %v8374_v58, %s7805_s21 }
 0x421   : > { %1885 = vrot.lane.b32.xlu0 %v8390_v7, %s7805_s21 }
 0x424   : > { %1887 = vrot.lane.b32.xlu1 %v8387_v3, %s7805_s21 }
 0x425   : > { %1889 = vrot.lane.b32.xlu0 %v8396_v11, %s7805_s21 }
 0x428   : > { %1891 = vrot.lane.b32.xlu1 %v8393_v9, %s7805_s21 }
 0x429   : > { %6634 = vrot.lane.b32.xlu0 %v8690_v43, %s7805_s21 }
 0x42c   : > { %6639 = vrot.lane.b32.xlu1 %v8696_v42, %s7805_s21 }
 0x42d   : > { %6649 = vrot.lane.b32.xlu0 %v8702_v15, %s7805_s21 }
 0x430   : > { %6644 = vrot.lane.b32.xlu1 %v8708_v16, %s7805_s21 }
 0x431   : > { %6654 = vrot.lane.b32.xlu0 %v8714_v19, %s7805_s21 }
 0x433   : > { %v1543_v33 = vpop.xlane.xlu1 %1542 }
 0x434   : > { %6659 = vrot.lane.b32.xlu1 %v8720_v24, %s7805_s21  ;;  %6985 = vrcp.f32 %v1543_v33  ;;  %v6612_v33 = vunpack.i.h.bf16 %v10661_v29 }
 0x435   : > { %6674 = vrot.lane.b32.xlu0 %v10648_v38, %s7806_s20 }
 0x437   : > { %v1541_v41 = vpop.xlane.xlu0 %1540  ;;  %v6620_v53 = vpop.permute.xlu1 %6619 }
 0x438   : > { %6664 = vrot.lane.b32.xlu1 %v8728_v31, %s7805_s21  ;;  %6987 = vrcp.f32 %v1541_v41  ;;  %v6611_v41 = vunpack.i.l.bf16 %v10661_v29  ;;  %v6622_v5 = vunpack.i.h.bf16 %v6620_v53  ;;  %v6621_v44 = vunpack.i.l.bf16 %v6620_v53 }
 0x439   : > { %6684 = vrot.lane.b32.xlu0 %v10651_v55, %s7806_s20 }
 0x43a   : > { %v6214_v45 = vpack.c.bf16 %v6612_v33, %v6611_v41 }
 0x43c   : > { %6669 = vrot.lane.b32.xlu1 %v8736_v51, %s7805_s21 }
 0x43e   : > { %v6986_v6 = vpop.eup %6985 }
 0x43f   : > { %v8750_v17 = vmul.f32 %v6986_v6, %v10656_v0  ;;  %v6616_v6 = vunpack.i.l.bf16 %v6615_v26  ;;  %v6625_v0 = vpop.permute.xlu0 %6624 }
 0x440   : > { %6679 = vrot.lane.b32.xlu1 %v10652_v60, %s7806_s20  ;;  %v6627_v26 = vunpack.i.h.bf16 %v6625_v0 }
 0x441   : > { %10657 = vst [vmem:[#allocation40_spill] sm:$0xff] %v8750_v17 }
 0x442   : > { %v6988_v34 = vpop.eup %6987 }
 0x443   : > { %v8747_v62 = vmul.f32 %v6988_v34, %v10654_v54  ;;  %v6220_v34 = vpack.c.bf16 %v6617_v48, %v6616_v6  ;;  %v6226_v54 = vpack.c.bf16 %v6622_v5, %v6621_v44 }
 0x445   : > { %10655 = vst [vmem:[#allocation32_spill] sm:$0xff] %v8747_v62  ;;  %5604 = vmatprep.mubr.f32.mxu0 %v8747_v62 }
 0x446   : > { %5605 = vmatmul.mubr.f32.vlgmr.msra.gmra.mrb[32].mxu0 %v8750_v17 }
 0x447   : > { %6201 = vmatpush3.bf16.xpose.msk.msra.mxu0 %vm8287_vm1, %v10658_v27  ;;  %v6626_v27 = vunpack.i.l.bf16 %v6625_v0 }
 0x448   : > { %6204 = vmatprep.subr.msk.bf16.mxu0 %vm8287_vm1, %v6202_v35 }
 0x449   : > { %v6232_v12 = vpack.c.bf16 %v6627_v26, %v6626_v27 }
 0x44f   : > { %6207 = vmatpush3.bf16.xpose.msk.msra.mxu0 %vm8287_vm1, %v6202_v35 }
 0x450   : > { %6210 = vmatprep.subr.msk.bf16.mxu0 %vm8287_vm1, %v6208_v39 }
 0x457   : > { %6213 = vmatpush3.bf16.xpose.msk.msra.mxu0 %vm8287_vm1, %v6208_v39 }
 0x458   : > { %6216 = vmatprep.subr.msk.bf16.mxu0 %vm8287_vm1, %v6214_v45 }
 0x45f   : > { %6219 = vmatpush3.bf16.xpose.msk.msra.mxu0 %vm8287_vm1, %v6214_v45 }
 0x460   : > { %6222 = vmatprep.subr.msk.bf16.mxu0 %vm8287_vm1, %v6220_v34 }
 0x467   : > { %6225 = vmatpush3.bf16.xpose.msk.msra.mxu0 %vm8287_vm1, %v6220_v34 }
 0x468   : > { %v1545_v35 = vpop.xlane.xlu1 %1544  ;;  %6228 = vmatprep.subr.msk.bf16.mxu0 %vm8287_vm1, %v6226_v54 }
 0x469   : > { %6989 = vrcp.f32 %v1545_v35 }
 0x46c   : > { %v1551_v1 = vpop.xlane.xlu1 %1550  ;;  %v1547_v32 = vpop.xlane.xlu0 %1546 }
 0x46d   : > { %6991 = vrcp.f32 %v1547_v32 }
 0x46e   : > { %6993 = vrcp.f32 %v1551_v1 }
 0x46f   : > { %6231 = vmatpush3.bf16.xpose.msk.msra.mxu0 %vm8287_vm1, %v6226_v54 }
 0x470   : > { %v1555_v39 = vpop.xlane.xlu1 %1554  ;;  %6234 = vmatprep.subr.msk.bf16.mxu0 %vm8287_vm1, %v6232_v12  ;;  %v1549_v29 = vpop.xlane.xlu0 %1548 }
 0x471   : > { %6995 = vrcp.f32 %v1549_v29 }
 0x472   : > { %6997 = vrcp.f32 %v1555_v39 }
 0x473   : > { %v6990_v33 = vpop.eup %6989 }
 0x474   : > { %v1553_v41 = vpop.xlane.xlu1 %1552  ;;  %v8784_v45 = vmul.f32 %v6990_v33, %v8609_v30  ;;  %v1561_v48 = vpop.xlane.xlu0 %1560 }
 0x475   : > { %6999 = vrcp.f32 %v1553_v41 }
 0x476   : > { %10662 = vst [vmem:[#allocation39_spill] sm:$0xff] %v8784_v45  ;;  %5607 = vmatprep.mubr.f32.mxu0 %v8784_v45  ;;  %7001 = vrcp.f32 %v1561_v48 }
 0x477   : > { %v6992_v6 = vpop.eup %6991  ;;  %6237 = vmatpush3.bf16.xpose.msk.msra.mxu0 %vm8287_vm1, %v6232_v12 }
 0x478   : > { %v1559_v34 = vpop.xlane.xlu1 %1558  ;;  %v1567_v53 = vpop.xlane.xlu0 %1566  ;;  %v8790_v5 = vmul.f32 %v6992_v6, %v8616_v20 }
 0x479   : > { %v6994_v44 = vpop.eup %6993  ;;  %7003 = vrcp.f32 %v1559_v34 }
 0x47a   : > { %10663 = vst [vmem:[#allocation34_spill] sm:$0xff] %v8790_v5  ;;  %5608 = vmatmul.mubr.f32.gmra.mrb[34].mxu0 %v8790_v5  ;;  %v8797_v27 = vmul.f32 %v6994_v44, %v8614_v18 }
 0x47b   : > { %v6996_v54 = vpop.eup %6995 }
 0x47c   : > { %v1557_v30 = vpop.xlane.xlu1 %1556  ;;  %v1565_v0 = vpop.xlane.xlu0 %1564  ;;  %v8794_v35 = vmul.f32 %v6996_v54, %v8623_v59  ;;  %10665 = vst [vmem:[#allocation46_spill] sm:$0xff] %v8797_v27 }
 0x47d   : > { %v6998_v26 = vpop.eup %6997  ;;  %7005 = vrcp.f32 %v1557_v30 }
 0x47e   : > { %10664 = vst [vmem:[#allocation33_spill] sm:$0xff] %v8794_v35  ;;  %5610 = vmatprep.mubr.f32.mxu0 %v8794_v35  ;;  %7007 = vrcp.f32 %v1565_v0  ;;  %v8806_v29 = vmul.f32 %v6998_v26, %v8621_v4 }
 0x47f   : > { %v7000_v1 = vpop.eup %6999  ;;  %5611 = vmatmul.mubr.f32.gmra.mrb[36].mxu0 %v8797_v27 }
 0x480   : > { %v1563_v20 = vpop.xlane.xlu1 %1562  ;;  %v8802_v32 = vmul.f32 %v7000_v1, %v8628_v14  ;;  %v6630_v12 = vpop.permute.xlu0 %6629  ;;  %10667 = vst [vmem:[#allocation44_spill] sm:$0xff] %v8806_v29 }
 0x481   : > { %7009 = vrcp.f32 %v1563_v20  ;;  %v6632_v39 = vunpack.i.h.bf16 %v6630_v12  ;;  %v6631_v59 = vunpack.i.l.bf16 %v6630_v12  ;;  %v7002_v48 = vpop.eup %7001 }
 0x482   : > { %10666 = vst [vmem:[#allocation45_spill] sm:$0xff] %v8802_v32  ;;  %5613 = vmatprep.mubr.f32.mxu0 %v8802_v32  ;;  %7011 = vrcp.f32 %v1567_v53  ;;  %v8821_v30 = vmul.f32 %v7002_v48, %v8630_v36 }
 0x483   : > { %v6238_v18 = vpack.c.bf16 %v6632_v39, %v6631_v59  ;;  %5614 = vmatmul.mubr.f32.gmra.mrb[38].mxu0 %v8806_v29  ;;  %v7004_v14 = vpop.eup %7003 }
 0x484   : > { %v1571_v33 = vpop.xlane.xlu1 %1570  ;;  %v1862_v41 = vpop.permute.xlu0 %1861  ;;  %v8817_v54 = vmul.f32 %v7004_v14, %v8635_v49  ;;  %10670 = vst [vmem:[#allocation47_spill] sm:$0xff] %v8821_v30 }
 0x485   : > { %6240 = vmatprep.subr.msk.bf16.mxu0 %vm8287_vm1, %v6238_v18  ;;  %7013 = vrcp.f32 %v1571_v33 }
 0x486   : > { %6243 = vmatpush3.bf16.xpose.msk.msra.mxu0 %vm8287_vm1, %v6238_v18  ;;  %10669 = vst [vmem:[#allocation43_spill] sm:$0xff] %v8817_v54 }
 0x487   : > { %v7006_v6 = vpop.eup %7005 }
 0x488   : > { %v1569_v34 = vpop.xlane.xlu1 %1568  ;;  %v1866_v4 = vpop.permute.xlu0 %1865  ;;  %v8814_v44 = vmul.f32 %v7006_v6, %v8641_v46 }
 0x489   : > { %7015 = vrcp.f32 %v1569_v34  ;;  %v7008_v53 = vpop.eup %7007 }
 0x48a   : > { %10668 = vst [vmem:[#allocation41_spill] sm:$0xff] %v8814_v44  ;;  %5616 = vmatprep.mubr.f32.mxu0 %v8814_v44  ;;  %v8829_v49 = vmul.f32 %v7008_v53, %v8643_v22 }
 0x48b   : > { %v7010_v0 = vpop.eup %7009  ;;  %5617 = vmatmul.mubr.f32.gmra.mrb[40].mxu0 %v8817_v54 }
 0x48c   : > { %v1864_v26 = vpop.permute.xlu1 %1863  ;;  %5619 = vmatprep.mubr.f32.mxu0 %v8821_v30  ;;  %v1870_v1 = vpop.permute.xlu0 %1869  ;;  %v8826_v20 = vmul.f32 %v7010_v0, %v8647_v25  ;;  %10672 = vst [vmem:[#allocation49_spill] sm:$0xff] %v8829_v49 }
 0x48d   : > { %v7012_v46 = vpop.eup %7011 }
 0x48e   : > { %10671 = vst [vmem:[#allocation48_spill] sm:$0xff] %v8826_v20  ;;  %v8834_v59 = vmul.f32 %v7012_v46, %v8637_v21 }
 0x48f   : > { %5620 = vmatmul.mubr.f32.gmra.mrb[42].mxu0 %v8826_v20  ;;  %v7014_v39 = vpop.eup %7013 }
 0x490   : > { %v1868_v12 = vpop.permute.xlu1 %1867  ;;  %5622 = vmatprep.mubr.f32.mxu0 %v8829_v49  ;;  %v1874_v36 = vpop.permute.xlu0 %1873  ;;  %10673 = vst [vmem:[#allocation50_spill] sm:$0xff] %v8834_v59  ;;  %v8842_v22 = vmul.f32 %v7014_v39, %v8650_v57  ;;  %v10695_v49 = vld [vmem:[#allocation36_spill] sm:$0xff] }
 0x492   : > { %10675 = vst [vmem:[#allocation52_spill] sm:$0xff] %v8842_v22 }
 0x493   : > { %v7016_v18 = vpop.eup %7015  ;;  %5623 = vmatmul.mubr.f32.gmra.mrb[44].mxu0 %v8834_v59 }
 0x494   : > { %v1872_v33 = vpop.permute.xlu1 %1871  ;;  %v8838_v25 = vmul.f32 %v7016_v18, %v8653_v61  ;;  %v1878_v48 = vpop.permute.xlu0 %1877 }
 0x496   : > { %10674 = vst [vmem:[#allocation51_spill] sm:$0xff] %v8838_v25  ;;  %5625 = vmatprep.mubr.f32.mxu0 %v8838_v25 }
 0x497   : > { %5626 = vmatmul.mubr.f32.gmra.mrb[46].mxu0 %v8842_v22 }
 0x498   : > { %v1876_v14 = vpop.permute.xlu1 %1875  ;;  %5660 = vmatprep.mubr.msk.f32.mxu0 %vm1218_vm0, %v1862_v41  ;;  %v1882_v21 = vpop.permute.xlu0 %1881 }
 0x49b   : > { %5661 = vmatmul.mubr.msk.f32.vlgmr.msra.gmra.mrb[48].mxu0 %vm1218_vm0, %v1864_v26 }
 0x49c   : > { %v1880_v6 = vpop.permute.xlu1 %1879  ;;  %v1886_v34 = vpop.permute.xlu0 %1885  ;;  %5663 = vmatprep.mubr.msk.f32.mxu0 %vm1218_vm0, %v1866_v4 }
 0x49f   : > { %5664 = vmatmul.mubr.msk.f32.gmra.mrb[50].mxu0 %vm1218_vm0, %v1868_v12 }
 0x4a0   : > { %v1884_v61 = vpop.permute.xlu1 %1883  ;;  %v1890_v53 = vpop.permute.xlu0 %1889  ;;  %5666 = vmatprep.mubr.msk.f32.mxu0 %vm1218_vm0, %v1870_v1 }
 0x4a3   : > { %5667 = vmatmul.mubr.msk.f32.gmra.mrb[52].mxu0 %vm1218_vm0, %v1872_v33 }
 0x4a4   : > { %v1888_v57 = vpop.permute.xlu1 %1887  ;;  %v6635_v0 = vpop.permute.xlu0 %6634  ;;  %5669 = vmatprep.mubr.msk.f32.mxu0 %vm1218_vm0, %v1874_v36 }
 0x4a5   : > { %v6637_v41 = vunpack.i.h.bf16 %v6635_v0  ;;  %v6636_v46 = vunpack.i.l.bf16 %v6635_v0 }
 0x4a7   : > { %5670 = vmatmul.mubr.msk.f32.gmra.mrb[54].mxu0 %vm1218_vm0, %v1876_v14  ;;  %v6244_v39 = vpack.c.bf16 %v6637_v41, %v6636_v46 }
 0x4a8   : > { %v1892_v26 = vpop.permute.xlu1 %1891  ;;  %5672 = vmatprep.mubr.msk.f32.mxu0 %vm1218_vm0, %v1878_v48  ;;  %v6650_v4 = vpop.permute.xlu0 %6649 }
 0x4a9   : > { %6245 = vmatprep.subr.bf16.mxu1 %v6244_v39  ;;  %v6652_v33 = vunpack.i.h.bf16 %v6650_v4  ;;  %v6651_v36 = vunpack.i.l.bf16 %v6650_v4 }
 0x4aa   : > { %6247 = vmatpush3.bf16.msra.mxu1 %v6244_v39 }
 0x4ab   : > { %5673 = vmatmul.mubr.msk.f32.gmra.mrb[56].mxu0 %vm1218_vm0, %v1880_v6  ;;  %v6256_v59 = vpack.c.bf16 %v6652_v33, %v6651_v36 }
 0x4ac   : > { %v6640_v1 = vpop.permute.xlu1 %6639  ;;  %5675 = vmatprep.mubr.msk.f32.mxu0 %vm1218_vm0, %v1882_v21  ;;  %v6655_v48 = vpop.permute.xlu0 %6654 }
 0x4ad   : > { %v6642_v12 = vunpack.i.h.bf16 %v6640_v1  ;;  %v6641_v18 = vunpack.i.l.bf16 %v6640_v1  ;;  %v6657_v46 = vunpack.i.h.bf16 %v6655_v48  ;;  %v6656_v6 = vunpack.i.l.bf16 %v6655_v48 }
 0x4af   : > { %v6248_v22 = vpack.c.bf16 %v6642_v12, %v6641_v18  ;;  %5676 = vmatmul.mubr.msk.f32.gmra.mrb[58].mxu0 %vm1218_vm0, %v1884_v61  ;;  %v6260_v1 = vpack.c.bf16 %v6657_v46, %v6656_v6 }
 0x4b0   : > { %v6645_v14 = vpop.permute.xlu1 %6644  ;;  %5678 = vmatprep.mubr.msk.f32.mxu0 %vm1218_vm0, %v1886_v34 }
 0x4b1   : > { %v6647_v0 = vunpack.i.h.bf16 %v6645_v14  ;;  %v6646_v41 = vunpack.i.l.bf16 %v6645_v14  ;;  %6249 = vmatprep.subr.bf16.mxu1 %v6248_v22  ;;  %v6675_v14 = vpop.permute.xlu0 %6674 }
 0x4b2   : > { %6251 = vmatpush3.bf16.msra.mxu1 %v6248_v22  ;;  %v6676_v48 = vunpack.i.l.bf16 %v6675_v14 }
 0x4b3   : > { %v6252_v39 = vpack.c.bf16 %v6647_v0, %v6646_v41  ;;  %5679 = vmatmul.mubr.msk.f32.gmra.mrb[60].mxu0 %vm1218_vm0, %v1888_v57  ;;  %v6677_v41 = vunpack.i.h.bf16 %v6675_v14 }
 0x4b4   : > { %v6660_v21 = vpop.permute.xlu1 %6659  ;;  %5681 = vmatprep.mubr.msk.f32.mxu0 %vm1218_vm0, %v1890_v53 }
 0x4b5   : > { %6253 = vmatprep.subr.bf16.mxu1 %v6252_v39  ;;  %v6662_v61 = vunpack.i.h.bf16 %v6660_v21  ;;  %v6661_v4 = vunpack.i.l.bf16 %v6660_v21  ;;  %v8953_v30 = vpop.permute.xlu0 %6684 }
 0x4b6   : > { %6255 = vmatpush3.bf16.msra.mxu1 %v6252_v39 }
 0x4b7   : > { %6257 = vmatprep.subr.bf16.mxu1 %v6256_v59  ;;  %5682 = vmatmul.mubr.msk.f32.gmra.mrb[62].mxu0 %vm1218_vm0, %v1892_v26  ;;  %v6264_v18 = vpack.c.bf16 %v6662_v61, %v6661_v4  ;;  %v8861_v26 = vpack.c.bf16 %v6677_v41, %v6676_v48 }
 0x4b8   : > { %v6665_v34 = vpop.permute.xlu1 %6664 }
 0x4b9   : > { %v6667_v22 = vunpack.i.h.bf16 %v6665_v34  ;;  %v6666_v12 = vunpack.i.l.bf16 %v6665_v34  ;;  %10676 = vst [vmem:[#allocation53_spill] sm:$0xff] %v8861_v26 }
 0x4ba   : > { %6259 = vmatpush3.bf16.msra.mxu1 %v6256_v59 }
 0x4bb   : > { %6261 = vmatprep.subr.bf16.mxu1 %v6260_v1  ;;  %v6268_v53 = vpack.c.bf16 %v6667_v22, %v6666_v12 }
 0x4bc   : > { %v6670_v33 = vpop.permute.xlu1 %6669 }
 0x4bd   : > { %v6672_v57 = vunpack.i.h.bf16 %v6670_v33  ;;  %v6671_v36 = vunpack.i.l.bf16 %v6670_v33 }
 0x4be   : > { %6263 = vmatpush3.bf16.msra.mxu1 %v6260_v1 }
 0x4bf   : > { %6265 = vmatprep.subr.bf16.mxu1 %v6264_v18  ;;  %v6272_v0 = vpack.c.bf16 %v6672_v57, %v6671_v36 }
 0x4c2   : > { %6267 = vmatpush3.bf16.msra.mxu1 %v6264_v18 }
 0x4c3   : > { %6269 = vmatprep.subr.bf16.mxu1 %v6268_v53 }
 0x4c6   : > { %6271 = vmatpush3.bf16.msra.mxu1 %v6268_v53 }
 0x4c7   : > { %6273 = vmatprep.subr.bf16.mxu1 %v6272_v0 }
 0x4ca   : > { %6275 = vmatpush3.bf16.msra.mxu1 %v6272_v0  ;;  %v10693_v0 = vld [vmem:[#allocation42_spill] sm:$0xff] }
 0x4cb   : > { %6278 = vmatprep.subr.msk.bf16.mxu1 %vm8287_vm1, %v8861_v26  ;;  %10696 = vst [vmem:[#allocation42_spill] sm:$0xff] %v8953_v30 }
 0x519   : > { %v8866_v59 = vpop.f32.mrb[32].mxu0 }
 0x51a   : > { %10677 = vst [vmem:[#allocation54_spill] sm:$0xff] %v8866_v59  ;;  %v8868_v46 = vpop.f32.mrb[33].mxu0 }
 0x51b   : > { %10678 = vst [vmem:[#allocation55_spill] sm:$0xff] %v8868_v46 }
 0x54d   : > { %v8870_v6 = vpop.f32.mrb[34].mxu0 }
 0x54e   : > { %10679 = vst [vmem:[#allocation56_spill] sm:$0xff] %v8870_v6  ;;  %v8872_v39 = vpop.f32.mrb[35].mxu0 }
 0x54f   : > { %10680 = vst [vmem:[#allocation57_spill] sm:$0xff] %v8872_v39 }
 0x552   : > { %v8874_v21 = vpop.f32.mrb[36].mxu0 }
 0x553   : > { %10681 = vst [vmem:[#allocation58_spill] sm:$0xff] %v8874_v21  ;;  %v8876_v61 = vpop.f32.mrb[37].mxu0  ;;  %v10694_v21 = vld [vmem:[#allocation35_spill] sm:$0xff] }
 0x554   : > { %10682 = vst [vmem:[#allocation59_spill] sm:$0xff] %v8876_v61 }
 0x556   : > { %v8878_v4 = vpop.f32.mrb[38].mxu0 }
 0x557   : > { %10683 = vst [vmem:[#allocation60_spill] sm:$0xff] %v8878_v4  ;;  %v8880_v1 = vpop.f32.mrb[39].mxu0 }
 0x558   : > { %10684 = vst [vmem:[#allocation61_spill] sm:$0xff] %v8880_v1 }
 0x55e   : > { %v8882_v34 = vpop.f32.mrb[40].mxu0 }
 0x55f   : > { %10685 = vst [vmem:[#allocation62_spill] sm:$0xff] %v8882_v34  ;;  %v8884_v22 = vpop.f32.mrb[41].mxu0 }
 0x560   : > { %10686 = vst [vmem:[#allocation63_spill] sm:$0xff] %v8884_v22 }
 0x562   : > { %v8886_v12 = vpop.f32.mrb[42].mxu0 }
 0x563   : > { %10687 = vst [vmem:[#allocation64_spill] sm:$0xff] %v8886_v12  ;;  %v8888_v18 = vpop.f32.mrb[43].mxu0 }
 0x564   : > { %10688 = vst [vmem:[#allocation65_spill] sm:$0xff] %v8888_v18 }
 0x566   : > { %v8890_v33 = vpop.f32.mrb[44].mxu0 }
 0x567   : > { %10689 = vst [vmem:[#allocation66_spill] sm:$0xff] %v8890_v33  ;;  %v8892_v57 = vpop.f32.mrb[45].mxu0 }
 0x568   : > { %10690 = vst [vmem:[#allocation67_spill] sm:$0xff] %v8892_v57 }
 0x56a   : > { %v8894_v36 = vpop.f32.mrb[46].mxu0 }
 0x56b   : > { %10691 = vst [vmem:[#allocation68_spill] sm:$0xff] %v8894_v36  ;;  %v8896_v53 = vpop.f32.mrb[47].mxu0 }
 0x56c   : > { %10692 = vst [vmem:[#allocation69_spill] sm:$0xff] %v8896_v53 }
 0x56e   : > { %v5662_v14 = vpop.f32.mrb[48].mxu0 }
 0x56f   : > { %v2061_v41 = vadd.f32 %v5662_v14, %v10693_v0  ;;  %v2055_v48 = vpop.f32.mrb[49].mxu0 }
 0x570   : > { %v2056_v34 = vadd.f32 %v10693_v0, %v2055_v48 }
 0x571   : > { %2136 = vmax.xlane.f32.xlu1 %v2061_v41 }
 0x572   : > { %v5665_v22 = vpop.f32.mrb[50].mxu0  ;;  %2134 = vmax.xlane.f32.xlu0 %v2056_v34 }
 0x573   : > { %v8901_v12 = vadd.f32 %v5665_v22, %v10693_v0  ;;  %v2065_v18 = vpop.f32.mrb[51].mxu0 }
 0x574   : > { %v8905_v36 = vadd.f32 %v10693_v0, %v2065_v18 }
 0x576   : > { %v5668_v33 = vpop.f32.mrb[52].mxu0  ;;  %2140 = vmax.xlane.f32.xlu0 %v8901_v12 }
 0x577   : > { %v2075_v57 = vpop.f32.mrb[53].mxu0 }
 0x578   : > { %v8909_v48 = vadd.f32 %v10693_v0, %v2075_v57 }
 0x57a   : > { %v5671_v53 = vpop.f32.mrb[54].mxu0  ;;  %2138 = vmax.xlane.f32.xlu0 %v8905_v36 }
 0x57b   : > { %v2085_v14 = vpop.f32.mrb[55].mxu0 }
 0x57c   : > { %v8913_v1 = vadd.f32 %v10693_v0, %v2085_v14 }
 0x57e   : > { %v5674_v4 = vpop.f32.mrb[56].mxu0  ;;  %2142 = vmax.xlane.f32.xlu0 %v8909_v48 }
 0x57f   : > { %v2095_v22 = vpop.f32.mrb[57].mxu0  ;;  %v2101_v54 = vadd.f32 %v5674_v4, %v10693_v0 }
 0x580   : > { %v8919_v6 = vadd.f32 %v10693_v0, %v2095_v22  ;;  %v2081_v22 = vadd.f32 %v5668_v33, %v10693_v0 }
 0x582   : > { %6689 = vrot.lane.b32.xlu1 %v10694_v21, %s7806_s20  ;;  %v5677_v61 = vpop.f32.mrb[58].mxu0  ;;  %2146 = vmax.xlane.f32.xlu0 %v8913_v1 }
 0x583   : > { %v2105_v18 = vpop.f32.mrb[59].mxu0 }
 0x584   : > { %v8923_v46 = vadd.f32 %v10693_v0, %v2105_v18  ;;  %v2091_v18 = vadd.f32 %v5671_v53, %v10693_v0  ;;  %v8951_v53 = vpop.permute.xlu1 %6679 }
 0x586   : > { %v5680_v39 = vpop.f32.mrb[60].mxu0  ;;  %2150 = vmax.xlane.f32.xlu0 %v8919_v6 }
 0x587   : > { %v2115_v57 = vpop.f32.mrb[61].mxu0 }
 0x588   : > { %v8927_v25 = vadd.f32 %v10693_v0, %v2115_v57  ;;  %v8940_v57 = vadd.f32 %v5677_v61, %v10693_v0 }
 0x58a   : > { %v5683_v59 = vpop.f32.mrb[62].mxu0  ;;  %2154 = vmax.xlane.f32.xlu0 %v8923_v46 }
 0x58b   : > { %v2125_v14 = vpop.f32.mrb[63].mxu0  ;;  %v8948_v33 = vadd.f32 %v5683_v59, %v10693_v0 }
 0x58c   : > { %v8931_v20 = vadd.f32 %v10693_v0, %v2125_v14  ;;  %v8944_v14 = vadd.f32 %v5680_v39, %v10693_v0  ;;  %v10697_v0 = vld [vmem:[#allocation37_spill] sm:$0xff] }
 0x58e   : > { %2158 = vmax.xlane.f32.xlu0 %v8927_v25 }
 0x592   : > { %2162 = vmax.xlane.f32.xlu0 %v8931_v20 }
 0x5a6   : > { %2144 = vmax.xlane.f32.xlu1 %v2081_v22 }
 0x5a8   : > { %6694 = vrot.lane.b32.xlu0 %v10695_v49, %s7806_s20 }
 0x5aa   : > { %2148 = vmax.xlane.f32.xlu1 %v2091_v18 }
 0x5ae   : > { %2152 = vmax.xlane.f32.xlu1 %v2101_v54 }
 0x5b2   : > { %2156 = vmax.xlane.f32.xlu1 %v8940_v57 }
 0x5b6   : > { %2160 = vmax.xlane.f32.xlu1 %v8944_v14 }
 0x5ba   : > { %2164 = vmax.xlane.f32.xlu1 %v8948_v33 }
 0x5fe   : > { %v2137_v4 = vpop.xlane.xlu1 %2136 }
 0x5ff   : > { %v2167_v29 = vsub.f32 %v2061_v41, %v2137_v4  ;;  %v2135_v61 = vpop.xlane.xlu0 %2134  ;;  %v10698_v41 = vld [vmem:[#allocation38_spill] sm:$0xff] }
 0x600   : > { %v2166_v44 = vsub.f32 %v2056_v34, %v2135_v61 }
 0x601   : > { %v2184_v27 = vmul.f32 1.442695, %v2167_v29 }
 0x602   : > { %v2182_v32 = vmul.f32 1.442695, %v2166_v44 }
 0x603   : > { %7017 = vpow2.f32 %v2184_v27  ;;  %v2141_v59 = vpop.xlane.xlu0 %2140  ;;  %v8965_v27 = vpop.permute.xlu1 %6689 }
 0x604   : > { %7019 = vpow2.f32 %v2182_v32  ;;  %10699 = vst [vmem:[#allocation35_spill] sm:$0xff] %v8965_v27  ;;  %v2169_v34 = vsub.f32 %v8901_v12, %v2141_v59 }
 0x606   : > { %v2188_v17 = vmul.f32 1.442695, %v2169_v34 }
 0x607   : > { %v2139_v35 = vpop.xlane.xlu0 %2138 }
 0x608   : > { %v2168_v32 = vsub.f32 %v8905_v36, %v2139_v35 }
 0x60a   : > { %v2186_v62 = vmul.f32 1.442695, %v2168_v32 }
 0x60b   : > { %v2143_v29 = vpop.xlane.xlu0 %2142 }
 0x60c   : > { %7021 = vpow2.f32 %v2186_v62 }
 0x60d   : > { %v8955_v39 = vpop.eup %7017  ;;  %7023 = vpow2.f32 %v2188_v17 }
 0x60e   : > { %v8957_v5 = vpop.eup %7019  ;;  %2216 = vadd.xlane.f32.xlu0 %v8955_v39 }
 0x60f   : > { %2214 = vadd.xlane.f32.xlu1 %v8957_v5  ;;  %v2147_v44 = vpop.xlane.xlu0 %2146 }
 0x613   : > { %v2151_v4 = vpop.xlane.xlu0 %2150 }
 0x614   : > { %v2174_v62 = vsub.f32 %v8919_v6, %v2151_v4 }
 0x617   : > { %v2155_v26 = vpop.xlane.xlu0 %2154 }
 0x618   : > { %v2176_v12 = vsub.f32 %v8923_v46, %v2155_v26  ;;  %v2198_v46 = vmul.f32 1.442695, %v2174_v62 }
 0x620   : > { %6699 = vrot.lane.b32.xlu1 %v10697_v0, %s7806_s20  ;;  %v2170_v0 = vsub.f32 %v8909_v48, %v2143_v29  ;;  %v8973_v48 = vpop.eup %7021 }
 0x622   : > { %v2190_v36 = vmul.f32 1.442695, %v2170_v0 }
 0x624   : > { %6704 = vrot.lane.b32.xlu0 %v10698_v41, %s7806_s20  ;;  %v2172_v41 = vsub.f32 %v8913_v1, %v2147_v44  ;;  %v8975_v1 = vpop.eup %7023 }
 0x626   : > { %v2194_v59 = vmul.f32 1.442695, %v2172_v41 }
 0x633   : > { %v2145_v61 = vpop.xlane.xlu1 %2144 }
 0x634   : > { %v2171_v45 = vsub.f32 %v2081_v22, %v2145_v61 }
 0x636   : > { %v2192_v49 = vmul.f32 1.442695, %v2171_v45  ;;  %v2202_v45 = vmul.f32 1.442695, %v2176_v12 }
 0x637   : > { %v2149_v30 = vpop.xlane.xlu1 %2148 }
 0x638   : > { %v2173_v52 = vsub.f32 %v2091_v18, %v2149_v30  ;;  %7025 = vpow2.f32 %v2192_v49  ;;  %v2159_v30 = vpop.xlane.xlu0 %2158 }
 0x639   : > { %v2178_v49 = vsub.f32 %v8927_v25, %v2159_v30 }
 0x63a   : > { %v2196_v27 = vmul.f32 1.442695, %v2173_v52 }
 0x63b   : > { %v2153_v35 = vpop.xlane.xlu1 %2152  ;;  %v2206_v29 = vmul.f32 1.442695, %v2178_v49  ;;  %v6682_v49 = vunpack.i.h.bf16 %v8951_v53 }
 0x63c   : > { %7027 = vpow2.f32 %v2196_v27  ;;  %v2175_v22 = vsub.f32 %v2101_v54, %v2153_v35  ;;  %v2163_v27 = vpop.xlane.xlu0 %2162 }
 0x63d   : > { %7029 = vpow2.f32 %v2190_v36 }
 0x63e   : > { %7031 = vpow2.f32 %v2194_v59  ;;  %v2200_v17 = vmul.f32 1.442695, %v2175_v22 }
 0x63f   : > { %v2157_v32 = vpop.xlane.xlu1 %2156  ;;  %7033 = vpow2.f32 %v2202_v45 }
 0x640   : > { %7035 = vpow2.f32 %v2200_v17  ;;  %v2177_v6 = vsub.f32 %v8940_v57, %v2157_v32  ;;  %v2180_v57 = vsub.f32 %v8931_v20, %v2163_v27  ;;  %v6695_v45 = vpop.permute.xlu0 %6694 }
 0x641   : > { %v6696_v27 = vunpack.i.l.bf16 %v6695_v45 }
 0x642   : > { %v8981_v26 = vpop.eup %7025  ;;  %v2204_v25 = vmul.f32 1.442695, %v2177_v6 }
 0x643   : > { %v2161_v52 = vpop.xlane.xlu1 %2160  ;;  %2218 = vadd.xlane.f32.xlu0 %v8973_v48 }
 0x644   : > { %v2179_v54 = vsub.f32 %v8944_v14, %v2161_v52  ;;  %2220 = vadd.xlane.f32.xlu1 %v8975_v1 }
 0x646   : > { %v8984_v18 = vpop.eup %7027  ;;  %v2208_v0 = vmul.f32 1.442695, %v2179_v54  ;;  %v6681_v54 = vunpack.i.l.bf16 %v8951_v53 }
 0x647   : > { %v2165_v41 = vpop.xlane.xlu1 %2164  ;;  %2224 = vadd.xlane.f32.xlu0 %v8981_v26  ;;  %v8989_v44 = vpop.eup %7029 }
 0x648   : > { %7037 = vpow2.f32 %v2208_v0  ;;  %2228 = vadd.xlane.f32.xlu1 %v8984_v18  ;;  %v2181_v14 = vsub.f32 %v8948_v33, %v2165_v41  ;;  %v8991_v34 = vpop.eup %7031  ;;  %v2210_v33 = vmul.f32 1.442695, %v2180_v57 }
 0x649   : > { %7039 = vpow2.f32 %v2198_v46  ;;  %v8996_v61 = vpop.eup %7033  ;;  %v6282_v46 = vpack.c.bf16 %v6682_v49, %v6681_v54 }
 0x64a   : > { %7041 = vpow2.f32 %v2206_v29  ;;  %v2212_v4 = vmul.f32 1.442695, %v2181_v14  ;;  %v8998_v35 = vpop.eup %7035  ;;  %v6697_v14 = vunpack.i.h.bf16 %v6695_v45 }
 0x64b   : > { %2222 = vadd.xlane.f32.xlu0 %v8989_v44  ;;  %7043 = vpow2.f32 %v2204_v25 }
 0x64c   : > { %2226 = vadd.xlane.f32.xlu1 %v8991_v34  ;;  %7045 = vpow2.f32 %v2212_v4  ;;  %v6300_v57 = vpack.c.bf16 %v6697_v14, %v6696_v27 }
 0x64d   : > { %7047 = vpow2.f32 %v2210_v33 }
 0x64f   : > { %2234 = vadd.xlane.f32.xlu0 %v8996_v61 }
 0x650   : > { %2232 = vadd.xlane.f32.xlu1 %v8998_v35 }
 0x652   : > { %v9002_v36 = vpop.eup %7037 }
 0x653   : > { %v9004_v12 = vpop.eup %7039  ;;  %2240 = vadd.xlane.f32.xlu0 %v9002_v36 }
 0x654   : > { %2230 = vadd.xlane.f32.xlu1 %v9004_v12  ;;  %v9008_v20 = vpop.eup %7041 }
 0x655   : > { %v9010_v59 = vpop.eup %7043 }
 0x656   : > { %v9014_v22 = vpop.eup %7045 }
 0x657   : > { %2238 = vadd.xlane.f32.xlu0 %v9008_v20  ;;  %v9017_v32 = vpop.eup %7047 }
 0x658   : > { %2236 = vadd.xlane.f32.xlu1 %v9010_v59 }
 0x65c   : > { %2244 = vadd.xlane.f32.xlu1 %v9014_v22 }
 0x660   : > { %2242 = vadd.xlane.f32.xlu1 %v9017_v32 }
 0x66d   : > { %6709 = vrot.lane.b32.xlu0 %v8384_v2, %s7806_s20 }
 0x671   : > { %2600 = vrot.lane.b32.xlu0 %v8317_v13, %s7806_s20  ;;  %2602 = vrot.lane.b32.xlu1 %v8461_v10, %s7806_s20 }
 0x675   : > { %2604 = vrot.lane.b32.xlu0 %v8457_v56, %s7806_s20  ;;  %2606 = vrot.lane.b32.xlu1 %v8469_v23, %s7806_s20 }
 0x679   : > { %2608 = vrot.lane.b32.xlu0 %v8479_v8, %s7806_s20  ;;  %2610 = vrot.lane.b32.xlu1 %v8339_v28, %s7806_s20 }
 0x67d   : > { %2612 = vrot.lane.b32.xlu0 %v8354_v40, %s7806_s20  ;;  %2614 = vrot.lane.b32.xlu1 %v8350_v37, %s7806_s20 }
 0x681   : > { %2616 = vrot.lane.b32.xlu0 %v8368_v50, %s7806_s20  ;;  %2618 = vrot.lane.b32.xlu1 %v8364_v47, %s7806_s20 }
 0x685   : > { %2620 = vrot.lane.b32.xlu0 %v8378_v63, %s7806_s20  ;;  %2622 = vrot.lane.b32.xlu1 %v8374_v58, %s7806_s20 }
 0x689   : > { %2624 = vrot.lane.b32.xlu0 %v8390_v7, %s7806_s20  ;;  %2626 = vrot.lane.b32.xlu1 %v8387_v3, %s7806_s20 }
 0x68d   : > { %2628 = vrot.lane.b32.xlu0 %v8396_v11, %s7806_s20  ;;  %2630 = vrot.lane.b32.xlu1 %v8393_v9, %s7806_s20 }
 0x691   : > { %6714 = vrot.lane.b32.xlu0 %v8690_v43, %s7806_s20  ;;  %6719 = vrot.lane.b32.xlu1 %v8696_v42, %s7806_s20 }
 0x695   : > { %6729 = vrot.lane.b32.xlu0 %v8702_v15, %s7806_s20  ;;  %6724 = vrot.lane.b32.xlu1 %v8708_v16, %s7806_s20 }
 0x699   : > { %6734 = vrot.lane.b32.xlu0 %v8714_v19, %s7806_s20  ;;  %6739 = vrot.lane.b32.xlu1 %v8720_v24, %s7806_s20 }
 0x69b   : > { %v2217_v62 = vpop.xlane.xlu0 %2216 }
 0x69c   : > { %7049 = vrcp.f32 %v2217_v62  ;;  %v2215_v30 = vpop.xlane.xlu1 %2214 }
 0x69d   : > { %7051 = vrcp.f32 %v2215_v30  ;;  %6754 = vrot.lane.b32.xlu0 %v10648_v38, %s7807_s25  ;;  %6744 = vrot.lane.b32.xlu1 %v8728_v31, %s7806_s20 }
 0x6a0   : > { %v6700_v4 = vpop.permute.xlu1 %6699 }
 0x6a1   : > { %6764 = vrot.lane.b32.xlu0 %v10651_v55, %s7807_s25  ;;  %6749 = vrot.lane.b32.xlu1 %v8736_v51, %s7806_s20  ;;  %v6702_v33 = vunpack.i.h.bf16 %v6700_v4  ;;  %v6701_v62 = vunpack.i.l.bf16 %v6700_v4 }
 0x6a3   : > { %v6306_v30 = vpack.c.bf16 %v6702_v33, %v6701_v62 }
 0x6a5   : > { %6759 = vrot.lane.b32.xlu1 %v10652_v60, %s7807_s25  ;;  %v10702_v60 = vld [vmem:[#allocation53_spill] sm:$0xff] }
 0x6a6   : > { %v7050_v17 = vpop.eup %7049 }
 0x6a7   : > { %v7052_v52 = vpop.eup %7051  ;;  %v9084_v55 = vmul.f32 %v7050_v17, %v8955_v39  ;;  %v10705_v39 = vld [vmem:[#allocation35_spill] sm:$0xff]  ;;  %v6705_v17 = vpop.permute.xlu0 %6704 }
 0x6a8   : > { %v9079_v38 = vmul.f32 %v7052_v52, %v8957_v5  ;;  %v10704_v5 = vld [vmem:[#allocation42_spill] sm:$0xff]  ;;  %v6692_v41 = vunpack.i.h.bf16 %v10705_v39  ;;  %v6691_v29 = vunpack.i.l.bf16 %v10705_v39  ;;  %v6707_v52 = vunpack.i.h.bf16 %v6705_v17 }
 0x6a9   : > { %6769 = vrot.lane.b32.xlu1 %v10694_v21, %s7807_s25  ;;  %10701 = vst [vmem:[#allocation71_spill] sm:$0xff] %v9084_v55  ;;  %v6687_v53 = vunpack.i.h.bf16 %v10704_v5  ;;  %v6686_v0 = vunpack.i.l.bf16 %v10704_v5  ;;  %v6706_v45 = vunpack.i.l.bf16 %v6705_v17 }
 0x6aa   : > { %10700 = vst [vmem:[#allocation70_spill] sm:$0xff] %v9079_v38  ;;  %5716 = vmatprep.mubr.f32.mxu1 %v9079_v38  ;;  %v6294_v25 = vpack.c.bf16 %v6692_v41, %v6691_v29 }
 0x6ab   : > { %5717 = vmatmul.mubr.f32.vlgmr.msra.gmra.mrb[32].mxu1 %v9084_v55  ;;  %v6288_v21 = vpack.c.bf16 %v6687_v53, %v6686_v0 }
 0x6ac   : > { %6281 = vmatpush3.bf16.xpose.msk.msra.mxu1 %vm8287_vm1, %v10702_v60 }
 0x6ad   : > { %6284 = vmatprep.subr.msk.bf16.mxu1 %vm8287_vm1, %v6282_v46 }
 0x6b4   : > { %6287 = vmatpush3.bf16.xpose.msk.msra.mxu1 %vm8287_vm1, %v6282_v46  ;;  %v6312_v46 = vpack.c.bf16 %v6707_v52, %v6706_v45 }
 0x6b5   : > { %6290 = vmatprep.subr.msk.bf16.mxu1 %vm8287_vm1, %v6288_v21 }
 0x6bc   : > { %6293 = vmatpush3.bf16.xpose.msk.msra.mxu1 %vm8287_vm1, %v6288_v21 }
 0x6bd   : > { %6296 = vmatprep.subr.msk.bf16.mxu1 %vm8287_vm1, %v6294_v25 }
 0x6c4   : > { %6299 = vmatpush3.bf16.xpose.msk.msra.mxu1 %vm8287_vm1, %v6294_v25 }
 0x6c5   : > { %6302 = vmatprep.subr.msk.bf16.mxu1 %vm8287_vm1, %v6300_v57 }
 0x6cc   : > { %6305 = vmatpush3.bf16.xpose.msk.msra.mxu1 %vm8287_vm1, %v6300_v57 }
 0x6cd   : > { %6308 = vmatprep.subr.msk.bf16.mxu1 %vm8287_vm1, %v6306_v30 }
 0x6d0   : > { %v2219_v49 = vpop.xlane.xlu0 %2218 }
 0x6d1   : > { %7053 = vrcp.f32 %v2219_v49  ;;  %v2221_v54 = vpop.xlane.xlu1 %2220 }
 0x6d2   : > { %7055 = vrcp.f32 %v2221_v54 }
 0x6d4   : > { %6311 = vmatpush3.bf16.xpose.msk.msra.mxu1 %vm8287_vm1, %v6306_v30  ;;  %v2225_v60 = vpop.xlane.xlu0 %2224 }
 0x6d5   : > { %6314 = vmatprep.subr.msk.bf16.mxu1 %vm8287_vm1, %v6312_v46  ;;  %v2229_v5 = vpop.xlane.xlu1 %2228  ;;  %7057 = vrcp.f32 %v2225_v60 }
 0x6d8   : > { %v2223_v53 = vpop.xlane.xlu0 %2222 }
 0x6d9   : > { %7059 = vrcp.f32 %v2223_v53  ;;  %v2227_v0 = vpop.xlane.xlu1 %2226 }
 0x6da   : > { %7061 = vrcp.f32 %v2227_v0 }
 0x6db   : > { %v7054_v21 = vpop.eup %7053  ;;  %7063 = vrcp.f32 %v2229_v5 }
 0x6dc   : > { %v7056_v39 = vpop.eup %7055  ;;  %6317 = vmatpush3.bf16.xpose.msk.msra.mxu1 %vm8287_vm1, %v6312_v46  ;;  %v2235_v41 = vpop.xlane.xlu0 %2234  ;;  %v9120_v29 = vmul.f32 %v7054_v21, %v8973_v48 }
 0x6dd   : > { %v2233_v25 = vpop.xlane.xlu1 %2232  ;;  %v9123_v14 = vmul.f32 %v7056_v39, %v8975_v1  ;;  %7065 = vrcp.f32 %v2235_v41 }
 0x6de   : > { %10706 = vst [vmem:[#allocation53_spill] sm:$0xff] %v9120_v29  ;;  %5719 = vmatprep.mubr.f32.mxu1 %v9120_v29  ;;  %7067 = vrcp.f32 %v2233_v25 }
 0x6df   : > { %10707 = vst [vmem:[#allocation31_spill] sm:$0xff] %v9123_v14  ;;  %5720 = vmatmul.mubr.f32.gmra.mrb[34].mxu1 %v9123_v14  ;;  %v7058_v4 = vpop.eup %7057 }
 0x6e0   : > { %v2241_v27 = vpop.xlane.xlu0 %2240  ;;  %v9131_v1 = vmul.f32 %v7058_v4, %v8981_v26 }
 0x6e1   : > { %v2231_v57 = vpop.xlane.xlu1 %2230 }
 0x6e2   : > { %7069 = vrcp.f32 %v2231_v57  ;;  %10709 = vst [vmem:[#allocation35_spill] sm:$0xff] %v9131_v1 }
 0x6e3   : > { %v7060_v33 = vpop.eup %7059 }
 0x6e4   : > { %v7062_v62 = vpop.eup %7061  ;;  %v2239_v30 = vpop.xlane.xlu0 %2238  ;;  %v9128_v48 = vmul.f32 %v7060_v33, %v8989_v44 }
 0x6e5   : > { %v2237_v17 = vpop.xlane.xlu1 %2236  ;;  %v9134_v52 = vmul.f32 %v7062_v62, %v8991_v34  ;;  %v7064_v45 = vpop.eup %7063 }
 0x6e6   : > { %10708 = vst [vmem:[#allocation42_spill] sm:$0xff] %v9128_v48  ;;  %7071 = vrcp.f32 %v2237_v17  ;;  %5722 = vmatprep.mubr.f32.mxu1 %v9128_v48  ;;  %v9140_v60 = vmul.f32 %v7064_v45, %v8984_v18 }
 0x6e7   : > { %10710 = vst [vmem:[#allocation72_spill] sm:$0xff] %v9134_v52  ;;  %7073 = vrcp.f32 %v2239_v30  ;;  %5723 = vmatmul.mubr.f32.gmra.mrb[36].mxu1 %v9131_v1  ;;  %v7066_v26 = vpop.eup %7065 }
 0x6e8   : > { %5725 = vmatprep.mubr.f32.mxu1 %v9134_v52  ;;  %v6710_v49 = vpop.permute.xlu0 %6709  ;;  %10711 = vst [vmem:[#allocation73_spill] sm:$0xff] %v9140_v60  ;;  %7075 = vrcp.f32 %v2241_v27  ;;  %v7068_v5 = vpop.eup %7067  ;;  %v9155_v27 = vmul.f32 %v7066_v26, %v8996_v61 }
 0x6e9   : > { %v6712_v54 = vunpack.i.h.bf16 %v6710_v49  ;;  %v6711_v44 = vunpack.i.l.bf16 %v6710_v49  ;;  %v2245_v46 = vpop.xlane.xlu1 %2244  ;;  %v9151_v39 = vmul.f32 %v7068_v5, %v8998_v35 }
 0x6ea   : > { %7077 = vrcp.f32 %v2245_v46  ;;  %10714 = vst [vmem:[#allocation76_spill] sm:$0xff] %v9155_v27 }
 0x6eb   : > { %v6318_v34 = vpack.c.bf16 %v6712_v54, %v6711_v44  ;;  %5726 = vmatmul.mubr.f32.gmra.mrb[38].mxu1 %v9140_v60  ;;  %10713 = vst [vmem:[#allocation75_spill] sm:$0xff] %v9151_v39 }
 0x6ec   : > { %v2601_v53 = vpop.permute.xlu0 %2600  ;;  %v7070_v0 = vpop.eup %7069 }
 0x6ed   : > { %v2243_v21 = vpop.xlane.xlu1 %2242  ;;  %6320 = vmatprep.subr.msk.bf16.mxu1 %vm8287_vm1, %v6318_v34  ;;  %v9148_v18 = vmul.f32 %v7070_v0, %v9004_v12 }
 0x6ee   : > { %7079 = vrcp.f32 %v2243_v21  ;;  %6323 = vmatpush3.bf16.xpose.msk.msra.mxu1 %vm8287_vm1, %v6318_v34 }
 0x6ef   : > { %10712 = vst [vmem:[#allocation74_spill] sm:$0xff] %v9148_v18  ;;  %5728 = vmatprep.mubr.f32.mxu1 %v9148_v18 }
 0x6f0   : > { %v7072_v41 = vpop.eup %7071  ;;  %v2605_v25 = vpop.permute.xlu0 %2604  ;;  %5729 = vmatmul.mubr.f32.gmra.mrb[40].mxu1 %v9151_v39 }
 0x6f1   : > { %v7074_v57 = vpop.eup %7073  ;;  %v2603_v4 = vpop.permute.xlu1 %2602  ;;  %v9159_v33 = vmul.f32 %v7072_v41, %v9010_v59  ;;  %5731 = vmatprep.mubr.f32.mxu1 %v9155_v27 }
 0x6f2   : > { %v7076_v12 = vpop.eup %7075  ;;  %v9163_v35 = vmul.f32 %v7074_v57, %v9008_v20 }
 0x6f3   : > { %10715 = vst [vmem:[#allocation77_spill] sm:$0xff] %v9159_v33  ;;  %v9168_v17 = vmul.f32 %v7076_v12, %v9002_v36 }
 0x6f4   : > { %v2609_v62 = vpop.permute.xlu0 %2608  ;;  %10716 = vst [vmem:[#allocation78_spill] sm:$0xff] %v9163_v35  ;;  %5732 = vmatmul.mubr.f32.gmra.mrb[42].mxu1 %v9159_v33  ;;  %v7078_v61 = vpop.eup %7077 }
 0x6f5   : > { %v2607_v30 = vpop.permute.xlu1 %2606  ;;  %5734 = vmatprep.mubr.f32.mxu1 %v9163_v35  ;;  %10717 = vst [vmem:[#allocation79_spill] sm:$0xff] %v9168_v17  ;;  %v9176_v20 = vmul.f32 %v7078_v61, %v9014_v22 }
 0x6f7   : > { %10719 = vst [vmem:[#allocation81_spill] sm:$0xff] %v9176_v20 }
 0x6f8   : > { %v7080_v45 = vpop.eup %7079  ;;  %v2613_v49 = vpop.permute.xlu0 %2612  ;;  %5735 = vmatmul.mubr.f32.gmra.mrb[44].mxu1 %v9168_v17 }
 0x6f9   : > { %v2611_v59 = vpop.permute.xlu1 %2610  ;;  %v9172_v54 = vmul.f32 %v7080_v45, %v9017_v32 }
 0x6fb   : > { %10718 = vst [vmem:[#allocation80_spill] sm:$0xff] %v9172_v54  ;;  %5737 = vmatprep.mubr.f32.mxu1 %v9172_v54 }
 0x6fc   : > { %v2617_v44 = vpop.permute.xlu0 %2616  ;;  %5738 = vmatmul.mubr.f32.gmra.mrb[46].mxu1 %v9176_v20 }
 0x6fd   : > { %v2615_v46 = vpop.permute.xlu1 %2614  ;;  %5772 = vmatprep.mubr.msk.f32.mxu1 %vm1218_vm0, %v2601_v53 }
 0x700   : > { %v2621_v36 = vpop.permute.xlu0 %2620  ;;  %5773 = vmatmul.mubr.msk.f32.vlgmr.msra.gmra.mrb[48].mxu1 %vm1218_vm0, %v2603_v4 }
 0x701   : > { %v2619_v26 = vpop.permute.xlu1 %2618  ;;  %5775 = vmatprep.mubr.msk.f32.mxu1 %vm1218_vm0, %v2605_v25 }
 0x704   : > { %v2625_v34 = vpop.permute.xlu0 %2624  ;;  %5776 = vmatmul.mubr.msk.f32.gmra.mrb[50].mxu1 %vm1218_vm0, %v2607_v30 }
 0x705   : > { %v2623_v32 = vpop.permute.xlu1 %2622  ;;  %5778 = vmatprep.mubr.msk.f32.mxu1 %vm1218_vm0, %v2609_v62 }
 0x708   : > { %v2629_v22 = vpop.permute.xlu0 %2628  ;;  %5779 = vmatmul.mubr.msk.f32.gmra.mrb[52].mxu1 %vm1218_vm0, %v2611_v59 }
 0x709   : > { %v2627_v5 = vpop.permute.xlu1 %2626  ;;  %5781 = vmatprep.mubr.msk.f32.mxu1 %vm1218_vm0, %v2613_v49 }
 0x70c   : > { %v6715_v0 = vpop.permute.xlu0 %6714  ;;  %5782 = vmatmul.mubr.msk.f32.gmra.mrb[54].mxu1 %vm1218_vm0, %v2615_v46 }
 0x70d   : > { %v6717_v53 = vunpack.i.h.bf16 %v6715_v0  ;;  %v6716_v21 = vunpack.i.l.bf16 %v6715_v0  ;;  %v2631_v41 = vpop.permute.xlu1 %2630  ;;  %5784 = vmatprep.mubr.msk.f32.mxu1 %vm1218_vm0, %v2617_v44 }
 0x70f   : > { %v6324_v25 = vpack.c.bf16 %v6717_v53, %v6716_v21 }
 0x710   : > { %v6730_v57 = vpop.permute.xlu0 %6729  ;;  %5785 = vmatmul.mubr.msk.f32.gmra.mrb[56].mxu1 %vm1218_vm0, %v2619_v26 }
 0x711   : > { %v6720_v4 = vpop.permute.xlu1 %6719  ;;  %6325 = vmatprep.subr.bf16.mxu0 %v6324_v25  ;;  %5787 = vmatprep.mubr.msk.f32.mxu1 %vm1218_vm0, %v2621_v36  ;;  %v6732_v45 = vunpack.i.h.bf16 %v6730_v57  ;;  %v6731_v49 = vunpack.i.l.bf16 %v6730_v57 }
 0x712   : > { %v6722_v12 = vunpack.i.h.bf16 %v6720_v4  ;;  %v6721_v62 = vunpack.i.l.bf16 %v6720_v4  ;;  %6327 = vmatpush3.bf16.msra.mxu0 %v6324_v25 }
 0x714   : > { %v6328_v30 = vpack.c.bf16 %v6722_v12, %v6721_v62  ;;  %5788 = vmatmul.mubr.msk.f32.gmra.mrb[58].mxu1 %vm1218_vm0, %v2623_v32  ;;  %v6735_v44 = vpop.permute.xlu0 %6734  ;;  %v6336_v32 = vpack.c.bf16 %v6732_v45, %v6731_v49 }
 0x715   : > { %v6725_v61 = vpop.permute.xlu1 %6724  ;;  %5790 = vmatprep.mubr.msk.f32.mxu1 %vm1218_vm0, %v2625_v34  ;;  %v6737_v53 = vunpack.i.h.bf16 %v6735_v44  ;;  %v6736_v36 = vunpack.i.l.bf16 %v6735_v44 }
 0x716   : > { %v6727_v59 = vunpack.i.h.bf16 %v6725_v61  ;;  %v6726_v46 = vunpack.i.l.bf16 %v6725_v61  ;;  %6329 = vmatprep.subr.bf16.mxu0 %v6328_v30 }
 0x717   : > { %6331 = vmatpush3.bf16.msra.mxu0 %v6328_v30  ;;  %v6340_v57 = vpack.c.bf16 %v6737_v53, %v6736_v36 }
 0x718   : > { %v6332_v26 = vpack.c.bf16 %v6727_v59, %v6726_v46  ;;  %5791 = vmatmul.mubr.msk.f32.gmra.mrb[60].mxu1 %vm1218_vm0, %v2627_v5  ;;  %v6755_v45 = vpop.permute.xlu0 %6754 }
 0x719   : > { %v6740_v0 = vpop.permute.xlu1 %6739  ;;  %5793 = vmatprep.mubr.msk.f32.mxu1 %vm1218_vm0, %v2629_v22  ;;  %v6757_v49 = vunpack.i.h.bf16 %v6755_v45 }
 0x71a   : > { %6333 = vmatprep.subr.bf16.mxu0 %v6332_v26  ;;  %v6742_v25 = vunpack.i.h.bf16 %v6740_v0  ;;  %v6741_v34 = vunpack.i.l.bf16 %v6740_v0  ;;  %v9249_v0 = vld [vmem:[%s8519_s30] ss:$0 sm:$0xff] }
 0x71b   : > { %6335 = vmatpush3.bf16.msra.mxu0 %v6332_v26 }
 0x71c   : > { %6337 = vmatprep.subr.bf16.mxu0 %v6336_v32  ;;  %5794 = vmatmul.mubr.msk.f32.gmra.mrb[62].mxu1 %vm1218_vm0, %v2631_v41  ;;  %v6344_v5 = vpack.c.bf16 %v6742_v25, %v6741_v34  ;;  %v6756_v41 = vunpack.i.l.bf16 %v6755_v45 }
 0x71d   : > { %v6745_v21 = vpop.permute.xlu1 %6744 }
 0x71e   : > { %v6747_v4 = vunpack.i.h.bf16 %v6745_v21  ;;  %v6746_v12 = vunpack.i.l.bf16 %v6745_v21  ;;  %v9195_v46 = vpack.c.bf16 %v6757_v49, %v6756_v41 }
 0x71f   : > { %6339 = vmatpush3.bf16.msra.mxu0 %v6336_v32 }
 0x720   : > { %6341 = vmatprep.subr.bf16.mxu0 %v6340_v57  ;;  %v6348_v61 = vpack.c.bf16 %v6747_v4, %v6746_v12 }
 0x721   : > { %v6750_v62 = vpop.permute.xlu1 %6749 }
 0x722   : > { %v6752_v30 = vunpack.i.h.bf16 %v6750_v62  ;;  %v6751_v22 = vunpack.i.l.bf16 %v6750_v62 }
 0x723   : > { %6343 = vmatpush3.bf16.msra.mxu0 %v6340_v57 }
 0x724   : > { %6345 = vmatprep.subr.bf16.mxu0 %v6344_v5  ;;  %v6352_v59 = vpack.c.bf16 %v6752_v30, %v6751_v22 }
 0x727   : > { %6347 = vmatpush3.bf16.msra.mxu0 %v6344_v5 }
 0x728   : > { %6349 = vmatprep.subr.bf16.mxu0 %v6348_v61 }
 0x72b   : > { %6351 = vmatpush3.bf16.msra.mxu0 %v6348_v61 }
 0x72c   : > { %6353 = vmatprep.subr.bf16.mxu0 %v6352_v59 }
 0x72f   : > { %6355 = vmatpush3.bf16.msra.mxu0 %v6352_v59 }
 0x730   : > { %6358 = vmatprep.subr.msk.bf16.mxu0 %vm8287_vm1, %v9195_v46 }
 0x77e   : > { %v9200_v44 = vpop.f32.mrb[32].mxu1 }
 0x77f   : > { %10720 = vst [vmem:[#allocation82_spill] sm:$0xff] %v9200_v44  ;;  %v9202_v26 = vpop.f32.mrb[33].mxu1 }
 0x780   : > { %10721 = vst [vmem:[#allocation83_spill] sm:$0xff] %v9202_v26 }
 0x7b2   : > { %v9206_v53 = vpop.f32.mrb[34].mxu1 }
 0x7b3   : > { %10722 = vst [vmem:[#allocation84_spill] sm:$0xff] %v9206_v53  ;;  %v9208_v36 = vpop.f32.mrb[35].mxu1 }
 0x7b4   : > { %10723 = vst [vmem:[#allocation85_spill] sm:$0xff] %v9208_v36 }
 0x7ba   : > { %v9212_v21 = vpop.f32.mrb[36].mxu1 }
 0x7bb   : > { %10724 = vst [vmem:[#allocation86_spill] sm:$0xff] %v9212_v21  ;;  %v9214_v25 = vpop.f32.mrb[37].mxu1 }
 0x7bc   : > { %10725 = vst [vmem:[#allocation87_spill] sm:$0xff] %v9214_v25 }
 0x7be   : > { %v9218_v57 = vpop.f32.mrb[38].mxu1 }
 0x7bf   : > { %10726 = vst [vmem:[#allocation88_spill] sm:$0xff] %v9218_v57  ;;  %v9220_v4 = vpop.f32.mrb[39].mxu1 }
 0x7c0   : > { %10727 = vst [vmem:[#allocation89_spill] sm:$0xff] %v9220_v4 }
 0x7c3   : > { %v9224_v5 = vpop.f32.mrb[40].mxu1 }
 0x7c4   : > { %10728 = vst [vmem:[#allocation90_spill] sm:$0xff] %v9224_v5  ;;  %v9226_v62 = vpop.f32.mrb[41].mxu1 }
 0x7c5   : > { %10729 = vst [vmem:[#allocation91_spill] sm:$0xff] %v9226_v62 }
 0x7c7   : > { %v9230_v22 = vpop.f32.mrb[42].mxu1 }
 0x7c8   : > { %10730 = vst [vmem:[#allocation92_spill] sm:$0xff] %v9230_v22  ;;  %v9232_v61 = vpop.f32.mrb[43].mxu1 }
 0x7c9   : > { %10731 = vst [vmem:[#allocation93_spill] sm:$0xff] %v9232_v61 }
 0x7cb   : > { %v9236_v49 = vpop.f32.mrb[44].mxu1 }
 0x7cc   : > { %10732 = vst [vmem:[#allocation94_spill] sm:$0xff] %v9236_v49  ;;  %v9238_v41 = vpop.f32.mrb[45].mxu1 }
 0x7cd   : > { %10733 = vst [vmem:[#allocation95_spill] sm:$0xff] %v9238_v41 }
 0x7cf   : > { %v9242_v12 = vpop.f32.mrb[46].mxu1 }
 0x7d0   : > { %10734 = vst [vmem:[#allocation96_spill] sm:$0xff] %v9242_v12  ;;  %v9244_v34 = vpop.f32.mrb[47].mxu1 }
 0x7d1   : > { %10735 = vst [vmem:[#allocation97_spill] sm:$0xff] %v9244_v34  ;;  %v10737_v34 = vld [vmem:[#allocation36_spill] sm:$0xff] }
 0x7d3   : > { %v5774_v32 = vpop.f32.mrb[48].mxu1 }
 0x7d4   : > { %v2800_v20 = vadd.f32 %v9249_v0, %v5774_v32  ;;  %v2794_v45 = vpop.f32.mrb[49].mxu1 }
 0x7d5   : > { %v2795_v54 = vadd.f32 %v9249_v0, %v2794_v45 }
 0x7d6   : > { %2875 = vmax.xlane.f32.xlu1 %v2800_v20 }
 0x7d7   : > { %v5777_v17 = vpop.f32.mrb[50].mxu1  ;;  %2873 = vmax.xlane.f32.xlu0 %v2795_v54 }
 0x7d8   : > { %v2810_v59 = vadd.f32 %v9249_v0, %v5777_v17  ;;  %v2804_v33 = vpop.f32.mrb[51].mxu1 }
 0x7d9   : > { %v9258_v27 = vadd.f32 %v9249_v0, %v2804_v33 }
 0x7db   : > { %v5780_v35 = vpop.f32.mrb[52].mxu1  ;;  %2879 = vmax.xlane.f32.xlu0 %v2810_v59 }
 0x7dc   : > { %v9255_v39 = vadd.f32 %v9249_v0, %v5780_v35  ;;  %v2814_v30 = vpop.f32.mrb[53].mxu1 }
 0x7dd   : > { %v9264_v17 = vadd.f32 %v9249_v0, %v2814_v30 }
 0x7de   : > { %2883 = vmax.xlane.f32.xlu1 %v9255_v39 }
 0x7df   : > { %v5783_v32 = vpop.f32.mrb[54].mxu1  ;;  %2877 = vmax.xlane.f32.xlu0 %v9258_v27 }
 0x7e0   : > { %v2830_v45 = vadd.f32 %v9249_v0, %v5783_v32  ;;  %v2824_v60 = vpop.f32.mrb[55].mxu1 }
 0x7e1   : > { %v2825_v33 = vadd.f32 %v9249_v0, %v2824_v60 }
 0x7e2   : > { %2887 = vmax.xlane.f32.xlu1 %v2830_v45 }
 0x7e3   : > { %v5786_v18 = vpop.f32.mrb[56].mxu1  ;;  %2881 = vmax.xlane.f32.xlu0 %v9264_v17 }
 0x7e4   : > { %v2840_v35 = vadd.f32 %v9249_v0, %v5786_v18  ;;  %v2834_v52 = vpop.f32.mrb[57].mxu1 }
 0x7e5   : > { %v2835_v14 = vadd.f32 %v9249_v0, %v2834_v52 }
 0x7e6   : > { %2891 = vmax.xlane.f32.xlu1 %v2840_v35 }
 0x7e7   : > { %v5789_v48 = vpop.f32.mrb[58].mxu1  ;;  %2885 = vmax.xlane.f32.xlu0 %v2825_v33 }
 0x7e8   : > { %v9270_v1 = vadd.f32 %v9249_v0, %v5789_v48  ;;  %v2844_v32 = vpop.f32.mrb[59].mxu1 }
 0x7e9   : > { %v9278_v55 = vadd.f32 %v9249_v0, %v2844_v32  ;;  %v10736_v32 = vld [vmem:[#allocation37_spill] sm:$0xff] }
 0x7ea   : > { %2895 = vmax.xlane.f32.xlu1 %v9270_v1 }
 0x7eb   : > { %v5792_v30 = vpop.f32.mrb[60].mxu1  ;;  %2889 = vmax.xlane.f32.xlu0 %v2835_v14 }
 0x7ec   : > { %v9275_v29 = vadd.f32 %v9249_v0, %v5792_v30  ;;  %v2854_v18 = vpop.f32.mrb[61].mxu1 }
 0x7ed   : > { %v9286_v38 = vadd.f32 %v9249_v0, %v2854_v18  ;;  %v9302_v18 = vpop.permute.xlu0 %6764 }
 0x7ee   : > { %2899 = vmax.xlane.f32.xlu1 %v9275_v29 }
 0x7ef   : > { %v5795_v60 = vpop.f32.mrb[62].mxu1  ;;  %2893 = vmax.xlane.f32.xlu0 %v9278_v55 }
 0x7f0   : > { %v9283_v48 = vadd.f32 %v9249_v0, %v5795_v60  ;;  %v2864_v52 = vpop.f32.mrb[63].mxu1  ;;  %v9298_v60 = vpop.permute.xlu1 %6759 }
 0x7f1   : > { %v9291_v30 = vadd.f32 %v9249_v0, %v2864_v52 }
 0x7f2   : > { %2903 = vmax.xlane.f32.xlu1 %v9283_v48 }
 0x7f3   : > { %2897 = vmax.xlane.f32.xlu0 %v9286_v38 }
 0x7f4   : > { %v9300_v12 = vpop.permute.xlu1 %6769 }
 0x7f7   : > { %2901 = vmax.xlane.f32.xlu0 %v9291_v30 }
 0x803   : > { %6779 = vrot.lane.b32.xlu1 %v10736_v32, %s7807_s25 }
 0x80d   : > { %6774 = vrot.lane.b32.xlu0 %v10737_v34, %s7807_s25 }
 0x863   : > { %v2876_v41 = vpop.xlane.xlu1 %2875 }
 0x864   : > { %v2906_v49 = vsub.f32 %v2800_v20, %v2876_v41  ;;  %v2874_v61 = vpop.xlane.xlu0 %2873 }
 0x865   : > { %v2905_v22 = vsub.f32 %v2795_v54, %v2874_v61 }
 0x866   : > { %v2923_v52 = vmul.f32 1.442695, %v2906_v49 }
 0x867   : > { %v2921_v4 = vmul.f32 1.442695, %v2905_v22 }
 0x868   : > { %7081 = vpow2.f32 %v2923_v52  ;;  %v2880_v57 = vpop.xlane.xlu0 %2879 }
 0x869   : > { %7083 = vpow2.f32 %v2921_v4  ;;  %v2908_v62 = vsub.f32 %v2810_v59, %v2880_v57 }
 0x86b   : > { %v2927_v32 = vmul.f32 1.442695, %v2908_v62  ;;  %v2884_v5 = vpop.xlane.xlu1 %2883 }
 0x86c   : > { %v2878_v25 = vpop.xlane.xlu0 %2877 }
 0x86d   : > { %7085 = vpow2.f32 %v2927_v32 }
 0x86f   : > { %v2888_v34 = vpop.xlane.xlu1 %2887 }
 0x870   : > { %v2912_v21 = vsub.f32 %v2830_v45, %v2888_v34  ;;  %v2882_v36 = vpop.xlane.xlu0 %2881  ;;  %v2907_v34 = vsub.f32 %v9258_v27, %v2878_v25 }
 0x872   : > { %v9304_v53 = vpop.eup %7081  ;;  %v2935_v26 = vmul.f32 1.442695, %v2912_v21 }
 0x873   : > { %v9306_v44 = vpop.eup %7083  ;;  %v2892_v20 = vpop.xlane.xlu1 %2891  ;;  %2955 = vadd.xlane.f32.xlu0 %v9304_v53 }
 0x874   : > { %7087 = vpow2.f32 %v2935_v26  ;;  %2953 = vadd.xlane.f32.xlu1 %v9306_v44  ;;  %v2886_v54 = vpop.xlane.xlu0 %2885  ;;  %v2914_v57 = vsub.f32 %v2840_v35, %v2892_v20  ;;  %v2910_v20 = vsub.f32 %v9255_v39, %v2884_v5 }
 0x875   : > { %v2911_v4 = vsub.f32 %v2825_v33, %v2886_v54  ;;  %v2925_v54 = vmul.f32 1.442695, %v2907_v34 }
 0x876   : > { %v2939_v49 = vmul.f32 1.442695, %v2914_v57  ;;  %v2931_v57 = vmul.f32 1.442695, %v2910_v20 }
 0x877   : > { %v9310_v62 = vpop.eup %7085  ;;  %v2933_v22 = vmul.f32 1.442695, %v2911_v4  ;;  %v2896_v41 = vpop.xlane.xlu1 %2895  ;;  %v2909_v4 = vsub.f32 %v9264_v17, %v2882_v36 }
 0x878   : > { %2959 = vadd.xlane.f32.xlu1 %v9310_v62  ;;  %v2890_v61 = vpop.xlane.xlu0 %2889  ;;  %v2916_v59 = vsub.f32 %v9270_v1, %v2896_v41 }
 0x879   : > { %7089 = vpow2.f32 %v2933_v22  ;;  %v2913_v21 = vsub.f32 %v2835_v14, %v2890_v61  ;;  %v10738_v14 = vld [vmem:[#allocation38_spill] sm:$0xff]  ;;  %v2929_v61 = vmul.f32 1.442695, %v2909_v4 }
 0x87a   : > { %7091 = vpow2.f32 %v2939_v49  ;;  %v2943_v35 = vmul.f32 1.442695, %v2916_v59 }
 0x87b   : > { %v2937_v45 = vmul.f32 1.442695, %v2913_v21  ;;  %v2900_v21 = vpop.xlane.xlu1 %2899 }
 0x87c   : > { %v2894_v22 = vpop.xlane.xlu0 %2893  ;;  %v2918_v41 = vsub.f32 %v9275_v29, %v2900_v21 }
 0x87d   : > { %7093 = vpow2.f32 %v2937_v45  ;;  %v2915_v49 = vsub.f32 %v9278_v55, %v2894_v22 }
 0x87e   : > { %v9314_v26 = vpop.eup %7087  ;;  %7095 = vpow2.f32 %v2943_v35  ;;  %v2947_v5 = vmul.f32 1.442695, %v2918_v41 }
 0x87f   : > { %2967 = vadd.xlane.f32.xlu1 %v9314_v26  ;;  %7097 = vpow2.f32 %v2925_v54  ;;  %v2941_v27 = vmul.f32 1.442695, %v2915_v49  ;;  %v2904_v59 = vpop.xlane.xlu1 %2903 }
 0x880   : > { %7099 = vpow2.f32 %v2931_v57  ;;  %v2898_v25 = vpop.xlane.xlu0 %2897  ;;  %v2920_v29 = vsub.f32 %v9283_v48, %v2904_v59 }
 0x881   : > { %7101 = vpow2.f32 %v2929_v61  ;;  %v2917_v36 = vsub.f32 %v9286_v38, %v2898_v25 }
 0x882   : > { %7103 = vpow2.f32 %v2941_v27  ;;  %v2951_v38 = vmul.f32 1.442695, %v2920_v29 }
 0x883   : > { %v9317_v33 = vpop.eup %7089  ;;  %7105 = vpow2.f32 %v2947_v5 }
 0x884   : > { %2965 = vadd.xlane.f32.xlu1 %v9317_v33  ;;  %v9320_v52 = vpop.eup %7091  ;;  %v2902_v35 = vpop.xlane.xlu0 %2901 }
 0x887   : > { %v9325_v1 = vpop.eup %7093 }
 0x888   : > { %2971 = vadd.xlane.f32.xlu1 %v9320_v52  ;;  %v9328_v32 = vpop.eup %7095 }
 0x889   : > { %6784 = vrot.lane.b32.xlu0 %v10738_v14, %s7807_s25  ;;  %v9338_v39 = vpop.eup %7097  ;;  %v2919_v14 = vsub.f32 %v9291_v30, %v2902_v35 }
 0x88a   : > { %v9342_v17 = vpop.eup %7099 }
 0x88b   : > { %v9345_v55 = vpop.eup %7101  ;;  %v2949_v20 = vmul.f32 1.442695, %v2919_v14 }
 0x88c   : > { %2969 = vadd.xlane.f32.xlu1 %v9325_v1  ;;  %v9349_v45 = vpop.eup %7103 }
 0x88d   : > { %v9353_v34 = vpop.eup %7105 }
 0x890   : > { %2975 = vadd.xlane.f32.xlu1 %v9328_v32 }
 0x8a1   : > { %3325 = vrot.lane.b32.xlu1 %v8461_v10, %s7807_s25  ;;  %v2945_v10 = vmul.f32 1.442695, %v2917_v36 }
 0x8a3   : > { %7107 = vpow2.f32 %v2945_v10 }
 0x8a4   : > { %7109 = vpow2.f32 %v2951_v38 }
 0x8a5   : > { %7111 = vpow2.f32 %v2949_v20 }
 0x8a8   : > { %2957 = vadd.xlane.f32.xlu0 %v9338_v39 }
 0x8ac   : > { %2963 = vadd.xlane.f32.xlu0 %v9342_v17 }
 0x8ad   : > { %v9356_v54 = vpop.eup %7107 }
 0x8ae   : > { %v9359_v48 = vpop.eup %7109 }
 0x8af   : > { %v9362_v57 = vpop.eup %7111 }
 0x8b0   : > { %2961 = vadd.xlane.f32.xlu0 %v9345_v55 }
 0x8b4   : > { %2973 = vadd.xlane.f32.xlu0 %v9349_v45 }
 0x8b8   : > { %2979 = vadd.xlane.f32.xlu0 %v9353_v34 }
 0x8bc   : > { %2977 = vadd.xlane.f32.xlu0 %v9356_v54 }
 0x8c5   : > { %2983 = vadd.xlane.f32.xlu1 %v9359_v48 }
 0x8c9   : > { %2981 = vadd.xlane.f32.xlu1 %v9362_v57 }
 0x8d2   : > { %6789 = vrot.lane.b32.xlu0 %v8384_v2, %s7807_s25 }
 0x8d6   : > { %3323 = vrot.lane.b32.xlu0 %v8317_v13, %s7807_s25  ;;  %v6775_v13 = vpop.permute.xlu0 %6774 }
 0x8da   : > { %3327 = vrot.lane.b32.xlu0 %v8457_v56, %s7807_s25  ;;  %3329 = vrot.lane.b32.xlu1 %v8469_v23, %s7807_s25  ;;  %v6772_v23 = vunpack.i.h.bf16 %v9300_v12 }
 0x8de   : > { %3331 = vrot.lane.b32.xlu0 %v8479_v8, %s7807_s25  ;;  %3333 = vrot.lane.b32.xlu1 %v8339_v28, %s7807_s25  ;;  %v6780_v28 = vpop.permute.xlu1 %6779  ;;  %v6771_v8 = vunpack.i.l.bf16 %v9300_v12 }
 0x8e2   : > { %3335 = vrot.lane.b32.xlu0 %v8354_v40, %s7807_s25  ;;  %3337 = vrot.lane.b32.xlu1 %v8350_v37, %s7807_s25 }
 0x8e6   : > { %3339 = vrot.lane.b32.xlu0 %v8368_v50, %s7807_s25  ;;  %3341 = vrot.lane.b32.xlu1 %v8364_v47, %s7807_s25 }
 0x8ea   : > { %3343 = vrot.lane.b32.xlu0 %v8378_v63, %s7807_s25  ;;  %3345 = vrot.lane.b32.xlu1 %v8374_v58, %s7807_s25  ;;  %v6762_v58 = vunpack.i.h.bf16 %v9298_v60  ;;  %v6761_v63 = vunpack.i.l.bf16 %v9298_v60 }
 0x8ee   : > { %3347 = vrot.lane.b32.xlu0 %v8390_v7, %s7807_s25  ;;  %3349 = vrot.lane.b32.xlu1 %v8387_v3, %s7807_s25  ;;  %v6362_v7 = vpack.c.bf16 %v6762_v58, %v6761_v63 }
 0x8f2   : > { %3351 = vrot.lane.b32.xlu0 %v8396_v11, %s7807_s25  ;;  %3353 = vrot.lane.b32.xlu1 %v8393_v9, %s7807_s25  ;;  %v6767_v9 = vunpack.i.h.bf16 %v9302_v18  ;;  %v6766_v11 = vunpack.i.l.bf16 %v9302_v18 }
 0x8f4   : > { %v6368_v56 = vpack.c.bf16 %v6767_v9, %v6766_v11 }
 0x8f6   : > { %6794 = vrot.lane.b32.xlu0 %v8690_v43, %s7807_s25  ;;  %6799 = vrot.lane.b32.xlu1 %v8696_v42, %s7807_s25  ;;  %v6374_v43 = vpack.c.bf16 %v6772_v23, %v6771_v8  ;;  %v6777_v42 = vunpack.i.h.bf16 %v6775_v13 }
 0x8fa   : > { %6804 = vrot.lane.b32.xlu0 %v8708_v16, %s7807_s25  ;;  %6809 = vrot.lane.b32.xlu1 %v8702_v15, %s7807_s25  ;;  %v6776_v15 = vunpack.i.l.bf16 %v6775_v13 }
 0x8fc   : > { %v6380_v16 = vpack.c.bf16 %v6777_v42, %v6776_v15 }
 0x8fe   : > { %6814 = vrot.lane.b32.xlu0 %v8714_v19, %s7807_s25 }
 0x900   : > { %v2956_v37 = vpop.xlane.xlu0 %2955 }
 0x901   : > { %7113 = vrcp.f32 %v2956_v37  ;;  %v2954_v40 = vpop.xlane.xlu1 %2953 }
 0x902   : > { %7115 = vrcp.f32 %v2954_v40 }
 0x904   : > { %v6785_v30 = vpop.permute.xlu0 %6784 }
 0x905   : > { %v2960_v19 = vpop.xlane.xlu1 %2959  ;;  %v6787_v18 = vunpack.i.h.bf16 %v6785_v30  ;;  %v6786_v4 = vunpack.i.l.bf16 %v6785_v30 }
 0x906   : > { %7117 = vrcp.f32 %v2960_v19 }
 0x907   : > { %v6392_v61 = vpack.c.bf16 %v6787_v18, %v6786_v4 }
 0x90b   : > { %v7114_v47 = vpop.eup %7113 }
 0x90c   : > { %v7116_v50 = vpop.eup %7115  ;;  %v9413_v3 = vmul.f32 %v7114_v47, %v9304_v53  ;;  %v2968_v53 = vpop.xlane.xlu1 %2967 }
 0x90d   : > { %v9410_v2 = vmul.f32 %v7116_v50, %v9306_v44  ;;  %v6781_v44 = vunpack.i.l.bf16 %v6780_v28 }
 0x90f   : > { %5828 = vmatprep.mubr.f32.mxu0 %v9410_v2 }
 0x910   : > { %5829 = vmatmul.mubr.f32.vlgmr.msra.gmra.mrb[64].mxu0 %v9413_v3  ;;  %v7118_v27 = vpop.eup %7117 }
 0x911   : > { %6361 = vmatpush3.bf16.xpose.msk.msra.mxu0 %vm8287_vm1, %v9195_v46  ;;  %v6782_v46 = vunpack.i.h.bf16 %v6780_v28  ;;  %v2966_v60 = vpop.xlane.xlu1 %2965  ;;  %v9452_v59 = vmul.f32 %v7118_v27, %v9310_v62 }
 0x912   : > { %6364 = vmatprep.subr.msk.bf16.mxu0 %vm8287_vm1, %v6362_v7 }
 0x913   : > { %v6386_v12 = vpack.c.bf16 %v6782_v46, %v6781_v44 }
 0x915   : > { %v2972_v49 = vpop.xlane.xlu1 %2971 }
 0x919   : > { %6367 = vmatpush3.bf16.xpose.msk.msra.mxu0 %vm8287_vm1, %v6362_v7  ;;  %v2970_v25 = vpop.xlane.xlu1 %2969 }
 0x91a   : > { %6370 = vmatprep.subr.msk.bf16.mxu0 %vm8287_vm1, %v6368_v56 }
 0x91d   : > { %v2976_v38 = vpop.xlane.xlu1 %2975 }
 0x921   : > { %6373 = vmatpush3.bf16.xpose.msk.msra.mxu0 %vm8287_vm1, %v6368_v56  ;;  %v3326_v50 = vpop.permute.xlu1 %3325 }
 0x922   : > { %6376 = vmatprep.subr.msk.bf16.mxu0 %vm8287_vm1, %v6374_v43 }
 0x929   : > { %6379 = vmatpush3.bf16.xpose.msk.msra.mxu0 %vm8287_vm1, %v6374_v43 }
 0x92a   : > { %6382 = vmatprep.subr.msk.bf16.mxu0 %vm8287_vm1, %v6380_v16 }
 0x931   : > { %6385 = vmatpush3.bf16.xpose.msk.msra.mxu0 %vm8287_vm1, %v6380_v16 }
 0x932   : > { %6388 = vmatprep.subr.msk.bf16.mxu0 %vm8287_vm1, %v6386_v12 }
 0x935   : > { %v2958_v22 = vpop.xlane.xlu0 %2957 }
 0x936   : > { %7119 = vrcp.f32 %v2958_v22 }
 0x937   : > { %7121 = vrcp.f32 %v2966_v60 }
 0x939   : > { %6391 = vmatpush3.bf16.xpose.msk.msra.mxu0 %vm8287_vm1, %v6386_v12  ;;  %v2964_v21 = vpop.xlane.xlu0 %2963 }
 0x93a   : > { %6394 = vmatprep.subr.msk.bf16.mxu0 %vm8287_vm1, %v6392_v61  ;;  %7123 = vrcp.f32 %v2964_v21 }
 0x93d   : > { %v2962_v41 = vpop.xlane.xlu0 %2961 }
 0x93e   : > { %7125 = vrcp.f32 %v2962_v41 }
 0x93f   : > { %7127 = vrcp.f32 %v2968_v53 }
 0x940   : > { %v7120_v5 = vpop.eup %7119  ;;  %7129 = vrcp.f32 %v2970_v25 }
 0x941   : > { %6397 = vmatpush3.bf16.xpose.msk.msra.mxu0 %vm8287_vm1, %v6392_v61  ;;  %v2974_v36 = vpop.xlane.xlu0 %2973  ;;  %v9449_v10 = vmul.f32 %v7120_v5, %v9338_v39  ;;  %7131 = vrcp.f32 %v2972_v49  ;;  %v7122_v35 = vpop.eup %7121 }
 0x942   : > { %7133 = vrcp.f32 %v2974_v36  ;;  %v9464_v37 = vmul.f32 %v7122_v35, %v9317_v33 }
 0x943   : > { %5831 = vmatprep.mubr.f32.mxu0 %v9449_v10  ;;  %7135 = vrcp.f32 %v2976_v38 }
 0x944   : > { %5832 = vmatmul.mubr.f32.gmra.mrb[66].mxu0 %v9452_v59  ;;  %v7124_v14 = vpop.eup %7123 }
 0x945   : > { %v2980_v29 = vpop.xlane.xlu0 %2979  ;;  %v9460_v62 = vmul.f32 %v7124_v14, %v9342_v17 }
 0x948   : > { %v7126_v20 = vpop.eup %7125 }
 0x949   : > { %v2978_v13 = vpop.xlane.xlu0 %2977  ;;  %v9457_v39 = vmul.f32 %v7126_v20, %v9345_v55  ;;  %v7128_v28 = vpop.eup %7127 }
 0x94a   : > { %7137 = vrcp.f32 %v2978_v13  ;;  %v7130_v40 = vpop.eup %7129  ;;  %v9469_v63 = vmul.f32 %v7128_v28, %v9314_v26 }
 0x94b   : > { %5834 = vmatprep.mubr.f32.mxu0 %v9457_v39  ;;  %7139 = vrcp.f32 %v2980_v29  ;;  %v7132_v17 = vpop.eup %7131  ;;  %v9472_v7 = vmul.f32 %v7130_v40, %v9325_v1 }
 0x94c   : > { %5835 = vmatmul.mubr.f32.gmra.mrb[68].mxu0 %v9460_v62  ;;  %v7134_v9 = vpop.eup %7133  ;;  %v9479_v23 = vmul.f32 %v7132_v17, %v9320_v52 }
 0x94d   : > { %5837 = vmatprep.mubr.f32.mxu0 %v9464_v37  ;;  %v6790_v47 = vpop.permute.xlu0 %6789  ;;  %v7136_v26 = vpop.eup %7135  ;;  %v9484_v1 = vmul.f32 %v7134_v9, %v9349_v45 }
 0x94e   : > { %v6792_v55 = vunpack.i.h.bf16 %v6790_v47  ;;  %v6791_v58 = vunpack.i.l.bf16 %v6790_v47  ;;  %v9489_v15 = vmul.f32 %v7136_v26, %v9328_v32 }
 0x950   : > { %v6398_v33 = vpack.c.bf16 %v6792_v55, %v6791_v58  ;;  %5838 = vmatmul.mubr.f32.gmra.mrb[70].mxu0 %v9469_v63 }
 0x951   : > { %5840 = vmatprep.mubr.f32.mxu0 %v9472_v7  ;;  %v3324_v11 = vpop.permute.xlu0 %3323 }
 0x952   : > { %v2984_v56 = vpop.xlane.xlu1 %2983  ;;  %6400 = vmatprep.subr.msk.bf16.mxu0 %vm8287_vm1, %v6398_v33 }
 0x953   : > { %6403 = vmatpush3.bf16.xpose.msk.msra.mxu0 %vm8287_vm1, %v6398_v33  ;;  %7141 = vrcp.f32 %v2984_v56 }
 0x954   : > { %v7138_v8 = vpop.eup %7137  ;;  %5841 = vmatmul.mubr.f32.gmra.mrb[72].mxu0 %v9479_v23 }
 0x955   : > { %5843 = vmatprep.mubr.f32.mxu0 %v9484_v1  ;;  %v3328_v43 = vpop.permute.xlu0 %3327  ;;  %v7140_v52 = vpop.eup %7139  ;;  %v9492_v16 = vmul.f32 %v7138_v8, %v9356_v54 }
 0x956   : > { %v2982_v42 = vpop.xlane.xlu1 %2981  ;;  %v9497_v19 = vmul.f32 %v7140_v52, %v9353_v34 }
 0x957   : > { %7143 = vrcp.f32 %v2982_v42 }
 0x958   : > { %5844 = vmatmul.mubr.f32.gmra.mrb[74].mxu0 %v9489_v15  ;;  %10739 = vst [vmem:[#allocation37_spill] sm:$0xff] %v9497_v19 }
 0x959   : > { %5846 = vmatprep.mubr.f32.mxu0 %v9492_v16  ;;  %v3332_v6 = vpop.permute.xlu0 %3331 }
 0x95a   : > { %v3330_v45 = vpop.permute.xlu1 %3329 }
 0x95c   : > { %5847 = vmatmul.mubr.f32.gmra.mrb[76].mxu0 %v9497_v19 }
 0x95d   : > { %v3336_v46 = vpop.permute.xlu0 %3335  ;;  %v7142_v32 = vpop.eup %7141 }
 0x95e   : > { %v3334_v44 = vpop.permute.xlu1 %3333  ;;  %v9504_v60 = vmul.f32 %v7142_v32, %v9359_v48 }
 0x960   : > { %10740 = vst [vmem:[#allocation36_spill] sm:$0xff] %v9504_v60 }
 0x961   : > { %v7144_v53 = vpop.eup %7143  ;;  %v3340_v12 = vpop.permute.xlu0 %3339 }
 0x962   : > { %v3338_v30 = vpop.permute.xlu1 %3337  ;;  %v9501_v54 = vmul.f32 %v7144_v53, %v9362_v57 }
 0x964   : > { %5849 = vmatprep.mubr.f32.mxu0 %v9501_v54 }
 0x965   : > { %5850 = vmatmul.mubr.f32.gmra.mrb[78].mxu0 %v9504_v60  ;;  %v3344_v34 = vpop.permute.xlu0 %3343 }
 0x966   : > { %v3342_v18 = vpop.permute.xlu1 %3341  ;;  %5884 = vmatprep.mubr.msk.f32.mxu0 %vm1218_vm0, %v3324_v11 }
 0x969   : > { %v3348_v4 = vpop.permute.xlu0 %3347  ;;  %5885 = vmatmul.mubr.msk.f32.vlgmr.msra.gmra.mrb[80].mxu0 %vm1218_vm0, %v3326_v50 }
 0x96a   : > { %v3346_v22 = vpop.permute.xlu1 %3345  ;;  %5887 = vmatprep.mubr.msk.f32.mxu0 %vm1218_vm0, %v3328_v43 }
 0x96d   : > { %v3352_v61 = vpop.permute.xlu0 %3351  ;;  %5888 = vmatmul.mubr.msk.f32.gmra.mrb[82].mxu0 %vm1218_vm0, %v3330_v45 }
 0x96e   : > { %v3350_v57 = vpop.permute.xlu1 %3349  ;;  %5890 = vmatprep.mubr.msk.f32.mxu0 %vm1218_vm0, %v3332_v6 }
 0x971   : > { %v6795_v48 = vpop.permute.xlu0 %6794  ;;  %5891 = vmatmul.mubr.msk.f32.gmra.mrb[84].mxu0 %vm1218_vm0, %v3334_v44 }
 0x972   : > { %v6797_v49 = vunpack.i.h.bf16 %v6795_v48  ;;  %v6796_v21 = vunpack.i.l.bf16 %v6795_v48  ;;  %v3354_v41 = vpop.permute.xlu1 %3353  ;;  %5893 = vmatprep.mubr.msk.f32.mxu0 %vm1218_vm0, %v3336_v46 }
 0x974   : > { %v6404_v27 = vpack.c.bf16 %v6797_v49, %v6796_v21 }
 0x975   : > { %v6805_v25 = vpop.permute.xlu0 %6804  ;;  %5894 = vmatmul.mubr.msk.f32.gmra.mrb[86].mxu0 %vm1218_vm0, %v3338_v30 }
 0x976   : > { %v6800_v5 = vpop.permute.xlu1 %6799  ;;  %5896 = vmatprep.mubr.msk.f32.mxu0 %vm1218_vm0, %v3340_v12  ;;  %6405 = vmatprep.subr.bf16.mxu1 %v6404_v27  ;;  %v6807_v36 = vunpack.i.h.bf16 %v6805_v25  ;;  %v6806_v29 = vunpack.i.l.bf16 %v6805_v25 }
 0x977   : > { %v6802_v35 = vunpack.i.h.bf16 %v6800_v5  ;;  %v6801_v38 = vunpack.i.l.bf16 %v6800_v5  ;;  %6407 = vmatpush3.bf16.msra.mxu1 %v6404_v27 }
 0x978   : > { %v6412_v40 = vpack.c.bf16 %v6807_v36, %v6806_v29 }
 0x979   : > { %5897 = vmatmul.mubr.msk.f32.gmra.mrb[88].mxu0 %vm1218_vm0, %v3342_v18  ;;  %v6408_v14 = vpack.c.bf16 %v6802_v35, %v6801_v38  ;;  %v6815_v47 = vpop.permute.xlu0 %6814 }
 0x97a   : > { %v6810_v20 = vpop.permute.xlu1 %6809  ;;  %5899 = vmatprep.mubr.msk.f32.mxu0 %vm1218_vm0, %v3344_v34  ;;  %v6817_v50 = vunpack.i.h.bf16 %v6815_v47  ;;  %v6816_v55 = vunpack.i.l.bf16 %v6815_v47 }
 0x97b   : > { %v6812_v13 = vunpack.i.h.bf16 %v6810_v20  ;;  %v6811_v28 = vunpack.i.l.bf16 %v6810_v20  ;;  %6409 = vmatprep.subr.bf16.mxu1 %v6408_v14 }
 0x97c   : > { %6411 = vmatpush3.bf16.msra.mxu1 %v6408_v14  ;;  %v6420_v17 = vpack.c.bf16 %v6817_v50, %v6816_v55 }
 0x97d   : > { %5900 = vmatmul.mubr.msk.f32.gmra.mrb[90].mxu0 %vm1218_vm0, %v3346_v22  ;;  %6413 = vmatprep.subr.bf16.mxu1 %v6412_v40  ;;  %v6416_v58 = vpack.c.bf16 %v6812_v13, %v6811_v28 }
 0x97e   : > { %5902 = vmatprep.mubr.msk.f32.mxu0 %vm1218_vm0, %v3348_v4 }
 0x980   : > { %6415 = vmatpush3.bf16.msra.mxu1 %v6412_v40 }
 0x981   : > { %5903 = vmatmul.mubr.msk.f32.gmra.mrb[92].mxu0 %vm1218_vm0, %v3350_v57  ;;  %6417 = vmatprep.subr.bf16.mxu1 %v6416_v58 }
 0x982   : > { %5905 = vmatprep.mubr.msk.f32.mxu0 %vm1218_vm0, %v3352_v61 }
 0x984   : > { %6419 = vmatpush3.bf16.msra.mxu1 %v6416_v58 }
 0x985   : > { %5906 = vmatmul.mubr.msk.f32.gmra.mrb[94].mxu0 %vm1218_vm0, %v3354_v41  ;;  %6421 = vmatprep.subr.bf16.mxu1 %v6420_v17 }
 0x988   : > { %6423 = vmatpush3.bf16.msra.mxu1 %v6420_v17 }
 0x9e3   : > { %v9524_v9 = vpop.f32.mrb[64].mxu0 }
 0x9e4   : > { %v9526_v33 = vpop.f32.mrb[65].mxu0 }
 0xa17   : > { %v9530_v56 = vpop.f32.mrb[66].mxu0 }
 0xa18   : > { %v9532_v26 = vpop.f32.mrb[67].mxu0 }
 0xa1f   : > { %v9536_v43 = vpop.f32.mrb[68].mxu0 }
 0xa20   : > { %v9538_v42 = vpop.f32.mrb[69].mxu0 }
 0xa23   : > { %v9542_v6 = vpop.f32.mrb[70].mxu0 }
 0xa24   : > { %v9544_v45 = vpop.f32.mrb[71].mxu0 }
 0xa27   : > { %v9548_v44 = vpop.f32.mrb[72].mxu0 }
 0xa28   : > { %v9550_v32 = vpop.f32.mrb[73].mxu0 }
 0xa2b   : > { %v9554_v12 = vpop.f32.mrb[74].mxu0 }
 0xa2c   : > { %v9556_v30 = vpop.f32.mrb[75].mxu0 }
 0xa2f   : > { %v9560_v18 = vpop.f32.mrb[76].mxu0 }
 0xa30   : > { %v9562_v4 = vpop.f32.mrb[77].mxu0 }
 0xa38   : > { %v9566_v61 = vpop.f32.mrb[78].mxu0 }
 0xa39   : > { %v9568_v57 = vpop.f32.mrb[79].mxu0 }
 0xa3c   : > { %v5886_v49 = vpop.f32.mrb[80].mxu0 }
 0xa3d   : > { %v3523_v21 = vadd.f32 %v9249_v0, %v5886_v49  ;;  %v3517_v41 = vpop.f32.mrb[81].mxu0 }
 0xa3e   : > { %v3518_v27 = vadd.f32 %v9249_v0, %v3517_v41 }
 0xa3f   : > { %3598 = vmax.xlane.f32.xlu1 %v3523_v21 }
 0xa40   : > { %v5889_v25 = vpop.f32.mrb[82].mxu0  ;;  %3596 = vmax.xlane.f32.xlu0 %v3518_v27 }
 0xa41   : > { %v3533_v5 = vadd.f32 %v9249_v0, %v5889_v25  ;;  %v3527_v36 = vpop.f32.mrb[83].mxu0 }
 0xa42   : > { %v3528_v14 = vadd.f32 %v9249_v0, %v3527_v36 }
 0xa44   : > { %v5892_v29 = vpop.f32.mrb[84].mxu0  ;;  %3602 = vmax.xlane.f32.xlu0 %v3533_v5 }
 0xa45   : > { %v3543_v35 = vadd.f32 %v9249_v0, %v5892_v29  ;;  %v3537_v38 = vpop.f32.mrb[85].mxu0 }
 0xa46   : > { %v3538_v40 = vadd.f32 %v9249_v0, %v3537_v38 }
 0xa47   : > { %3606 = vmax.xlane.f32.xlu1 %v3543_v35 }
 0xa48   : > { %v5895_v20 = vpop.f32.mrb[86].mxu0  ;;  %3600 = vmax.xlane.f32.xlu0 %v3528_v14 }
 0xa49   : > { %v9578_v13 = vadd.f32 %v9249_v0, %v5895_v20  ;;  %v3547_v28 = vpop.f32.mrb[87].mxu0 }
 0xa4a   : > { %v3548_v58 = vadd.f32 %v9249_v0, %v3547_v28 }
 0xa4b   : > { %3610 = vmax.xlane.f32.xlu1 %v9578_v13 }
 0xa4c   : > { %v5898_v47 = vpop.f32.mrb[88].mxu0  ;;  %3604 = vmax.xlane.f32.xlu0 %v3538_v40 }
 0xa4d   : > { %v9583_v50 = vadd.f32 %v9249_v0, %v5898_v47  ;;  %v3557_v55 = vpop.f32.mrb[89].mxu0 }
 0xa4e   : > { %v3558_v25 = vadd.f32 %v9249_v0, %v3557_v55 }
 0xa4f   : > { %3614 = vmax.xlane.f32.xlu1 %v9583_v50 }
 0xa50   : > { %v5901_v17 = vpop.f32.mrb[90].mxu0  ;;  %3608 = vmax.xlane.f32.xlu0 %v3548_v58 }
 0xa51   : > { %v9588_v49 = vadd.f32 %v9249_v0, %v5901_v17  ;;  %v3567_v41 = vpop.f32.mrb[91].mxu0 }
 0xa52   : > { %v9596_v20 = vadd.f32 %v9249_v0, %v3567_v41 }
 0xa53   : > { %3618 = vmax.xlane.f32.xlu1 %v9588_v49 }
 0xa54   : > { %v5904_v36 = vpop.f32.mrb[92].mxu0  ;;  %3612 = vmax.xlane.f32.xlu0 %v3558_v25 }
 0xa55   : > { %v9593_v29 = vadd.f32 %v9249_v0, %v5904_v36  ;;  %v3577_v38 = vpop.f32.mrb[93].mxu0 }
 0xa56   : > { %v9604_v17 = vadd.f32 %v9249_v0, %v3577_v38 }
 0xa57   : > { %3622 = vmax.xlane.f32.xlu1 %v9593_v29 }
 0xa58   : > { %v5907_v28 = vpop.f32.mrb[94].mxu0  ;;  %3616 = vmax.xlane.f32.xlu0 %v9596_v20 }
 0xa59   : > { %v9601_v47 = vadd.f32 %v9249_v0, %v5907_v28  ;;  %v3587_v55 = vpop.f32.mrb[95].mxu0 }
 0xa5a   : > { %v9609_v36 = vadd.f32 %v9249_v0, %v3587_v55 }
 0xa5b   : > { %3626 = vmax.xlane.f32.xlu1 %v9601_v47 }
 0xa5c   : > { %3620 = vmax.xlane.f32.xlu0 %v9604_v17 }
 0xa60   : > { %3624 = vmax.xlane.f32.xlu0 %v9609_v36 }
 0xa6c   : > { %6819 = vrot.lane.b32.xlu1 %v8720_v24, %s7807_s25 }
 0xa76   : > { %6824 = vrot.lane.b32.xlu0 %v8728_v31, %s7807_s25 }
 0xacc   : > { %v3599_v41 = vpop.xlane.xlu1 %3598 }
 0xacd   : > { %v3629_v28 = vsub.f32 %v3523_v21, %v3599_v41  ;;  %v3597_v48 = vpop.xlane.xlu0 %3596 }
 0xace   : > { %v3628_v38 = vsub.f32 %v3518_v27, %v3597_v48 }
 0xacf   : > { %v3646_v22 = vmul.f32 1.442695, %v3629_v28 }
 0xad0   : > { %v3644_v34 = vmul.f32 1.442695, %v3628_v38 }
 0xad1   : > { %7145 = vpow2.f32 %v3646_v22  ;;  %v3603_v53 = vpop.xlane.xlu0 %3602 }
 0xad2   : > { %7147 = vpow2.f32 %v3644_v34  ;;  %v3631_v46 = vsub.f32 %v3533_v5, %v3603_v53 }
 0xad4   : > { %v3650_v0 = vmul.f32 1.442695, %v3631_v46  ;;  %v3607_v55 = vpop.xlane.xlu1 %3606 }
 0xad5   : > { %v3633_v52 = vsub.f32 %v3543_v35, %v3607_v55  ;;  %v3601_v8 = vpop.xlane.xlu0 %3600 }
 0xad6   : > { %7149 = vpow2.f32 %v3650_v0  ;;  %v3630_v11 = vsub.f32 %v3528_v14, %v3601_v8 }
 0xad7   : > { %v3654_v19 = vmul.f32 1.442695, %v3633_v52 }
 0xad8   : > { %v3648_v24 = vmul.f32 1.442695, %v3630_v11  ;;  %v3611_v60 = vpop.xlane.xlu1 %3610 }
 0xad9   : > { %v3605_v31 = vpop.xlane.xlu0 %3604  ;;  %v3635_v21 = vsub.f32 %v9578_v13, %v3611_v60 }
 0xada   : > { %7151 = vpow2.f32 %v3648_v24  ;;  %v3632_v48 = vsub.f32 %v3538_v40, %v3605_v31 }
 0xadb   : > { %v9617_v27 = vpop.eup %7145  ;;  %7153 = vpow2.f32 %v3654_v19  ;;  %v3658_v11 = vmul.f32 1.442695, %v3635_v21 }
 0xadc   : > { %v9619_v22 = vpop.eup %7147  ;;  %v3652_v34 = vmul.f32 1.442695, %v3632_v48  ;;  %v3615_v53 = vpop.xlane.xlu1 %3614  ;;  %3678 = vadd.xlane.f32.xlu0 %v9617_v27 }
 0xadd   : > { %3676 = vadd.xlane.f32.xlu1 %v9619_v22  ;;  %v3609_v8 = vpop.xlane.xlu0 %3608  ;;  %v3637_v14 = vsub.f32 %v9583_v50, %v3615_v53 }
 0xade   : > { %7155 = vpow2.f32 %v3652_v34  ;;  %v3634_v52 = vsub.f32 %v3548_v58, %v3609_v8 }
 0xadf   : > { %7157 = vpow2.f32 %v3658_v11  ;;  %v3662_v58 = vmul.f32 1.442695, %v3637_v14 }
 0xae0   : > { %v9623_v46 = vpop.eup %7149  ;;  %v3619_v5 = vpop.xlane.xlu1 %3618  ;;  %v3656_v60 = vmul.f32 1.442695, %v3634_v52 }
 0xae1   : > { %3682 = vadd.xlane.f32.xlu1 %v9623_v46  ;;  %v3613_v35 = vpop.xlane.xlu0 %3612  ;;  %v3639_v38 = vsub.f32 %v9588_v49, %v3619_v5 }
 0xae2   : > { %v3636_v13 = vsub.f32 %v3558_v25, %v3613_v35  ;;  %7159 = vpow2.f32 %v3656_v60 }
 0xae3   : > { %v3666_v31 = vmul.f32 1.442695, %v3639_v38 }
 0xae4   : > { %v9627_v40 = vpop.eup %7151  ;;  %v3660_v19 = vmul.f32 1.442695, %v3636_v13  ;;  %v3623_v41 = vpop.xlane.xlu1 %3622 }
 0xae5   : > { %3680 = vadd.xlane.f32.xlu1 %v9627_v40  ;;  %v3617_v28 = vpop.xlane.xlu0 %3616  ;;  %v9631_v0 = vpop.eup %7153 }
 0xae6   : > { %7161 = vpow2.f32 %v3660_v19  ;;  %v3638_v50 = vsub.f32 %v9596_v20, %v3617_v28 }
 0xae7   : > { %7163 = vpow2.f32 %v3662_v58 }
 0xae8   : > { %v9633_v55 = vpop.eup %7155  ;;  %v3627_v24 = vpop.xlane.xlu1 %3626  ;;  %v3664_v34 = vmul.f32 1.442695, %v3638_v50  ;;  %7165 = vpow2.f32 %v3666_v31 }
 0xae9   : > { %3686 = vadd.xlane.f32.xlu1 %v9631_v0  ;;  %3684 = vadd.xlane.f32.xlu0 %v9633_v55  ;;  %v3621_v25 = vpop.xlane.xlu0 %3620  ;;  %v9638_v21 = vpop.eup %7157  ;;  %v3643_v58 = vsub.f32 %v9601_v47, %v3627_v24 }
 0xaea   : > { %v3640_v11 = vsub.f32 %v9604_v17, %v3621_v25  ;;  %7167 = vpow2.f32 %v3664_v34 }
 0xaec   : > { %v6820_v48 = vpop.permute.xlu1 %6819  ;;  %v9642_v20 = vpop.eup %7159  ;;  %v3668_v35 = vmul.f32 1.442695, %v3640_v11  ;;  %v10744_v11 = vpack.i.bf16 %v9524_v9, %v9526_v33  ;;  %v10752_v9 = vpack.i.bf16 %v9536_v43, %v9538_v42  ;;  %v10753_v33 = vpack.i.bf16 %v9542_v6, %v9544_v45 }
 0xaed   : > { %v6822_v49 = vunpack.i.h.bf16 %v6820_v48  ;;  %v6821_v53 = vunpack.i.l.bf16 %v6820_v48  ;;  %3690 = vadd.xlane.f32.xlu1 %v9638_v21  ;;  %v3625_v8 = vpop.xlane.xlu0 %3624  ;;  %v3641_v48 = vsub.f32 %v9593_v29, %v3623_v41  ;;  %v10748_v29 = vpack.i.bf16 %v9530_v56, %v9532_v26  ;;  %v10749_v41 = vld [vmem:[#allocation86_spill] sm:$0xff]  ;;  %v10755_v26 = vld [vmem:[#allocation91_spill] sm:$0xff] }
 0xaee   : > { %v3642_v14 = vsub.f32 %v9609_v36, %v3625_v8  ;;  %7169 = vpow2.f32 %v3668_v35  ;;  %v3674_v36 = vmul.f32 1.442695, %v3643_v58  ;;  %v10754_v56 = vld [vmem:[#allocation90_spill] sm:$0xff]  ;;  %v10758_v58 = vld [vmem:[#allocation89_spill] sm:$0xff] }
 0xaef   : > { %v6424_v52 = vpack.c.bf16 %v6822_v49, %v6821_v53  ;;  %v3670_v34 = vmul.f32 1.442695, %v3641_v48  ;;  %v10741_v49 = vld [vmem:[#allocation82_spill] sm:$0xff]  ;;  %v10742_v53 = vld [vmem:[#allocation83_spill] sm:$0xff] }
 0xaf0   : > { %v9644_v5 = vpop.eup %7161  ;;  %v3672_v38 = vmul.f32 1.442695, %v3642_v14  ;;  %v10743_v8 = vpack.i.bf16 %v10741_v49, %v10742_v53  ;;  %v10750_v14 = vld [vmem:[#allocation87_spill] sm:$0xff] }
 0xaf1   : > { %6425 = vmatprep.subr.bf16.mxu1 %v6424_v52  ;;  %3688 = vadd.xlane.f32.xlu1 %v9642_v20  ;;  %v6825_v60 = vpop.permute.xlu0 %6824  ;;  %v9649_v28 = vpop.eup %7163 }
 0xaf2   : > { %3692 = vadd.xlane.f32.xlu0 %v9644_v5  ;;  %v6827_v13 = vunpack.i.h.bf16 %v6825_v60  ;;  %v6826_v19 = vunpack.i.l.bf16 %v6825_v60  ;;  %6427 = vmatpush3.bf16.msra.mxu1 %v6424_v52  ;;  %v9653_v50 = vpop.eup %7165  ;;  %7171 = vpow2.f32 %v3672_v38  ;;  %v10745_v52 = vld [vmem:[#allocation84_spill] sm:$0xff]  ;;  %v10746_v60 = vld [vmem:[#allocation85_spill] sm:$0xff] }
 0xaf3   : > { %7173 = vpow2.f32 %v3674_v36 }
 0xaf4   : > { %v6428_v17 = vpack.c.bf16 %v6827_v13, %v6826_v19  ;;  %v9656_v25 = vpop.eup %7167  ;;  %7175 = vpow2.f32 %v3670_v34  ;;  %v10751_v13 = vpack.i.bf16 %v10749_v41, %v10750_v14  ;;  %v10756_v19 = vpack.i.bf16 %v10754_v56, %v10755_v26 }
 0xaf5   : > { %3694 = vadd.xlane.f32.xlu1 %v9649_v28 }
 0xaf6   : > { %6429 = vmatprep.subr.bf16.mxu1 %v6428_v17 }
 0xaf7   : > { %6431 = vmatpush3.bf16.msra.mxu1 %v6428_v17  ;;  %v10757_v17 = vld [vmem:[#allocation88_spill] sm:$0xff] }
 0xaf8   : > { %v9659_v31 = vpop.eup %7169  ;;  %v10759_v38 = vpack.i.bf16 %v10757_v17, %v10758_v58 }
 0xaf9   : > { %3698 = vadd.xlane.f32.xlu1 %v9653_v50 }
 0xafc   : > { %v9662_v47 = vpop.eup %7171 }
 0xafd   : > { %3696 = vadd.xlane.f32.xlu1 %v9656_v25  ;;  %v9665_v24 = vpop.eup %7173 }
 0xafe   : > { %v9683_v35 = vpop.eup %7175 }
 0xb01   : > { %3700 = vadd.xlane.f32.xlu1 %v9659_v31 }
 0xb05   : > { %3704 = vadd.xlane.f32.xlu1 %v9662_v47 }
 0xb08   : > { %6829 = vrot.lane.b32.xlu0 %v8736_v51, %s7807_s25  ;;  %v10747_v51 = vpack.i.bf16 %v10745_v52, %v10746_v60 }
 0xb09   : > { %3706 = vadd.xlane.f32.xlu1 %v9665_v24 }
 0xb1a   : > { %6834 = vrot.lane.b32.xlu1 %v10743_v8, %s7807_s25 }
 0xb1e   : > { %6839 = vrot.lane.b32.xlu1 %v10744_v11, %s7806_s20 }
 0xb22   : > { %6844 = vrot.lane.b32.xlu1 %v10747_v51, %s7807_s25 }
 0xb26   : > { %6849 = vrot.lane.b32.xlu1 %v10748_v29, %s7806_s20 }
 0xb27   : > { %3702 = vadd.xlane.f32.xlu0 %v9683_v35 }
 0xb2a   : > { %6854 = vrot.lane.b32.xlu1 %v10751_v13, %s7807_s25 }
 0xb2e   : > { %6859 = vrot.lane.b32.xlu1 %v10752_v9, %s7806_s20 }
 0xb32   : > { %6869 = vrot.lane.b32.xlu1 %v10753_v33, %s7806_s20 }
 0xb36   : > { %6874 = vrot.lane.b32.xlu1 %v10756_v19, %s7807_s25 }
 0xb3d   : > { %6864 = vrot.lane.b32.xlu0 %v10759_v38, %s7807_s25 }
 0xb69   : > { %v3679_v6 = vpop.xlane.xlu0 %3678 }
 0xb6a   : > { %v3677_v36 = vpop.xlane.xlu1 %3676 }
 0xb6b   : > { %7177 = vrcp.f32 %v3677_v36 }
 0xb6c   : > { %7179 = vrcp.f32 %v3679_v6 }
 0xb6e   : > { %v3683_v48 = vpop.xlane.xlu1 %3682 }
 0xb72   : > { %v3681_v43 = vpop.xlane.xlu1 %3680 }
 0xb73   : > { %7181 = vrcp.f32 %v3681_v43 }
 0xb74   : > { %7183 = vrcp.f32 %v3683_v48 }
 0xb75   : > { %v7178_v42 = vpop.eup %7177 }
 0xb76   : > { %v3687_v34 = vpop.xlane.xlu1 %3686  ;;  %v9711_v49 = vmul.f32 %v7178_v42, %v9619_v22  ;;  %v3685_v53 = vpop.xlane.xlu0 %3684 }
 0xb77   : > { %7185 = vrcp.f32 %v3685_v53  ;;  %v7180_v14 = vpop.eup %7179 }
 0xb78   : > { %5940 = vmatprep.mubr.f32.mxu1 %v9711_v49  ;;  %7187 = vrcp.f32 %v3687_v34  ;;  %v9715_v9 = vmul.f32 %v7180_v14, %v9617_v27  ;;  %v4292_v14 = vld [vmem:[#allocation13 + $0x18] sm:$0xff] }
 0xb7a   : > { %v3691_v45 = vpop.xlane.xlu1 %3690 }
 0xb7d   : > { %v7182_v13 = vpop.eup %7181 }
 0xb7e   : > { %v3689_v8 = vpop.xlane.xlu1 %3688  ;;  %v7184_v56 = vpop.eup %7183  ;;  %v9718_v26 = vmul.f32 %v7182_v13, %v9627_v40 }
 0xb7f   : > { %v3693_v11 = vpop.xlane.xlu0 %3692  ;;  %7189 = vrcp.f32 %v3689_v8  ;;  %v9723_v17 = vmul.f32 %v7184_v56, %v9623_v46 }
 0xb80   : > { %7191 = vrcp.f32 %v3691_v45 }
 0xb81   : > { %7193 = vrcp.f32 %v3693_v11  ;;  %v7186_v19 = vpop.eup %7185 }
 0xb82   : > { %v3695_v52 = vpop.xlane.xlu1 %3694  ;;  %v7188_v58 = vpop.eup %7187  ;;  %v9726_v27 = vmul.f32 %v7186_v19, %v9633_v55  ;;  %v4295_v19 = vld [vmem:[#allocation13 + $0x30] sm:$0xff] }
 0xb83   : > { %v6830_v60 = vpop.permute.xlu0 %6829  ;;  %7195 = vrcp.f32 %v3695_v52  ;;  %v9731_v40 = vmul.f32 %v7188_v58, %v9631_v0 }
 0xb84   : > { %v6832_v51 = vunpack.i.h.bf16 %v6830_v60  ;;  %v6831_v29 = vunpack.i.l.bf16 %v6830_v60 }
 0xb86   : > { %v6432_v41 = vpack.c.bf16 %v6832_v51, %v6831_v29  ;;  %v3699_v22 = vpop.xlane.xlu1 %3698  ;;  %v4289_v29 = vld [vmem:[#allocation13] sm:$0xff] }
 0xb88   : > { %6433 = vmatprep.subr.bf16.mxu1 %v6432_v41 }
 0xb89   : > { %6435 = vmatpush3.bf16.msra.mxu1 %v6432_v41  ;;  %v7190_v36 = vpop.eup %7189  ;;  %v4290_v41 = vld [vmem:[#allocation13 + $0x8] sm:$0xff] }
 0xb8a   : > { %v3697_v33 = vpop.xlane.xlu1 %3696  ;;  %v7192_v48 = vpop.eup %7191  ;;  %v9734_v43 = vmul.f32 %v7190_v36, %v9642_v20  ;;  %v4298_v36 = vld [vmem:[#allocation13 + $0x48] sm:$0xff] }
 0xb8b   : > { %7197 = vrcp.f32 %v3697_v33  ;;  %v7194_v46 = vpop.eup %7193  ;;  %v9739_v55 = vmul.f32 %v7192_v48, %v9638_v21  ;;  %v4294_v33 = vld [vmem:[#allocation13 + $0x28] sm:$0xff] }
 0xb8c   : > { %5941 = vmatmul.mubr.f32.vlgmr.msra.gmra.mrb[64].mxu1 %v9715_v9  ;;  %7199 = vrcp.f32 %v3699_v22  ;;  %v9742_v34 = vmul.f32 %v7194_v46, %v9644_v5  ;;  %v6436_v22 = vpack.c.bf16 %v4290_v41, %v4289_v29  ;;  %v4299_v46 = vld [vmem:[#allocation13 + $0x50] sm:$0xff] }
 0xb8d   : > { %5943 = vmatprep.mubr.f32.mxu1 %v9718_v26  ;;  %v7196_v42 = vpop.eup %7195 }
 0xb8e   : > { %v3701_v38 = vpop.xlane.xlu1 %3700  ;;  %v9747_v0 = vmul.f32 %v7196_v42, %v9649_v28  ;;  %6437 = vmatprep.subr.bf16.mxu1 %v6436_v22  ;;  %v4300_v42 = vld [vmem:[#allocation13 + $0x58] sm:$0xff] }
 0xb8f   : > { %7201 = vrcp.f32 %v3701_v38  ;;  %6439 = vmatpush3.bf16.msra.mxu1 %v6436_v22  ;;  %v4297_v38 = vld [vmem:[#allocation13 + $0x40] sm:$0xff] }
 0xb90   : > { %5944 = vmatmul.mubr.f32.gmra.mrb[66].mxu1 %v9723_v17  ;;  %v6452_v48 = vpack.c.bf16 %v4298_v36, %v4297_v38 }
 0xb91   : > { %5946 = vmatprep.mubr.f32.mxu1 %v9726_v27 }
 0xb92   : > { %v3705_v28 = vpop.xlane.xlu1 %3704 }
 0xb93   : > { %7203 = vrcp.f32 %v3705_v28 }
 0xb94   : > { %5947 = vmatmul.mubr.f32.gmra.mrb[68].mxu1 %v9731_v40 }
 0xb95   : > { %5949 = vmatprep.mubr.f32.mxu1 %v9734_v43  ;;  %v7198_v6 = vpop.eup %7197 }
 0xb96   : > { %v7200_v20 = vpop.eup %7199  ;;  %v9750_v45 = vmul.f32 %v7198_v6, %v9656_v25  ;;  %v3707_v8 = vpop.xlane.xlu1 %3706  ;;  %v6456_v6 = vpack.c.bf16 %v4300_v42, %v4299_v46  ;;  %v10765_v42 = vpack.i.bf16 %v9560_v18, %v9562_v4 }
 0xb97   : > { %v9755_v21 = vmul.f32 %v7200_v20, %v9653_v50  ;;  %v4301_v20 = vld [vmem:[#allocation13 + $0x60] sm:$0xff] }
 0xb98   : > { %5950 = vmatmul.mubr.f32.gmra.mrb[70].mxu1 %v9739_v55 }
 0xb99   : > { %5952 = vmatprep.mubr.f32.mxu1 %v9742_v34  ;;  %v7202_v53 = vpop.eup %7201 }
 0xb9a   : > { %v9758_v5 = vmul.f32 %v7202_v53, %v9659_v31  ;;  %v4302_v53 = vld [vmem:[#allocation13 + $0x68] sm:$0xff] }
 0xb9b   : > { %v6460_v28 = vpack.c.bf16 %v4302_v53, %v4301_v20 }
 0xb9c   : > { %5953 = vmatmul.mubr.f32.gmra.mrb[72].mxu1 %v9747_v0 }
 0xb9d   : > { %5955 = vmatprep.mubr.f32.mxu1 %v9750_v45  ;;  %v7204_v11 = vpop.eup %7203 }
 0xb9e   : > { %v9766_v51 = vmul.f32 %v7204_v11, %v9662_v47  ;;  %v4293_v47 = vld [vmem:[#allocation13 + $0x20] sm:$0xff] }
 0xb9f   : > { %v6444_v56 = vpack.c.bf16 %v4294_v33, %v4293_v47 }
 0xba0   : > { %5956 = vmatmul.mubr.f32.gmra.mrb[74].mxu1 %v9755_v21 }
 0xba1   : > { %5958 = vmatprep.mubr.f32.mxu1 %v9758_v5 }
 0xbb4   : > { %v3703_v25 = vpop.xlane.xlu0 %3702 }
 0xbb5   : > { %7205 = vrcp.f32 %v3703_v25  ;;  %v4304_v25 = vld [vmem:[#allocation13 + $0x78] sm:$0xff] }
 0xbb6   : > { %7207 = vrcp.f32 %v3707_v8  ;;  %v4303_v8 = vld [vmem:[#allocation13 + $0x70] sm:$0xff] }
 0xbb7   : > { %v6464_v11 = vpack.c.bf16 %v4304_v25, %v4303_v8  ;;  %v10767_v8 = vld [vmem:[#allocation95_spill] sm:$0xff]  ;;  %v10770_v25 = vld [vmem:[#allocation97_spill] sm:$0xff] }
 0xbbf   : > { %v7206_v52 = vpop.eup %7205 }
 0xbc0   : > { %v9763_v60 = vmul.f32 %v7206_v52, %v9683_v35  ;;  %v7208_v50 = vpop.eup %7207  ;;  %v4291_v35 = vld [vmem:[#allocation13 + $0x10] sm:$0xff] }
 0xbc1   : > { %v9771_v31 = vmul.f32 %v7208_v50, %v9665_v24  ;;  %v6440_v13 = vpack.c.bf16 %v4292_v14, %v4291_v35  ;;  %v4296_v24 = vld [vmem:[#allocation13 + $0x38] sm:$0xff]  ;;  %v10760_v14 = vpack.i.bf16 %v9548_v44, %v9550_v32  ;;  %v10764_v44 = vpack.i.bf16 %v9554_v12, %v9556_v30  ;;  %v10769_v30 = vld [vmem:[#allocation96_spill] sm:$0xff] }
 0xbc2   : > { %5959 = vmatmul.mubr.f32.gmra.mrb[76].mxu1 %v9763_v60  ;;  %v6448_v58 = vpack.c.bf16 %v4296_v24, %v4295_v19  ;;  %v10762_v19 = vld [vmem:[#allocation93_spill] sm:$0xff] }
 0xbc3   : > { %5961 = vmatprep.mubr.f32.mxu1 %v9766_v51  ;;  %6441 = vmatprep.subr.bf16.mxu1 %v6440_v13 }
 0xbc4   : > { %6443 = vmatpush3.bf16.msra.mxu1 %v6440_v13 }
 0xbc5   : > { %6445 = vmatprep.subr.bf16.mxu1 %v6444_v56 }
 0xbc6   : > { %5962 = vmatmul.mubr.f32.gmra.mrb[78].mxu1 %v9771_v31 }
 0xbc8   : > { %6447 = vmatpush3.bf16.msra.mxu1 %v6444_v56  ;;  %v10761_v56 = vld [vmem:[#allocation92_spill] sm:$0xff] }
 0xbc9   : > { %6449 = vmatprep.subr.bf16.mxu1 %v6448_v58  ;;  %v10763_v24 = vpack.i.bf16 %v10761_v56, %v10762_v19  ;;  %v10775_v19 = vld [vmem:[#allocation32_spill] sm:$0xff] }
 0xbcc   : > { %6451 = vmatpush3.bf16.msra.mxu1 %v6448_v58 }
 0xbcd   : > { %6453 = vmatprep.subr.bf16.mxu1 %v6452_v48 }
 0xbd0   : > { %6455 = vmatpush3.bf16.msra.mxu1 %v6452_v48 }
 0xbd1   : > { %6457 = vmatprep.subr.bf16.mxu1 %v6456_v6 }
 0xbd4   : > { %6459 = vmatpush3.bf16.msra.mxu1 %v6456_v6 }
 0xbd5   : > { %6461 = vmatprep.subr.bf16.mxu1 %v6460_v28 }
 0xbd8   : > { %6463 = vmatpush3.bf16.msra.mxu1 %v6460_v28  ;;  %v10766_v28 = vld [vmem:[#allocation94_spill] sm:$0xff] }
 0xbd9   : > { %6465 = vmatprep.subr.bf16.mxu1 %v6464_v11  ;;  %v10768_v12 = vpack.i.bf16 %v10766_v28, %v10767_v8  ;;  %v10781_v28 = vld [vmem:[#allocation44_spill] sm:$0xff] }
 0xbda   : > { %v1763_v8 = vmul.f32 1.442695, %v10781_v28 }
 0xbdc   : > { %6467 = vmatpush3.bf16.msra.mxu1 %v6464_v11  ;;  %v10771_v11 = vpack.i.bf16 %v10769_v30, %v10770_v25  ;;  %v10782_v25 = vld [vmem:[#allocation47_spill] sm:$0xff] }
 0xc5f   : > { %v5942_v52 = vpop.f32.mrb[64].mxu1 }
 0xc60   : > { %v3854_v50 = vpop.f32.mrb[65].mxu1 }
 0xc61   : > { %v6878_v29 = vpack.i.bf16 %v5942_v52, %v3854_v50 }
 0xc63   : > { %6879 = vrot.lane.b32.xlu0 %v6878_v29, %s7805_s21  ;;  %v5945_v41 = vpop.f32.mrb[66].mxu1 }
 0xc64   : > { %v3864_v22 = vpop.f32.mrb[67].mxu1 }
 0xc65   : > { %v6893_v35 = vpack.i.bf16 %v5945_v41, %v3864_v22  ;;  %v10772_v22 = vpack.i.bf16 %v9566_v61, %v9568_v57 }
 0xc67   : > { %6884 = vrot.lane.b32.xlu0 %v10760_v14, %s7806_s20  ;;  %6894 = vrot.lane.b32.xlu1 %v6893_v35, %s7805_s21  ;;  %v5948_v13 = vpop.f32.mrb[68].mxu1  ;;  %v9810_v35 = vpop.permute.xlu1 %6834  ;;  %v10773_v14 = vld [vmem:[#allocation40_spill] sm:$0xff] }
 0xc68   : > { %v3874_v47 = vpop.f32.mrb[69].mxu1 }
 0xc69   : > { %v6898_v33 = vpack.i.bf16 %v5948_v13, %v3874_v47  ;;  %v1751_v13 = vmul.f32 1.442695, %v10773_v14  ;;  %v10774_v47 = vld [vmem:[#allocation39_spill] sm:$0xff]  ;;  %v10786_v14 = vld [vmem:[#allocation48_spill] sm:$0xff] }
 0xc6b   : > { %6889 = vrot.lane.b32.xlu0 %v10763_v24, %s7807_s25  ;;  %6899 = vrot.lane.b32.xlu1 %v6898_v33, %s7805_s21  ;;  %v5951_v58 = vpop.f32.mrb[70].mxu1  ;;  %7209 = vpow2.f32 %v1751_v13  ;;  %v1753_v33 = vmul.f32 1.442695, %v10774_v47  ;;  %v9814_v56 = vpop.permute.xlu1 %6839  ;;  %v1749_v24 = vmul.f32 1.442695, %v10775_v19  ;;  %v10789_v19 = vld [vmem:[#allocation51_spill] sm:$0xff] }
 0xc6c   : > { %v3884_v38 = vpop.f32.mrb[71].mxu1  ;;  %v1771_v13 = vmul.f32 1.442695, %v10786_v14  ;;  %v9876_v14 = vpop.permute.xlu0 %6864 }
 0xc6d   : > { %v6908_v36 = vpack.i.bf16 %v5951_v58, %v3884_v38  ;;  %7211 = vpow2.f32 %v1753_v33  ;;  %v10776_v58 = vld [vmem:[#allocation33_spill] sm:$0xff] }
 0xc6e   : > { %v1757_v38 = vmul.f32 1.442695, %v10776_v58  ;;  %7213 = vpow2.f32 %v1749_v24  ;;  %v1777_v24 = vmul.f32 1.442695, %v10789_v19  ;;  %v6836_v19 = vunpack.i.l.bf16 %v9810_v35 }
 0xc6f   : > { %6904 = vrot.lane.b32.xlu1 %v10764_v44, %s7806_s20  ;;  %6909 = vrot.lane.b32.xlu0 %v6908_v36, %s7805_s21  ;;  %v5954_v32 = vpop.f32.mrb[72].mxu1  ;;  %v10777_v36 = vld [vmem:[#allocation34_spill] sm:$0xff]  ;;  %v9819_v57 = vpop.permute.xlu1 %6844  ;;  %v10778_v44 = vld [vmem:[#allocation45_spill] sm:$0xff] }
 0xc70   : > { %v3894_v48 = vpop.f32.mrb[73].mxu1  ;;  %v1755_v61 = vmul.f32 1.442695, %v10777_v36  ;;  %7215 = vpow2.f32 %v1757_v38  ;;  %v10790_v38 = vld [vmem:[#allocation50_spill] sm:$0xff] }
 0xc71   : > { %v6913_v46 = vpack.i.bf16 %v5954_v32, %v3894_v48  ;;  %v1761_v32 = vmul.f32 1.442695, %v10778_v44  ;;  %v10779_v48 = vld [vmem:[#allocation46_spill] sm:$0xff]  ;;  %v1775_v36 = vmul.f32 1.442695, %v10790_v38  ;;  %v6842_v38 = vunpack.i.h.bf16 %v9814_v56 }
 0xc72   : > { %7217 = vpow2.f32 %v1755_v61 }
 0xc73   : > { %6924 = vrot.lane.b32.xlu0 %v10765_v42, %s7806_s20  ;;  %6914 = vrot.lane.b32.xlu1 %v6913_v46, %s7805_s21  ;;  %v5957_v6 = vpop.f32.mrb[74].mxu1  ;;  %v1759_v46 = vmul.f32 1.442695, %v10779_v48  ;;  %7219 = vpow2.f32 %v1761_v32  ;;  %v10793_v32 = vld [vmem:[#allocation52_spill] sm:$0xff] }
 0xc74   : > { %v3904_v20 = vpop.f32.mrb[75].mxu1  ;;  %v1779_v48 = vmul.f32 1.442695, %v10793_v32 }
 0xc75   : > { %v6928_v53 = vpack.i.bf16 %v5957_v6, %v3904_v20  ;;  %v9823_v42 = vpop.eup %7209  ;;  %v10780_v6 = vld [vmem:[#allocation41_spill] sm:$0xff]  ;;  %7221 = vpow2.f32 %v1759_v46  ;;  %v10794_v46 = vld [vmem:[#allocation70_spill] sm:$0xff] }
 0xc76   : > { %v1765_v20 = vmul.f32 1.442695, %v10780_v6  ;;  %v2487_v6 = vmul.f32 1.442695, %v10794_v46 }
 0xc77   : > { %6919 = vrot.lane.b32.xlu1 %v10768_v12, %s7807_s25  ;;  %6929 = vrot.lane.b32.xlu0 %v6928_v53, %s7805_s21  ;;  %v9827_v53 = vpop.permute.xlu1 %6849  ;;  %v9830_v12 = vpop.eup %7211 }
 0xc78   : > { %v9832_v30 = vpop.eup %7213  ;;  %7223 = vpow2.f32 %v1765_v20  ;;  %v10795_v20 = vld [vmem:[#allocation71_spill] sm:$0xff] }
 0xc79   : > { %7225 = vpow2.f32 %v1763_v8  ;;  %v2489_v28 = vmul.f32 1.442695, %v10795_v20 }
 0xc7b   : > { %6934 = vrot.lane.b32.xlu0 %v10771_v11, %s7807_s25  ;;  %v1769_v11 = vmul.f32 1.442695, %v10782_v25  ;;  %v10797_v25 = vld [vmem:[#allocation53_spill] sm:$0xff] }
 0xc7d   : > { %7227 = vpow2.f32 %v1769_v11  ;;  %v2491_v11 = vmul.f32 1.442695, %v10797_v25 }
 0xc95   : > { %v5960_v52 = vpop.f32.mrb[76].mxu1 }
 0xc96   : > { %v3914_v18 = vpop.f32.mrb[77].mxu1 }
 0xc97   : > { %v6938_v4 = vpack.i.bf16 %v5960_v52, %v3914_v18  ;;  %v10783_v52 = vld [vmem:[#allocation43_spill] sm:$0xff] }
 0xc98   : > { %v1767_v18 = vmul.f32 1.442695, %v10783_v52 }
 0xc99   : > { %6939 = vrot.lane.b32.xlu1 %v6938_v4, %s7805_s21  ;;  %v5963_v50 = vpop.f32.mrb[78].mxu1  ;;  %v9838_v4 = vpop.eup %7215 }
 0xc9a   : > { %v3924_v29 = vpop.f32.mrb[79].mxu1  ;;  %7229 = vpow2.f32 %v1767_v18 }
 0xc9b   : > { %v6948_v41 = vpack.i.bf16 %v5963_v50, %v3924_v29  ;;  %v9840_v50 = vpop.permute.xlu1 %6854  ;;  %v9842_v29 = vpop.eup %7217 }
 0xc9c   : > { %10784 = vst [vmem:[#allocation38_spill] sm:$0xff] %v9842_v29  ;;  %v9848_v47 = vpop.eup %7219 }
 0xc9d   : > { %6944 = vrot.lane.b32.xlu1 %v10772_v22, %s7806_s20  ;;  %6949 = vrot.lane.b32.xlu0 %v6948_v41, %s7805_s21  ;;  %v10785_v41 = vld [vmem:[#allocation49_spill] sm:$0xff]  ;;  %10787 = vst [vmem:[#allocation82_spill] sm:$0xff] %v9848_v47  ;;  %v9850_v33 = vpop.eup %7221 }
 0xc9e   : > { %v1773_v22 = vmul.f32 1.442695, %v10785_v41  ;;  %10788 = vst [vmem:[#allocation83_spill] sm:$0xff] %v9850_v33  ;;  %v9858_v61 = vpop.eup %7223  ;;  %v10799_v41 = vld [vmem:[#allocation31_spill] sm:$0xff] }
 0xc9f   : > { %v9854_v58 = vpop.permute.xlu1 %6859  ;;  %10791 = vst [vmem:[#allocation84_spill] sm:$0xff] %v9858_v61  ;;  %v9860_v44 = vpop.eup %7225 }
 0xca0   : > { %7231 = vpow2.f32 %v1773_v22  ;;  %10792 = vst [vmem:[#allocation85_spill] sm:$0xff] %v9860_v44  ;;  %v9867_v8 = vpop.eup %7227  ;;  %v2493_v22 = vmul.f32 1.442695, %v10799_v41 }
 0xca1   : > { %7233 = vpow2.f32 %v1771_v13  ;;  %10796 = vst [vmem:[#allocation86_spill] sm:$0xff] %v9867_v8  ;;  %v6837_v13 = vunpack.i.h.bf16 %v9810_v35  ;;  %v6846_v35 = vunpack.i.l.bf16 %v9819_v57 }
 0xca2   : > { %7235 = vpow2.f32 %v1777_v24 }
 0xca3   : > { %7237 = vpow2.f32 %v1775_v36  ;;  %v9870_v52 = vpop.permute.xlu1 %6869  ;;  %v6841_v36 = vunpack.i.l.bf16 %v9814_v56  ;;  %v10804_v56 = vld [vmem:[#allocation54_spill] sm:$0xff] }
 0xca4   : > { %v9872_v18 = vpop.eup %7229  ;;  %7239 = vpow2.f32 %v1779_v48  ;;  %v10802_v48 = vld [vmem:[#allocation35_spill] sm:$0xff]  ;;  %v4239_v41 = vsel %vm1218_vm0, %v10804_v56, %v6837_v13 }
 0xca5   : > { %10798 = vst [vmem:[#allocation87_spill] sm:$0xff] %v9872_v18  ;;  %7241 = vpow2.f32 %v2487_v6  ;;  %v2497_v46 = vmul.f32 1.442695, %v10802_v48  ;;  %v10803_v6 = vld [vmem:[#allocation42_spill] sm:$0xff] }
 0xca6   : > { %7243 = vpow2.f32 %v2489_v28  ;;  %v2495_v20 = vmul.f32 1.442695, %v10803_v6  ;;  %v6847_v28 = vunpack.i.h.bf16 %v9819_v57  ;;  %v4256_v6 = vsel %vm4254_vm2, %v4239_v41, %v6842_v38 }
 0xca7   : > { %7245 = vpow2.f32 %v2491_v11  ;;  %v9892_v25 = vpop.permute.xlu1 %6874  ;;  %v6852_v57 = vunpack.i.h.bf16 %v9827_v53 }
 0xca8   : > { %7247 = vpow2.f32 %v2493_v22 }
 0xca9   : > { %7249 = vpow2.f32 %v2497_v46  ;;  %v10811_v46 = vld [vmem:[#allocation56_spill] sm:$0xff] }
 0xcaa   : > { %v9881_v24 = vpop.eup %7231  ;;  %7251 = vpow2.f32 %v2495_v20  ;;  %v6856_v20 = vunpack.i.l.bf16 %v9840_v50 }
 0xcab   : > { %10800 = vst [vmem:[#allocation90_spill] sm:$0xff] %v9881_v24  ;;  %v9885_v32 = vpop.eup %7233 }
 0xcac   : > { %10801 = vst [vmem:[#allocation91_spill] sm:$0xff] %v9885_v32 }
 0xcbc   : > { %1783 = vadd.xlane.f32.xlu0 %v9823_v42 }
 0xcc0   : > { %1785 = vadd.xlane.f32.xlu0 %v9830_v12 }
 0xcc1   : > { %1781 = vadd.xlane.f32.xlu1 %v9832_v30 }
 0xcc4   : > { %1789 = vadd.xlane.f32.xlu0 %v9838_v4 }
 0xcc5   : > { %1787 = vadd.xlane.f32.xlu1 %v9842_v29 }
 0xcc8   : > { %1793 = vadd.xlane.f32.xlu0 %v9848_v47 }
 0xcc9   : > { %1791 = vadd.xlane.f32.xlu1 %v9850_v33  ;;  %v10808_v33 = vld [vmem:[#allocation72_spill] sm:$0xff] }
 0xcca   : > { %v2499_v13 = vmul.f32 1.442695, %v10808_v33  ;;  %v4241_v33 = vsel %vm1218_vm0, %v10811_v46, %v6847_v28  ;;  %v6867_v46 = vunpack.i.h.bf16 %v9876_v14 }
 0xccc   : > { %1797 = vadd.xlane.f32.xlu0 %v9858_v61  ;;  %7253 = vpow2.f32 %v2499_v13 }
 0xccd   : > { %1795 = vadd.xlane.f32.xlu1 %v9860_v44  ;;  %v6851_v44 = vunpack.i.l.bf16 %v9827_v53 }
 0xcd0   : > { %1801 = vadd.xlane.f32.xlu0 %v9867_v8  ;;  %v9899_v8 = vpop.eup %7235 }
 0xcd1   : > { %1799 = vadd.xlane.f32.xlu1 %v9872_v18  ;;  %v10805_v18 = vld [vmem:[#allocation55_spill] sm:$0xff]  ;;  %10806 = vst [vmem:[#allocation88_spill] sm:$0xff] %v9899_v8 }
 0xcd4   : > { %1805 = vadd.xlane.f32.xlu0 %v9881_v24  ;;  %v4238_v24 = vsel %vm1218_vm0, %v10805_v18, %v6836_v19  ;;  %v10809_v19 = vld [vmem:[#allocation74_spill] sm:$0xff] }
 0xcd5   : > { %v6880_v11 = vpop.permute.xlu0 %6879  ;;  %1803 = vadd.xlane.f32.xlu1 %v9885_v32  ;;  %v4255_v61 = vsel %vm4254_vm2, %v4238_v24, %v6841_v36  ;;  %v9905_v32 = vpop.eup %7237  ;;  %v2503_v38 = vmul.f32 1.442695, %v10809_v19  ;;  %v10810_v24 = vld [vmem:[#allocation57_spill] sm:$0xff]  ;;  %v6861_v19 = vunpack.i.l.bf16 %v9854_v58 }
 0xcd6   : > { %v6882_v22 = vunpack.i.h.bf16 %v6880_v11  ;;  %v6881_v48 = vunpack.i.l.bf16 %v6880_v11  ;;  %10807 = vst [vmem:[#allocation89_spill] sm:$0xff] %v9905_v32  ;;  %v4240_v36 = vsel %vm1218_vm0, %v10810_v24, %v6846_v35  ;;  %v9919_v41 = vpop.eup %7239  ;;  %v4258_v24 = vsel %vm4254_vm2, %v4241_v33, %v6852_v57 }
 0xcd7   : > { %10812 = vst [vmem:[#allocation92_spill] sm:$0xff] %v9919_v41  ;;  %v4257_v35 = vsel %vm4254_vm2, %v4240_v36, %v6851_v44  ;;  %v10815_v44 = vld [vmem:[#allocation76_spill] sm:$0xff]  ;;  %7255 = vpow2.f32 %v2503_v38  ;;  %v6872_v38 = vunpack.i.h.bf16 %v9870_v52 }
 0xcd8   : > { %1809 = vadd.xlane.f32.xlu0 %v9899_v8  ;;  %v4272_v11 = vsel %vm4271_vm3, %v4255_v61, %v6881_v48  ;;  %v4273_v18 = vsel %vm4271_vm3, %v4256_v6, %v6882_v22  ;;  %v6857_v61 = vunpack.i.h.bf16 %v9840_v50  ;;  %v9923_v6 = vpop.eup %7241  ;;  %v2507_v36 = vmul.f32 1.442695, %v10815_v44 }
 0xcd9   : > { %v9912_v56 = vpop.permute.xlu0 %6884  ;;  %5996 = vmatprep.mubr.f32.mxu1 %v4272_v11  ;;  %v6895_v53 = vpop.permute.xlu1 %6894  ;;  %1807 = vadd.xlane.f32.xlu1 %v9905_v32  ;;  %10813 = vst [vmem:[#allocation93_spill] sm:$0xff] %v9923_v6  ;;  %v6862_v11 = vunpack.i.h.bf16 %v9854_v58  ;;  %v6866_v32 = vunpack.i.l.bf16 %v9876_v14  ;;  %v10814_v58 = vld [vmem:[#allocation73_spill] sm:$0xff] }
 0xcda   : > { %v6897_v22 = vunpack.i.h.bf16 %v6895_v53  ;;  %v6896_v48 = vunpack.i.l.bf16 %v6895_v53  ;;  %5997 = vmatmul.mubr.f32.vlgmr.msra.gmra.mrb[80].mxu1 %v4273_v18  ;;  %v9929_v28 = vpop.eup %7243  ;;  %v2501_v8 = vmul.f32 1.442695, %v10814_v58 }
 0xcdb   : > { %v9936_v53 = vpop.eup %7245 }
 0xcdc   : > { %2519 = vadd.xlane.f32.xlu0 %v9923_v6  ;;  %v4274_v50 = vsel %vm4271_vm3, %v4257_v35, %v6896_v48  ;;  %v4275_v18 = vsel %vm4271_vm3, %v4258_v24, %v6897_v22  ;;  %v9943_v14 = vpop.eup %7247  ;;  %v10816_v48 = vld [vmem:[#allocation59_spill] sm:$0xff]  ;;  %v10817_v35 = vld [vmem:[#allocation58_spill] sm:$0xff]  ;;  %7257 = vpow2.f32 %v2501_v8 }
 0xcdd   : > { %v9940_v57 = vpop.permute.xlu0 %6889  ;;  %5999 = vmatprep.mubr.f32.mxu1 %v4274_v50  ;;  %v6900_v33 = vpop.permute.xlu1 %6899  ;;  %1811 = vadd.xlane.f32.xlu1 %v9919_v41  ;;  %v4242_v22 = vsel %vm1218_vm0, %v10816_v48, %v6856_v20  ;;  %v4243_v13 = vsel %vm1218_vm0, %v10817_v35, %v6857_v61  ;;  %v10818_v24 = vld [vmem:[#allocation75_spill] sm:$0xff]  ;;  %v10820_v20 = vld [vmem:[#allocation60_spill] sm:$0xff]  ;;  %v6871_v61 = vunpack.i.l.bf16 %v9870_v52  ;;  %v6886_v52 = vunpack.i.l.bf16 %v9912_v56 }
 0xcde   : > { %v6902_v6 = vunpack.i.h.bf16 %v6900_v33  ;;  %v6901_v47 = vunpack.i.l.bf16 %v6900_v33  ;;  %6000 = vmatmul.mubr.f32.gmra.mrb[82].mxu1 %v4275_v18  ;;  %v2505_v58 = vmul.f32 1.442695, %v10818_v24  ;;  %v4259_v44 = vsel %vm4254_vm2, %v4242_v22, %v6861_v19  ;;  %v10819_v18 = vld [vmem:[#allocation61_spill] sm:$0xff] }
 0xcdf   : > { %v4260_v50 = vsel %vm4254_vm2, %v4243_v13, %v6862_v11  ;;  %v4244_v29 = vsel %vm1218_vm0, %v10819_v18, %v6866_v32  ;;  %v4245_v48 = vsel %vm1218_vm0, %v10820_v20, %v6867_v46  ;;  %v6877_v19 = vunpack.i.h.bf16 %v9892_v25 }
 0xce0   : > { %2523 = vadd.xlane.f32.xlu0 %v9936_v53  ;;  %v4276_v41 = vsel %vm4271_vm3, %v4259_v44, %v6901_v47  ;;  %v4277_v33 = vsel %vm4271_vm3, %v4260_v50, %v6902_v6  ;;  %v6876_v11 = vunpack.i.l.bf16 %v9892_v25  ;;  %v9964_v47 = vpop.eup %7249  ;;  %v6887_v13 = vunpack.i.h.bf16 %v9912_v56 }
 0xce1   : > { %v6905_v22 = vpop.permute.xlu1 %6904  ;;  %6002 = vmatprep.mubr.f32.mxu1 %v4276_v41  ;;  %v6910_v35 = vpop.permute.xlu0 %6909  ;;  %2521 = vadd.xlane.f32.xlu1 %v9929_v28  ;;  %v4261_v24 = vsel %vm4254_vm2, %v4244_v29, %v6871_v61  ;;  %v4262_v25 = vsel %vm4254_vm2, %v4245_v48, %v6872_v38  ;;  %7259 = vpow2.f32 %v2507_v36  ;;  %v10821_v41 = vld [vmem:[#allocation78_spill] sm:$0xff]  ;;  %v10823_v29 = vld [vmem:[#allocation63_spill] sm:$0xff]  ;;  %v6892_v61 = vunpack.i.h.bf16 %v9940_v57 }
 0xce2   : > { %v6912_v32 = vunpack.i.h.bf16 %v6910_v35  ;;  %v6911_v6 = vunpack.i.l.bf16 %v6910_v35  ;;  %6003 = vmatmul.mubr.f32.gmra.mrb[84].mxu1 %v4277_v33  ;;  %v9966_v46 = vpop.eup %7251  ;;  %v2511_v44 = vmul.f32 1.442695, %v10821_v41  ;;  %7261 = vpow2.f32 %v2505_v58  ;;  %v10822_v33 = vld [vmem:[#allocation77_spill] sm:$0xff]  ;;  %v10824_v48 = vld [vmem:[#allocation62_spill] sm:$0xff] }
 0xce3   : > { %v2509_v18 = vmul.f32 1.442695, %v10822_v33  ;;  %v4246_v36 = vsel %vm1218_vm0, %v10823_v29, %v6876_v11  ;;  %v4247_v38 = vsel %vm1218_vm0, %v10824_v48, %v6877_v19  ;;  %v6891_v35 = vunpack.i.l.bf16 %v9940_v57  ;;  %v10825_v57 = vld [vmem:[#allocation79_spill] sm:$0xff]  ;;  %v10828_v48 = vld [vmem:[#allocation64_spill] sm:$0xff] }
 0xce4   : > { %2527 = vadd.xlane.f32.xlu0 %v9966_v46  ;;  %v4278_v8 = vsel %vm4271_vm3, %v4261_v24, %v6911_v6  ;;  %v4279_v50 = vsel %vm4271_vm3, %v4262_v25, %v6912_v32  ;;  %v9986_v6 = vpop.eup %7253  ;;  %v6907_v24 = vunpack.i.h.bf16 %v6905_v22  ;;  %v6906_v25 = vunpack.i.l.bf16 %v6905_v22 }
 0xce5   : > { %v9977_v20 = vpop.permute.xlu0 %6924  ;;  %6005 = vmatprep.mubr.f32.mxu1 %v4278_v8  ;;  %v6915_v56 = vpop.permute.xlu1 %6914  ;;  %2525 = vadd.xlane.f32.xlu1 %v9943_v14  ;;  %v4263_v41 = vsel %vm4254_vm2, %v4246_v36, %v6886_v52  ;;  %v4264_v8 = vsel %vm4254_vm2, %v4247_v38, %v6887_v13  ;;  %7263 = vpow2.f32 %v2511_v44  ;;  %v10827_v44 = vld [vmem:[#allocation65_spill] sm:$0xff]  ;;  %v4249_v38 = vsel %vm1218_vm0, %v10828_v48, %v6892_v61 }
 0xce6   : > { %v6917_v32 = vunpack.i.h.bf16 %v6915_v56  ;;  %v6916_v58 = vunpack.i.l.bf16 %v6915_v56  ;;  %6006 = vmatmul.mubr.f32.gmra.mrb[86].mxu1 %v4279_v50  ;;  %v9993_v33 = vpop.eup %7255  ;;  %7265 = vpow2.f32 %v2509_v18  ;;  %v2513_v50 = vmul.f32 1.442695, %v10825_v57  ;;  %v10826_v56 = vld [vmem:[#allocation80_spill] sm:$0xff]  ;;  %v10829_v61 = vld [vmem:[#allocation81_spill] sm:$0xff] }
 0xce7   : > { %v2515_v29 = vmul.f32 1.442695, %v10826_v56  ;;  %v4248_v36 = vsel %vm1218_vm0, %v10827_v44, %v6891_v35  ;;  %v4266_v18 = vsel %vm4254_vm2, %v4249_v38, %v6907_v24  ;;  %v3224_v44 = vmul.f32 1.442695, %v9469_v63 }
 0xce8   : > { %2531 = vadd.xlane.f32.xlu0 %v9986_v6  ;;  %v4280_v19 = vsel %vm4271_vm3, %v4263_v41, %v6916_v58  ;;  %v4281_v11 = vsel %vm4271_vm3, %v4264_v8, %v6917_v32  ;;  %v4265_v32 = vsel %vm4254_vm2, %v4248_v36, %v6906_v25  ;;  %v10004_v58 = vpop.eup %7257  ;;  %v2517_v25 = vmul.f32 1.442695, %v10829_v61 }
 0xce9   : > { %6008 = vmatprep.mubr.f32.mxu1 %v4280_v19  ;;  %v6930_v22 = vpop.permute.xlu0 %6929  ;;  %2529 = vadd.xlane.f32.xlu1 %v9964_v47  ;;  %7267 = vpow2.f32 %v2515_v29  ;;  %v3210_v19 = vmul.f32 1.442695, %v9410_v2  ;;  %v3212_v2 = vmul.f32 1.442695, %v9413_v3  ;;  %v3216_v29 = vmul.f32 1.442695, %v9452_v59  ;;  %v6920_v38 = vpop.permute.xlu1 %6919 }
 0xcea   : > { %v6932_v52 = vunpack.i.h.bf16 %v6930_v22  ;;  %v6931_v13 = vunpack.i.l.bf16 %v6930_v22  ;;  %6009 = vmatmul.mubr.f32.gmra.mrb[88].mxu1 %v4281_v11  ;;  %7269 = vpow2.f32 %v2513_v50  ;;  %v3214_v11 = vmul.f32 1.442695, %v9449_v10 }
 0xceb   : > { %v10011_v35 = vpop.eup %7259  ;;  %7271 = vpow2.f32 %v3210_v19  ;;  %v3218_v50 = vmul.f32 1.442695, %v9457_v39  ;;  %v3222_v3 = vmul.f32 1.442695, %v9464_v37  ;;  %v3226_v59 = vmul.f32 1.442695, %v9472_v7 }
 0xcec   : > { %2535 = vadd.xlane.f32.xlu0 %v9993_v33  ;;  %v4282_v41 = vsel %vm4271_vm3, %v4265_v32, %v6931_v13  ;;  %v4283_v8 = vsel %vm4271_vm3, %v4266_v18, %v6932_v52  ;;  %v10014_v24 = vpop.eup %7261  ;;  %7273 = vpow2.f32 %v2517_v25  ;;  %v3220_v52 = vmul.f32 1.442695, %v9460_v62 }
 0xced   : > { %6011 = vmatprep.mubr.f32.mxu1 %v4282_v41  ;;  %2533 = vadd.xlane.f32.xlu1 %v10004_v58  ;;  %7275 = vpow2.f32 %v3214_v11  ;;  %v3230_v62 = vmul.f32 1.442695, %v9484_v1  ;;  %v3228_v48 = vmul.f32 1.442695, %v9479_v23  ;;  %v3234_v63 = vmul.f32 1.442695, %v9492_v16  ;;  %v6935_v25 = vpop.permute.xlu0 %6934 }
 0xcee   : > { %6012 = vmatmul.mubr.f32.gmra.mrb[90].mxu1 %v4283_v8  ;;  %7277 = vpow2.f32 %v3212_v2  ;;  %v3232_v1 = vmul.f32 1.442695, %v9489_v15  ;;  %v6922_v18 = vunpack.i.h.bf16 %v6920_v38  ;;  %v6921_v41 = vunpack.i.l.bf16 %v6920_v38  ;;  %v10830_v16 = vld [vmem:[#allocation37_spill] sm:$0xff]  ;;  %v10831_v11 = vld [vmem:[#allocation67_spill] sm:$0xff]  ;;  %v10832_v2 = vld [vmem:[#allocation66_spill] sm:$0xff] }
 0xcef   : > { %v10019_v57 = vpop.eup %7263  ;;  %7279 = vpow2.f32 %v3218_v50  ;;  %v3238_v19 = vmul.f32 1.442695, %v9501_v54  ;;  %v3236_v61 = vmul.f32 1.442695, %v10830_v16  ;;  %v6926_v54 = vunpack.i.l.bf16 %v9977_v20 }
 0xcf0   : > { %2539 = vadd.xlane.f32.xlu0 %v10011_v35  ;;  %v10022_v56 = vpop.eup %7265  ;;  %7281 = vpow2.f32 %v3216_v29  ;;  %v4250_v15 = vsel %vm1218_vm0, %v10831_v11, %v6921_v41  ;;  %v4251_v50 = vsel %vm1218_vm0, %v10832_v2, %v6922_v18  ;;  %v6937_v38 = vunpack.i.h.bf16 %v6935_v25 }
 0xcf1   : > { %2537 = vadd.xlane.f32.xlu1 %v10014_v24  ;;  %7283 = vpow2.f32 %v3222_v3  ;;  %v6927_v3 = vunpack.i.h.bf16 %v9977_v20  ;;  %v10835_v20 = vld [vmem:[#allocation36_spill] sm:$0xff] }
 0xcf2   : > { %7285 = vpow2.f32 %v3220_v52  ;;  %v3240_v41 = vmul.f32 1.442695, %v10835_v20 }
 0xcf3   : > { %v10028_v10 = vpop.eup %7267  ;;  %7287 = vpow2.f32 %v3226_v59  ;;  %v4268_v18 = vsel %vm4254_vm2, %v4251_v50, %v6927_v3  ;;  %v10836_v50 = vld [vmem:[#allocation69_spill] sm:$0xff] }
 0xcf4   : > { %2543 = vadd.xlane.f32.xlu0 %v10019_v57  ;;  %v10030_v22 = vpop.eup %7269  ;;  %7289 = vpow2.f32 %v3224_v44  ;;  %v3933_v44 = vmul.f32 1.442695, %v9711_v49 }
 0xcf5   : > { %2541 = vadd.xlane.f32.xlu1 %v10022_v56  ;;  %v10036_v39 = vpop.eup %7271  ;;  %7291 = vpow2.f32 %v3230_v62 }
 0xcf6   : > { %v10038_v13 = vpop.eup %7273  ;;  %7293 = vpow2.f32 %v3228_v48 }
 0xcf7   : > { %v10044_v37 = vpop.eup %7275  ;;  %7295 = vpow2.f32 %v3234_v63  ;;  %v6936_v63 = vunpack.i.l.bf16 %v6935_v25 }
 0xcf8   : > { %2547 = vadd.xlane.f32.xlu0 %v10028_v10  ;;  %v10046_v36 = vpop.eup %7277  ;;  %7297 = vpow2.f32 %v3232_v1  ;;  %v4267_v1 = vsel %vm4254_vm2, %v4250_v15, %v6926_v54  ;;  %v10837_v54 = vld [vmem:[#allocation68_spill] sm:$0xff] }
 0xcf9   : > { %2545 = vadd.xlane.f32.xlu1 %v10030_v22  ;;  %v10052_v7 = vpop.eup %7279  ;;  %7299 = vpow2.f32 %v3238_v19  ;;  %v4252_v3 = vsel %vm1218_vm0, %v10836_v50, %v6936_v63 }
 0xcfa   : > { %v10054_v32 = vpop.eup %7281  ;;  %7301 = vpow2.f32 %v3236_v61  ;;  %v3937_v61 = vmul.f32 1.442695, %v9718_v26 }
 0xcfb   : > { %v10060_v8 = vpop.eup %7283  ;;  %7303 = vpow2.f32 %v3933_v44 }
 0xcfc   : > { %3242 = vadd.xlane.f32.xlu0 %v10036_v39  ;;  %v10062_v23 = vpop.eup %7285  ;;  %7305 = vpow2.f32 %v3240_v41 }
 0xcfd   : > { %2549 = vadd.xlane.f32.xlu1 %v10038_v13  ;;  %v10072_v29 = vpop.eup %7287  ;;  %7307 = vpow2.f32 %v3937_v61  ;;  %v3955_v61 = vmul.f32 1.442695, %v9755_v21  ;;  %v3963_v21 = vmul.f32 1.442695, %v9771_v31 }
 0xcfe   : > { %10833 = vst [vmem:[#allocation94_spill] sm:$0xff] %v10072_v29  ;;  %v10076_v59 = vpop.eup %7289 }
 0xcff   : > { %10834 = vst [vmem:[#allocation95_spill] sm:$0xff] %v10076_v59  ;;  %v10086_v49 = vpop.eup %7291 }
 0xd00   : > { %3246 = vadd.xlane.f32.xlu0 %v10044_v37 }
 0xd01   : > { %3244 = vadd.xlane.f32.xlu1 %v10046_v36 }
 0xd04   : > { %3250 = vadd.xlane.f32.xlu0 %v10052_v7 }
 0xd05   : > { %3248 = vadd.xlane.f32.xlu1 %v10054_v32 }
 0xd08   : > { %3254 = vadd.xlane.f32.xlu0 %v10060_v8 }
 0xd09   : > { %3252 = vadd.xlane.f32.xlu1 %v10062_v23 }
 0xd0b   : > { %v6940_v52 = vpop.permute.xlu1 %6939 }
 0xd0c   : > { %v6942_v62 = vunpack.i.h.bf16 %v6940_v52  ;;  %v6941_v48 = vunpack.i.l.bf16 %v6940_v52  ;;  %3258 = vadd.xlane.f32.xlu0 %v10072_v29  ;;  %v10088_v52 = vpop.eup %7293 }
 0xd0d   : > { %3256 = vadd.xlane.f32.xlu1 %v10076_v59  ;;  %v10100_v20 = vpop.eup %7295 }
 0xd0e   : > { %v4284_v16 = vsel %vm4271_vm3, %v4267_v1, %v6941_v48  ;;  %v4285_v19 = vsel %vm4271_vm3, %v4268_v18, %v6942_v62  ;;  %v4253_v62 = vsel %vm1218_vm0, %v10837_v54, %v6937_v38  ;;  %v3935_v48 = vmul.f32 1.442695, %v9715_v9 }
 0xd0f   : > { %v6945_v11 = vpop.permute.xlu1 %6944  ;;  %6014 = vmatprep.mubr.f32.mxu1 %v4284_v16  ;;  %v6950_v2 = vpop.permute.xlu0 %6949  ;;  %v3941_v38 = vmul.f32 1.442695, %v9726_v27  ;;  %v3943_v27 = vmul.f32 1.442695, %v9731_v40  ;;  %v3953_v40 = vmul.f32 1.442695, %v9750_v45 }
 0xd10   : > { %v6947_v25 = vunpack.i.h.bf16 %v6945_v11  ;;  %v6946_v59 = vunpack.i.l.bf16 %v6945_v11  ;;  %v6952_v29 = vunpack.i.h.bf16 %v6950_v2  ;;  %v6951_v15 = vunpack.i.l.bf16 %v6950_v2  ;;  %6015 = vmatmul.mubr.f32.gmra.mrb[92].mxu1 %v4285_v19  ;;  %3262 = vadd.xlane.f32.xlu0 %v10086_v49  ;;  %v10104_v16 = vpop.eup %7297 }
 0xd11   : > { %3260 = vadd.xlane.f32.xlu1 %v10088_v52  ;;  %v10109_v9 = vpop.eup %7299  ;;  %7309 = vpow2.f32 %v3935_v48  ;;  %v3947_v11 = vmul.f32 1.442695, %v9739_v55  ;;  %v3957_v55 = vmul.f32 1.442695, %v9758_v5 }
 0xd12   : > { %v4269_v1 = vsel %vm4254_vm2, %v4252_v3, %v6946_v59  ;;  %v4270_v18 = vsel %vm4254_vm2, %v4253_v62, %v6947_v25  ;;  %v3939_v59 = vmul.f32 1.442695, %v9723_v17  ;;  %v10112_v63 = vpop.eup %7301  ;;  %7311 = vpow2.f32 %v3941_v38 }
 0xd13   : > { %v4286_v44 = vsel %vm4271_vm3, %v4269_v1, %v6951_v15  ;;  %v4287_v26 = vsel %vm4271_vm3, %v4270_v18, %v6952_v29  ;;  %v3945_v29 = vmul.f32 1.442695, %v9734_v43  ;;  %v10118_v41 = vpop.eup %7303  ;;  %v3949_v17 = vmul.f32 1.442695, %v9742_v34 }
 0xd14   : > { %3266 = vadd.xlane.f32.xlu0 %v10100_v20  ;;  %6017 = vmatprep.mubr.f32.mxu1 %v4286_v44  ;;  %7313 = vpow2.f32 %v3939_v59  ;;  %v10120_v19 = vpop.eup %7305  ;;  %v3951_v25 = vmul.f32 1.442695, %v9747_v0  ;;  %v3961_v0 = vmul.f32 1.442695, %v9766_v51  ;;  %v3959_v3 = vmul.f32 1.442695, %v9763_v60 }
 0xd15   : > { %3264 = vadd.xlane.f32.xlu1 %v10104_v16  ;;  %6018 = vmatmul.mubr.f32.gmra.mrb[94].mxu1 %v4287_v26  ;;  %7315 = vpow2.f32 %v3945_v29  ;;  %v10126_v43 = vpop.eup %7307 }
 0xd16   : > { %7317 = vpow2.f32 %v3943_v27 }
 0xd17   : > { %7319 = vpow2.f32 %v3949_v17 }
 0xd18   : > { %3270 = vadd.xlane.f32.xlu0 %v10109_v9  ;;  %7321 = vpow2.f32 %v3947_v11 }
 0xd19   : > { %3268 = vadd.xlane.f32.xlu1 %v10112_v63  ;;  %7323 = vpow2.f32 %v3953_v40 }
 0xd1a   : > { %7325 = vpow2.f32 %v3951_v25 }
 0xd1b   : > { %v10128_v2 = vpop.eup %7309  ;;  %7327 = vpow2.f32 %v3957_v55 }
 0xd1c   : > { %3965 = vadd.xlane.f32.xlu0 %v10118_v41  ;;  %v10134_v34 = vpop.eup %7311  ;;  %7329 = vpow2.f32 %v3955_v61 }
 0xd1d   : > { %3272 = vadd.xlane.f32.xlu1 %v10120_v19  ;;  %7331 = vpow2.f32 %v3961_v0 }
 0xd1e   : > { %v10136_v15 = vpop.eup %7313  ;;  %7333 = vpow2.f32 %v3959_v3 }
 0xd1f   : > { %v10142_v45 = vpop.eup %7315  ;;  %7335 = vpow2.f32 %v3963_v21 }
 0xd20   : > { %3969 = vadd.xlane.f32.xlu0 %v10126_v43  ;;  %v10144_v50 = vpop.eup %7317 }
 0xd21   : > { %3967 = vadd.xlane.f32.xlu1 %v10128_v2  ;;  %v10150_v5 = vpop.eup %7319 }
 0xd22   : > { %v10152_v54 = vpop.eup %7321 }
 0xd23   : > { %v10157_v62 = vpop.eup %7323 }
 0xd24   : > { %3973 = vadd.xlane.f32.xlu0 %v10134_v34  ;;  %v10159_v51 = vpop.eup %7325 }
 0xd25   : > { %3971 = vadd.xlane.f32.xlu1 %v10136_v15  ;;  %v10163_v60 = vpop.eup %7327 }
 0xd26   : > { %v10165_v48 = vpop.eup %7329 }
 0xd27   : > { %v10169_v1 = vpop.eup %7331 }
 0xd28   : > { %3977 = vadd.xlane.f32.xlu0 %v10142_v45  ;;  %v10171_v31 = vpop.eup %7333 }
 0xd29   : > { %3975 = vadd.xlane.f32.xlu1 %v10144_v50  ;;  %v10175_v18 = vpop.eup %7335 }
 0xd2c   : > { %3981 = vadd.xlane.f32.xlu0 %v10150_v5 }
 0xd2d   : > { %3979 = vadd.xlane.f32.xlu1 %v10152_v54 }
 0xd30   : > { %3985 = vadd.xlane.f32.xlu0 %v10157_v62 }
 0xd31   : > { %3983 = vadd.xlane.f32.xlu1 %v10159_v51 }
 0xd34   : > { %3989 = vadd.xlane.f32.xlu0 %v10163_v60 }
 0xd35   : > { %3987 = vadd.xlane.f32.xlu1 %v10165_v48 }
 0xd38   : > { %3993 = vadd.xlane.f32.xlu0 %v10169_v1 }
 0xd39   : > { %3991 = vadd.xlane.f32.xlu1 %v10171_v31 }
 0xd3d   : > { %3995 = vadd.xlane.f32.xlu1 %v10175_v18 }
 0xd49   : > { %v1784_v44 = vpop.xlane.xlu0 %1783 }
 0xd4a   : > { %7337 = vrcp.f32 %v1784_v44 }
 0xd4d   : > { %v1786_v26 = vpop.xlane.xlu0 %1785 }
 0xd4e   : > { %7339 = vrcp.f32 %v1786_v26  ;;  %v1782_v38 = vpop.xlane.xlu1 %1781 }
 0xd4f   : > { %7341 = vrcp.f32 %v1782_v38 }
 0xd51   : > { %v1790_v59 = vpop.xlane.xlu0 %1789 }
 0xd52   : > { %7343 = vrcp.f32 %v1790_v59  ;;  %v1788_v29 = vpop.xlane.xlu1 %1787  ;;  %v10838_v59 = vld [vmem:[#allocation38_spill] sm:$0xff] }
 0xd53   : > { %7345 = vrcp.f32 %v1788_v29 }
 0xd54   : > { %v7338_v27 = vpop.eup %7337 }
 0xd55   : > { %v1830_v17 = vmul.f32 %v7338_v27, %v9823_v42  ;;  %v1794_v11 = vpop.xlane.xlu0 %1793 }
 0xd56   : > { %7347 = vrcp.f32 %v1794_v11  ;;  %v1792_v40 = vpop.xlane.xlu1 %1791 }
 0xd57   : > { %1846 = vst [vmem:[%s10180_s4 + $0x8] sm:$0xff] %v1830_v17  ;;  %7349 = vrcp.f32 %v1792_v40  ;;  %v10839_v17 = vld [vmem:[#allocation82_spill] sm:$0xff] }
 0xd58   : > { %v7340_v25 = vpop.eup %7339 }
 0xd59   : > { %v7342_v55 = vpop.eup %7341  ;;  %v1831_v61 = vmul.f32 %v7340_v25, %v9830_v12  ;;  %v1798_v0 = vpop.xlane.xlu0 %1797  ;;  %v10840_v25 = vld [vmem:[#allocation83_spill] sm:$0xff] }
 0xd5a   : > { %v1829_v3 = vmul.f32 %v7342_v55, %v9832_v30  ;;  %7351 = vrcp.f32 %v1798_v0  ;;  %v1796_v42 = vpop.xlane.xlu1 %1795 }
 0xd5b   : > { %1847 = vst [vmem:[%s10180_s4 + $0x10] sm:$0xff] %v1831_v61  ;;  %7353 = vrcp.f32 %v1796_v42 }
 0xd5c   : > { %v7344_v21 = vpop.eup %7343  ;;  %1845 = vst [vmem:[%s10180_s4] sm:$0xff] %v1829_v3  ;;  %v10841_v3 = vld [vmem:[#allocation84_spill] sm:$0xff] }
 0xd5d   : > { %v7346_v44 = vpop.eup %7345  ;;  %v1833_v26 = vmul.f32 %v7344_v21, %v9838_v4  ;;  %v1802_v38 = vpop.xlane.xlu0 %1801 }
 0xd5e   : > { %v1832_v29 = vmul.f32 %v7346_v44, %v10838_v59  ;;  %7355 = vrcp.f32 %v1802_v38  ;;  %v1800_v12 = vpop.xlane.xlu1 %1799  ;;  %v10842_v44 = vld [vmem:[#allocation85_spill] sm:$0xff] }
 0xd5f   : > { %1849 = vst [vmem:[%s10180_s4 + $0x20] sm:$0xff] %v1833_v26  ;;  %7357 = vrcp.f32 %v1800_v12  ;;  %v10843_v12 = vld [vmem:[#allocation86_spill] sm:$0xff] }
 0xd60   : > { %v7348_v30 = vpop.eup %7347  ;;  %1848 = vst [vmem:[%s10180_s4 + $0x18] sm:$0xff] %v1832_v29 }
 0xd61   : > { %v7350_v27 = vpop.eup %7349  ;;  %v1835_v11 = vmul.f32 %v7348_v30, %v10839_v17  ;;  %v1806_v40 = vpop.xlane.xlu0 %1805  ;;  %v10844_v17 = vld [vmem:[#allocation87_spill] sm:$0xff] }
 0xd62   : > { %v1834_v55 = vmul.f32 %v7350_v27, %v10840_v25  ;;  %7359 = vrcp.f32 %v1806_v40  ;;  %v1804_v4 = vpop.xlane.xlu1 %1803 }
 0xd63   : > { %1851 = vst [vmem:[%s10180_s4 + $0x30] sm:$0xff] %v1835_v11  ;;  %7361 = vrcp.f32 %v1804_v4  ;;  %v10845_v4 = vld [vmem:[#allocation90_spill] sm:$0xff] }
 0xd64   : > { %v7352_v61 = vpop.eup %7351  ;;  %1850 = vst [vmem:[%s10180_s4 + $0x28] sm:$0xff] %v1834_v55 }
 0xd65   : > { %v7354_v0 = vpop.eup %7353  ;;  %v1837_v42 = vmul.f32 %v7352_v61, %v10841_v3  ;;  %v1810_v21 = vpop.xlane.xlu0 %1809  ;;  %v10846_v3 = vld [vmem:[#allocation91_spill] sm:$0xff] }
 0xd66   : > { %v1836_v26 = vmul.f32 %v7354_v0, %v10842_v44  ;;  %7363 = vrcp.f32 %v1810_v21  ;;  %v1808_v38 = vpop.xlane.xlu1 %1807 }
 0xd67   : > { %1853 = vst [vmem:[%s10180_s4 + $0x40] sm:$0xff] %v1837_v42  ;;  %7365 = vrcp.f32 %v1808_v38  ;;  %v10847_v38 = vld [vmem:[#allocation88_spill] sm:$0xff] }
 0xd68   : > { %v7356_v59 = vpop.eup %7355  ;;  %1852 = vst [vmem:[%s10180_s4 + $0x38] sm:$0xff] %v1836_v26 }
 0xd69   : > { %v7358_v29 = vpop.eup %7357  ;;  %v1839_v30 = vmul.f32 %v7356_v59, %v10843_v12  ;;  %v2520_v27 = vpop.xlane.xlu0 %2519  ;;  %v10848_v12 = vld [vmem:[#allocation89_spill] sm:$0xff] }
 0xd6a   : > { %v1838_v11 = vmul.f32 %v7358_v29, %v10844_v17  ;;  %7367 = vrcp.f32 %v2520_v27  ;;  %v1812_v40 = vpop.xlane.xlu1 %1811 }
 0xd6b   : > { %1855 = vst [vmem:[%s10180_s4 + $0x50] sm:$0xff] %v1839_v30  ;;  %7369 = vrcp.f32 %v1812_v40  ;;  %v10849_v40 = vld [vmem:[#allocation93_spill] sm:$0xff] }
 0xd6c   : > { %v7360_v25 = vpop.eup %7359  ;;  %1854 = vst [vmem:[%s10180_s4 + $0x48] sm:$0xff] %v1838_v11 }
 0xd6d   : > { %v7362_v55 = vpop.eup %7361  ;;  %v1841_v61 = vmul.f32 %v7360_v25, %v10845_v4  ;;  %v2524_v0 = vpop.xlane.xlu0 %2523  ;;  %v10850_v4 = vld [vmem:[#allocation92_spill] sm:$0xff] }
 0xd6e   : > { %v1840_v42 = vmul.f32 %v7362_v55, %v10846_v3  ;;  %7371 = vrcp.f32 %v2524_v0  ;;  %v2522_v21 = vpop.xlane.xlu1 %2521 }
 0xd6f   : > { %1857 = vst [vmem:[%s10180_s4 + $0x60] sm:$0xff] %v1841_v61  ;;  %7373 = vrcp.f32 %v2522_v21 }
 0xd70   : > { %v7364_v44 = vpop.eup %7363  ;;  %1856 = vst [vmem:[%s10180_s4 + $0x58] sm:$0xff] %v1840_v42 }
 0xd71   : > { %v7366_v26 = vpop.eup %7365  ;;  %v1843_v59 = vmul.f32 %v7364_v44, %v10847_v38  ;;  %v2528_v29 = vpop.xlane.xlu0 %2527 }
 0xd72   : > { %v1842_v30 = vmul.f32 %v7366_v26, %v10848_v12  ;;  %7375 = vrcp.f32 %v2528_v29  ;;  %v2526_v27 = vpop.xlane.xlu1 %2525 }
 0xd73   : > { %1859 = vst [vmem:[%s10180_s4 + $0x70] sm:$0xff] %v1843_v59  ;;  %7377 = vrcp.f32 %v2526_v27 }
 0xd74   : > { %v7368_v17 = vpop.eup %7367  ;;  %1858 = vst [vmem:[%s10180_s4 + $0x68] sm:$0xff] %v1842_v30 }
 0xd75   : > { %v7370_v11 = vpop.eup %7369  ;;  %v2567_v25 = vmul.f32 %v7368_v17, %v10849_v40  ;;  %v2532_v55 = vpop.xlane.xlu0 %2531 }
 0xd76   : > { %v1844_v61 = vmul.f32 %v7370_v11, %v10850_v4  ;;  %7379 = vrcp.f32 %v2532_v55  ;;  %v2530_v0 = vpop.xlane.xlu1 %2529 }
 0xd77   : > { %4838 = vst [vmem:[%s10180_s4 + $0x80] sm:$0xff] %v2567_v25  ;;  %7381 = vrcp.f32 %v2530_v0 }
 0xd78   : > { %v7372_v3 = vpop.eup %7371  ;;  %1860 = vst [vmem:[%s10180_s4 + $0x78] sm:$0xff] %v1844_v61 }
 0xd79   : > { %v7374_v42 = vpop.eup %7373  ;;  %v2569_v21 = vmul.f32 %v7372_v3, %v9936_v53  ;;  %v2536_v44 = vpop.xlane.xlu0 %2535 }
 0xd7a   : > { %v2568_v26 = vmul.f32 %v7374_v42, %v9929_v28  ;;  %7383 = vrcp.f32 %v2536_v44  ;;  %v2534_v38 = vpop.xlane.xlu1 %2533 }
 0xd7b   : > { %4840 = vst [vmem:[%s10180_s4 + $0x90] sm:$0xff] %v2569_v21  ;;  %7385 = vrcp.f32 %v2534_v38 }
 0xd7c   : > { %v7376_v59 = vpop.eup %7375  ;;  %4839 = vst [vmem:[%s10180_s4 + $0x88] sm:$0xff] %v2568_v26 }
 0xd7d   : > { %v7378_v29 = vpop.eup %7377  ;;  %v2571_v12 = vmul.f32 %v7376_v59, %v9966_v46  ;;  %v2540_v30 = vpop.xlane.xlu0 %2539 }
 0xd7e   : > { %v2570_v27 = vmul.f32 %v7378_v29, %v9943_v14  ;;  %7387 = vrcp.f32 %v2540_v30  ;;  %v2538_v53 = vpop.xlane.xlu1 %2537 }
 0xd7f   : > { %4842 = vst [vmem:[%s10180_s4 + $0xa0] sm:$0xff] %v2571_v12  ;;  %7389 = vrcp.f32 %v2538_v53 }
 0xd80   : > { %v7380_v28 = vpop.eup %7379  ;;  %4841 = vst [vmem:[%s10180_s4 + $0x98] sm:$0xff] %v2570_v27 }
 0xd81   : > { %v7382_v17 = vpop.eup %7381  ;;  %v2573_v11 = vmul.f32 %v7380_v28, %v9986_v6  ;;  %v2544_v40 = vpop.xlane.xlu0 %2543 }
 0xd82   : > { %v2572_v25 = vmul.f32 %v7382_v17, %v9964_v47  ;;  %7391 = vrcp.f32 %v2544_v40  ;;  %v2542_v46 = vpop.xlane.xlu1 %2541 }
 0xd83   : > { %4844 = vst [vmem:[%s10180_s4 + $0xb0] sm:$0xff] %v2573_v11  ;;  %7393 = vrcp.f32 %v2542_v46 }
 0xd84   : > { %v7384_v14 = vpop.eup %7383  ;;  %4843 = vst [vmem:[%s10180_s4 + $0xa8] sm:$0xff] %v2572_v25 }
 0xd85   : > { %v7386_v55 = vpop.eup %7385  ;;  %v2575_v4 = vmul.f32 %v7384_v14, %v9993_v33  ;;  %v2548_v61 = vpop.xlane.xlu0 %2547 }
 0xd86   : > { %v2574_v0 = vmul.f32 %v7386_v55, %v10004_v58  ;;  %7395 = vrcp.f32 %v2548_v61  ;;  %v2546_v6 = vpop.xlane.xlu1 %2545 }
 0xd87   : > { %4846 = vst [vmem:[%s10180_s4 + $0xc0] sm:$0xff] %v2575_v4  ;;  %7397 = vrcp.f32 %v2546_v6 }
 0xd88   : > { %v7388_v47 = vpop.eup %7387  ;;  %4845 = vst [vmem:[%s10180_s4 + $0xb8] sm:$0xff] %v2574_v0 }
 0xd89   : > { %v7390_v3 = vpop.eup %7389  ;;  %v2577_v42 = vmul.f32 %v7388_v47, %v10011_v35  ;;  %v3243_v21 = vpop.xlane.xlu0 %3242 }
 0xd8a   : > { %v2576_v44 = vmul.f32 %v7390_v3, %v10014_v24  ;;  %7399 = vrcp.f32 %v3243_v21  ;;  %v2550_v33 = vpop.xlane.xlu1 %2549 }
 0xd8b   : > { %4848 = vst [vmem:[%s10180_s4 + $0xd0] sm:$0xff] %v2577_v42  ;;  %7401 = vrcp.f32 %v2550_v33  ;;  %v10851_v33 = vld [vmem:[#allocation94_spill] sm:$0xff] }
 0xd8c   : > { %v7392_v58 = vpop.eup %7391  ;;  %4847 = vst [vmem:[%s10180_s4 + $0xc8] sm:$0xff] %v2576_v44 }
 0xd8d   : > { %v7394_v26 = vpop.eup %7393  ;;  %v2579_v38 = vmul.f32 %v7392_v58, %v10019_v57  ;;  %v3247_v59 = vpop.xlane.xlu0 %3246 }
 0xd8e   : > { %v2578_v29 = vmul.f32 %v7394_v26, %v10022_v56  ;;  %7403 = vrcp.f32 %v3247_v59  ;;  %v3245_v35 = vpop.xlane.xlu1 %3244 }
 0xd8f   : > { %4850 = vst [vmem:[%s10180_s4 + $0xe0] sm:$0xff] %v2579_v38  ;;  %7405 = vrcp.f32 %v3245_v35  ;;  %v10852_v38 = vld [vmem:[#allocation95_spill] sm:$0xff] }
 0xd90   : > { %v7396_v24 = vpop.eup %7395  ;;  %4849 = vst [vmem:[%s10180_s4 + $0xd8] sm:$0xff] %v2578_v29 }
 0xd91   : > { %v7398_v12 = vpop.eup %7397  ;;  %v2581_v30 = vmul.f32 %v7396_v24, %v10028_v10  ;;  %v3251_v27 = vpop.xlane.xlu0 %3250 }
 0xd92   : > { %v2580_v53 = vmul.f32 %v7398_v12, %v10030_v22  ;;  %7407 = vrcp.f32 %v3251_v27  ;;  %v3249_v57 = vpop.xlane.xlu1 %3248  ;;  %v10269_v27 = vld [vmem:[%s10853_s11] ss:$0 sm:$0xff] }
 0xd93   : > { %4852 = vst [vmem:[%s10180_s4 + $0xf0] sm:$0xff] %v2581_v30  ;;  %7409 = vrcp.f32 %v3249_v57 }
 0xd94   : > { %v7400_v56 = vpop.eup %7399  ;;  %4851 = vst [vmem:[%s10180_s4 + $0xe8] sm:$0xff] %v2580_v53 }
 0xd95   : > { %v7402_v28 = vpop.eup %7401  ;;  %v3290_v17 = vmul.f32 %v7400_v56, %v10036_v39  ;;  %v3255_v11 = vpop.xlane.xlu0 %3254 }
 0xd96   : > { %v2582_v40 = vmul.f32 %v7402_v28, %v10038_v13  ;;  %7411 = vrcp.f32 %v3255_v11  ;;  %v3253_v10 = vpop.xlane.xlu1 %3252 }
 0xd97   : > { %4886 = vst [vmem:[%s10180_s4 + $0x100] sm:$0xff] %v3290_v17  ;;  %7413 = vrcp.f32 %v3253_v10 }
 0xd98   : > { %v7404_v22 = vpop.eup %7403  ;;  %4853 = vst [vmem:[%s10180_s4 + $0xf8] sm:$0xff] %v2582_v40 }
 0xd99   : > { %v7406_v25 = vpop.eup %7405  ;;  %v3292_v46 = vmul.f32 %v7404_v22, %v10044_v37  ;;  %v3259_v14 = vpop.xlane.xlu0 %3258 }
 0xd9a   : > { %v3291_v55 = vmul.f32 %v7406_v25, %v10046_v36  ;;  %7415 = vrcp.f32 %v3259_v14  ;;  %v3257_v39 = vpop.xlane.xlu1 %3256 }
 0xd9b   : > { %4888 = vst [vmem:[%s10180_s4 + $0x110] sm:$0xff] %v3292_v46  ;;  %7417 = vrcp.f32 %v3257_v39 }
 0xd9c   : > { %v7408_v13 = vpop.eup %7407  ;;  %4887 = vst [vmem:[%s10180_s4 + $0x108] sm:$0xff] %v3291_v55 }
 0xd9d   : > { %v7410_v4 = vpop.eup %7409  ;;  %v3294_v61 = vmul.f32 %v7408_v13, %v10052_v7  ;;  %v3263_v0 = vpop.xlane.xlu0 %3262 }
 0xd9e   : > { %v3293_v6 = vmul.f32 %v7410_v4, %v10054_v32  ;;  %7419 = vrcp.f32 %v3263_v0  ;;  %v3261_v37 = vpop.xlane.xlu1 %3260 }
 0xd9f   : > { %4890 = vst [vmem:[%s10180_s4 + $0x120] sm:$0xff] %v3294_v61  ;;  %7421 = vrcp.f32 %v3261_v37 }
 0xda0   : > { %v7412_v36 = vpop.eup %7411  ;;  %4889 = vst [vmem:[%s10180_s4 + $0x118] sm:$0xff] %v3293_v6 }
 0xda1   : > { %v7414_v47 = vpop.eup %7413  ;;  %v3296_v3 = vmul.f32 %v7412_v36, %v10060_v8  ;;  %v3267_v42 = vpop.xlane.xlu0 %3266 }
 0xda2   : > { %v3295_v21 = vmul.f32 %v7414_v47, %v10062_v23  ;;  %7423 = vrcp.f32 %v3267_v42  ;;  %v3265_v7 = vpop.xlane.xlu1 %3264 }
 0xda3   : > { %4892 = vst [vmem:[%s10180_s4 + $0x130] sm:$0xff] %v3296_v3  ;;  %7425 = vrcp.f32 %v3265_v7 }
 0xda4   : > { %v7416_v32 = vpop.eup %7415  ;;  %4891 = vst [vmem:[%s10180_s4 + $0x128] sm:$0xff] %v3295_v21 }
 0xda5   : > { %v7418_v44 = vpop.eup %7417  ;;  %v3298_v58 = vmul.f32 %v7416_v32, %v10851_v33  ;;  %v3271_v26 = vpop.xlane.xlu0 %3270 }
 0xda6   : > { %v3297_v59 = vmul.f32 %v7418_v44, %v10852_v38  ;;  %7427 = vrcp.f32 %v3271_v26  ;;  %v3269_v8 = vpop.xlane.xlu1 %3268 }
 0xda7   : > { %4894 = vst [vmem:[%s10180_s4 + $0x140] sm:$0xff] %v3298_v58  ;;  %7429 = vrcp.f32 %v3269_v8 }
 0xda8   : > { %v7420_v23 = vpop.eup %7419  ;;  %4893 = vst [vmem:[%s10180_s4 + $0x138] sm:$0xff] %v3297_v59 }
 0xda9   : > { %v7422_v29 = vpop.eup %7421  ;;  %v3300_v35 = vmul.f32 %v7420_v23, %v10086_v49  ;;  %v3966_v24 = vpop.xlane.xlu0 %3965 }
 0xdaa   : > { %v3299_v12 = vmul.f32 %v7422_v29, %v10088_v52  ;;  %7431 = vrcp.f32 %v3966_v24  ;;  %v3273_v30 = vpop.xlane.xlu1 %3272 }
 0xdab   : > { %4896 = vst [vmem:[%s10180_s4 + $0x150] sm:$0xff] %v3300_v35  ;;  %7433 = vrcp.f32 %v3273_v30 }
 0xdac   : > { %v7424_v53 = vpop.eup %7423  ;;  %4895 = vst [vmem:[%s10180_s4 + $0x148] sm:$0xff] %v3299_v12 }
 0xdad   : > { %v7426_v57 = vpop.eup %7425  ;;  %v3302_v49 = vmul.f32 %v7424_v53, %v10100_v20  ;;  %v3970_v56 = vpop.xlane.xlu0 %3969 }
 0xdae   : > { %v5998_v28 = vpop.f32.mrb[80].mxu1  ;;  %v3301_v52 = vmul.f32 %v7426_v57, %v10104_v16  ;;  %7435 = vrcp.f32 %v3970_v56  ;;  %v3968_v11 = vpop.xlane.xlu1 %3967 }
 0xdaf   : > { %v4384_v17 = vadd.f32 %v5998_v28, %v10269_v27  ;;  %v4378_v40 = vpop.f32.mrb[81].mxu1  ;;  %4898 = vst [vmem:[%s10180_s4 + $0x160] sm:$0xff] %v3302_v49  ;;  %7437 = vrcp.f32 %v3968_v11 }
 0xdb0   : > { %v4379_v10 = vadd.f32 %v10269_v27, %v4378_v40  ;;  %v7428_v22 = vpop.eup %7427  ;;  %4897 = vst [vmem:[%s10180_s4 + $0x158] sm:$0xff] %v3301_v52 }
 0xdb1   : > { %4458 = vst [vmem:[%s10279_s14 + $0x8] sm:$0xff] %v4384_v17  ;;  %v7430_v20 = vpop.eup %7429  ;;  %v3304_v16 = vmul.f32 %v7428_v22, %v10109_v9  ;;  %v3974_v25 = vpop.xlane.xlu0 %3973 }
 0xdb2   : > { %4457 = vst [vmem:[%s10279_s14] sm:$0xff] %v4379_v10  ;;  %v6001_v46 = vpop.f32.mrb[82].mxu1  ;;  %v3303_v14 = vmul.f32 %v7430_v20, %v10112_v63  ;;  %7439 = vrcp.f32 %v3974_v25  ;;  %v3972_v39 = vpop.xlane.xlu1 %3971 }
 0xdb3   : > { %v4394_v55 = vadd.f32 %v6001_v46, %v10269_v27  ;;  %v4388_v13 = vpop.f32.mrb[83].mxu1  ;;  %4900 = vst [vmem:[%s10180_s4 + $0x170] sm:$0xff] %v3304_v16  ;;  %7441 = vrcp.f32 %v3972_v39 }
 0xdb4   : > { %v4389_v4 = vadd.f32 %v10269_v27, %v4388_v13  ;;  %v7432_v61 = vpop.eup %7431  ;;  %4899 = vst [vmem:[%s10180_s4 + $0x168] sm:$0xff] %v3303_v14 }
 0xdb5   : > { %4460 = vst [vmem:[%s10279_s14 + $0x18] sm:$0xff] %v4394_v55  ;;  %v7434_v9 = vpop.eup %7433  ;;  %v4013_v0 = vmul.f32 %v7432_v61, %v10118_v41  ;;  %v3978_v63 = vpop.xlane.xlu0 %3977 }
 0xdb6   : > { %4459 = vst [vmem:[%s10279_s14 + $0x10] sm:$0xff] %v4389_v4  ;;  %v6004_v6 = vpop.f32.mrb[84].mxu1  ;;  %v3305_v37 = vmul.f32 %v7434_v9, %v10120_v19  ;;  %7443 = vrcp.f32 %v3978_v63  ;;  %v3976_v47 = vpop.xlane.xlu1 %3975 }
 0xdb7   : > { %v4404_v36 = vadd.f32 %v6004_v6, %v10269_v27  ;;  %v4398_v3 = vpop.f32.mrb[85].mxu1  ;;  %4934 = vst [vmem:[%s10180_s4 + $0x180] sm:$0xff] %v4013_v0  ;;  %7445 = vrcp.f32 %v3976_v47 }
 0xdb8   : > { %v4399_v42 = vadd.f32 %v10269_v27, %v4398_v3  ;;  %v7436_v21 = vpop.eup %7435  ;;  %4901 = vst [vmem:[%s10180_s4 + $0x178] sm:$0xff] %v3305_v37 }
 0xdb9   : > { %4462 = vst [vmem:[%s10279_s14 + $0x28] sm:$0xff] %v4404_v36  ;;  %v7438_v41 = vpop.eup %7437  ;;  %v4015_v7 = vmul.f32 %v7436_v21, %v10126_v43  ;;  %v3982_v19 = vpop.xlane.xlu0 %3981 }
 0xdba   : > { %4461 = vst [vmem:[%s10279_s14 + $0x20] sm:$0xff] %v4399_v42  ;;  %v6007_v32 = vpop.f32.mrb[86].mxu1  ;;  %v4014_v44 = vmul.f32 %v7438_v41, %v10128_v2  ;;  %7447 = vrcp.f32 %v3982_v19  ;;  %v3980_v58 = vpop.xlane.xlu1 %3979 }
 0xdbb   : > { %v4414_v33 = vadd.f32 %v6007_v32, %v10269_v27  ;;  %v4408_v26 = vpop.f32.mrb[87].mxu1  ;;  %4936 = vst [vmem:[%s10180_s4 + $0x190] sm:$0xff] %v4015_v7  ;;  %7449 = vrcp.f32 %v3980_v58 }
 0xdbc   : > { %v4409_v38 = vadd.f32 %v10269_v27, %v4408_v26  ;;  %v7440_v59 = vpop.eup %7439  ;;  %4935 = vst [vmem:[%s10180_s4 + $0x188] sm:$0xff] %v4014_v44 }
 0xdbd   : > { %4464 = vst [vmem:[%s10279_s14 + $0x38] sm:$0xff] %v4414_v33  ;;  %v7442_v43 = vpop.eup %7441  ;;  %v4017_v8 = vmul.f32 %v7440_v59, %v10134_v34  ;;  %v3986_v2 = vpop.xlane.xlu0 %3985 }
 0xdbe   : > { %4463 = vst [vmem:[%s10279_s14 + $0x30] sm:$0xff] %v4409_v38  ;;  %v6010_v23 = vpop.f32.mrb[88].mxu1  ;;  %v4016_v29 = vmul.f32 %v7442_v43, %v10136_v15  ;;  %7451 = vrcp.f32 %v3986_v2  ;;  %v3984_v24 = vpop.xlane.xlu1 %3983 }
 0xdbf   : > { %v4424_v35 = vadd.f32 %v6010_v23, %v10269_v27  ;;  %v4418_v12 = vpop.f32.mrb[89].mxu1  ;;  %4938 = vst [vmem:[%s10180_s4 + $0x1a0] sm:$0xff] %v4017_v8  ;;  %7453 = vrcp.f32 %v3984_v24 }
 0xdc0   : > { %v4419_v30 = vadd.f32 %v10269_v27, %v4418_v12  ;;  %v7444_v53 = vpop.eup %7443  ;;  %4937 = vst [vmem:[%s10180_s4 + $0x198] sm:$0xff] %v4016_v29 }
 0xdc1   : > { %4466 = vst [vmem:[%s10279_s14 + $0x48] sm:$0xff] %v4424_v35  ;;  %v7446_v34 = vpop.eup %7445  ;;  %v4019_v57 = vmul.f32 %v7444_v53, %v10142_v45  ;;  %v3990_v15 = vpop.xlane.xlu0 %3989 }
 0xdc2   : > { %4465 = vst [vmem:[%s10279_s14 + $0x40] sm:$0xff] %v4419_v30  ;;  %v6013_v49 = vpop.f32.mrb[90].mxu1  ;;  %v4018_v56 = vmul.f32 %v7446_v34, %v10144_v50  ;;  %7455 = vrcp.f32 %v3990_v15  ;;  %v3988_v52 = vpop.xlane.xlu1 %3987 }
 0xdc3   : > { %v4434_v28 = vadd.f32 %v6013_v49, %v10269_v27  ;;  %v4428_v17 = vpop.f32.mrb[91].mxu1  ;;  %4940 = vst [vmem:[%s10180_s4 + $0x1b0] sm:$0xff] %v4019_v57  ;;  %7457 = vrcp.f32 %v3988_v52 }
 0xdc4   : > { %v4429_v11 = vadd.f32 %v10269_v27, %v4428_v17  ;;  %v7448_v40 = vpop.eup %7447  ;;  %4939 = vst [vmem:[%s10180_s4 + $0x1a8] sm:$0xff] %v4018_v56 }
 0xdc5   : > { %4468 = vst [vmem:[%s10279_s14 + $0x58] sm:$0xff] %v4434_v28  ;;  %v7450_v45 = vpop.eup %7449  ;;  %v4021_v10 = vmul.f32 %v7448_v40, %v10150_v5  ;;  %v3994_v50 = vpop.xlane.xlu0 %3993 }
 0xdc6   : > { %4467 = vst [vmem:[%s10279_s14 + $0x50] sm:$0xff] %v4429_v11  ;;  %v4020_v22 = vmul.f32 %v7450_v45, %v10152_v54  ;;  %7459 = vrcp.f32 %v3994_v50  ;;  %v3992_v20 = vpop.xlane.xlu1 %3991 }
 0xdc7   : > { %4942 = vst [vmem:[%s10180_s4 + $0x1c0] sm:$0xff] %v4021_v10  ;;  %7461 = vrcp.f32 %v3992_v20 }
 0xdc8   : > { %v7452_v16 = vpop.eup %7451  ;;  %4941 = vst [vmem:[%s10180_s4 + $0x1b8] sm:$0xff] %v4020_v22 }
 0xdc9   : > { %v7454_v25 = vpop.eup %7453  ;;  %v4023_v46 = vmul.f32 %v7452_v16, %v10157_v62 }
 0xdca   : > { %v4022_v14 = vmul.f32 %v7454_v25, %v10159_v51  ;;  %v3996_v5 = vpop.xlane.xlu1 %3995 }
 0xdcb   : > { %4944 = vst [vmem:[%s10180_s4 + $0x1d0] sm:$0xff] %v4023_v46  ;;  %7463 = vrcp.f32 %v3996_v5 }
 0xdcc   : > { %v7456_v54 = vpop.eup %7455  ;;  %4943 = vst [vmem:[%s10180_s4 + $0x1c8] sm:$0xff] %v4022_v14 }
 0xdcd   : > { %v7458_v55 = vpop.eup %7457  ;;  %v4025_v39 = vmul.f32 %v7456_v54, %v10163_v60 }
 0xdce   : > { %v4024_v13 = vmul.f32 %v7458_v55, %v10165_v48 }
 0xdcf   : > { %4946 = vst [vmem:[%s10180_s4 + $0x1e0] sm:$0xff] %v4025_v39 }
 0xdd0   : > { %v7460_v62 = vpop.eup %7459  ;;  %4945 = vst [vmem:[%s10180_s4 + $0x1d8] sm:$0xff] %v4024_v13 }
 0xdd1   : > { %v7462_v51 = vpop.eup %7461  ;;  %v4027_v4 = vmul.f32 %v7460_v62, %v10169_v1 }
 0xdd2   : > { %v4026_v61 = vmul.f32 %v7462_v51, %v10171_v31 }
 0xdd3   : > { %4948 = vst [vmem:[%s10180_s4 + $0x1f0] sm:$0xff] %v4027_v4 }
 0xdd4   : > { %4947 = vst [vmem:[%s10180_s4 + $0x1e8] sm:$0xff] %v4026_v61 }
 0xdd5   : > { %v7464_v9 = vpop.eup %7463 }
 0xdd6   : > { %v4028_v60 = vmul.f32 %v7464_v9, %v10175_v18 }
 0xdd8   : > { %4949 = vst [vmem:[%s10180_s4 + $0x1f8] sm:$0xff] %v4028_v60 }
 0xdd9   : > { %7681 = shalt.err (!%p7678_p8)
}
 0xdda   : > { %s7682_s23 = scalar_lea.hbm %s10345_s24, 8192  ;;  %s7686_s20 = scalar_lea.hbm %s10855_s19, 16384 }
 0xddb   : > { %p7683_p3 = scmp.ne.s32.totalorder %s10345_s24, %s7682_s23  ;;  %p7687_p10 = scmp.lt.u32.totalorder %s10345_s24, %s10855_s19 }
 0xddc   : > { %p7688_p5 = scmp.lt.u32.totalorder %s7686_s20, %s7682_s23  ;;  %p7690_p6 = scmp.lt.u32.totalorder %s7682_s23, %s10345_s24 }
 0xddd   : > { %p7684_p11 = pnand %p7683_p3, %p10856_p4 }
 0xdde   : > { %p7689_p7 = por %p7688_p5, %p7687_p10 }
 0xddf   : > { %p7685_p2 = pneg %p7684_p11 }
 0xde0   : > { %p7691_p1 = por %p7690_p6, %p7689_p7 }
 0xde2   : > { %p7692_p13 = pnand %p7691_p1, %p7685_p2 }
 0xde4   : > { %7695 = shalt.err (!%p7692_p13)
}
 0xde5   : > { %s7809_s4 = smov 128   ;;  %s7810_s18 = smov 8   ;;  %v6016_v48 = vpop.f32.mrb[92].mxu1 }
 0xde6   : > { %6491 = dma.vmem_to_hbm [thread:$0]  (%p10856_p4), %s10347_s15, 8192, %s10345_s24, %s4479_s9, %s7809_s4, %s7809_s4, %s7810_s18   ;;  %v4444_v1 = vadd.f32 %v6016_v48, %v10269_v27  ;;  %v4438_v31 = vpop.f32.mrb[93].mxu1 }
 0xde7   : > { %v4439_v18 = vadd.f32 %v10269_v27, %v4438_v31  ;;  %s4962_s6 = sshll.u32 %s10639_s1, 11  ;;  %s4494_s11 = sshll.u32 %s10279_s14, 4  ;;  %s10390_s11 = int_to_ptr.vmem [resolvable:$true] %s4494_s11 }
 0xde8   : > { %4470 = vst [vmem:[%s10279_s14 + $0x68] sm:$0xff] %v4444_v1  ;;  %v6019_v0 = vpop.f32.mrb[94].mxu1  ;;  %s10857_s21 = sld [smem:[#allocation106_spill]]  ;;  %s4474_s1 = scalar_lea.sflag [#allocation4], %s8198_s28 }
 0xde9   : > { %4469 = vst [vmem:[%s10279_s14 + $0x60] sm:$0xff] %v4439_v18  ;;  %v4454_v63 = vadd.f32 %v6019_v0, %v10269_v27  ;;  %v4448_v6 = vpop.f32.mrb[95].mxu1  ;;  %s7696_s24 = scalar_lea.vmem %s10390_s11, 2048  ;;  %s7811_s9 = smov [#allocation14]  }
 0xdea   : > { %v4449_v37 = vadd.f32 %v10269_v27, %v4448_v6  ;;  %p7697_p12 = scmp.ne.s32.totalorder %s10390_s11, %s7696_s24  ;;  %s7700_s3 = sshll.u32 %s7811_s9, 4  ;;  %s7701_s3 = int_to_ptr.vmem [resolvable:$false] %s7700_s3 }
 0xdeb   : > { %4472 = vst [vmem:[%s10279_s14 + $0x78] sm:$0xff] %v4454_v63  ;;  %s7702_s29 = scalar_lea.vmem %s7701_s3, 4096  ;;  %p7703_p8 = scmp.lt.s32.totalorder %s10390_s11, %s7701_s3 }
 0xdec   : > { %4471 = vst [vmem:[%s10279_s14 + $0x70] sm:$0xff] %v4449_v37  ;;  %p7698_p9 = pnand %p7697_p12, %p10856_p4  ;;  %p7704_p3 = scmp.lt.s32.totalorder %s7702_s29, %s7696_s24 }
 0xdee   : > { %s10388_s17 = scalar_lea.hbm %s10857_s21, %s4962_s6  ;;  %p7699_p0 = pneg %p7698_p9 }
 0xdef   : > { %p7705_p11 = por %p7704_p3, %p7703_p8 }
 0xdf1   : > { %p7706_p2 = pnand %p7705_p11, %p7699_p0 }
 0xdf3   : > { %7709 = shalt.err (!%p7706_p2)
}
 0xdf4   : > { %s7710_s14 = scalar_lea.hbm %s10388_s17, 2048  ;;  %s7714_s23 = scalar_lea.hbm %s10857_s21, 4096 }
 0xdf5   : > { %p7711_p10 = scmp.ne.s32.totalorder %s10388_s17, %s7710_s14  ;;  %p7715_p6 = scmp.lt.u32.totalorder %s10388_s17, %s10857_s21 }
 0xdf6   : > { %p7716_p1 = scmp.lt.u32.totalorder %s7714_s23, %s7710_s14  ;;  %p7718_p12 = scmp.lt.u32.totalorder %s7710_s14, %s10388_s17 }
 0xdf7   : > { %p7712_p5 = pnand %p7711_p10, %p10856_p4 }
 0xdf8   : > { %p7717_p13 = por %p7716_p1, %p7715_p6 }
 0xdf9   : > { %p7713_p7 = pneg %p7712_p5 }
 0xdfa   : > { %p7719_p9 = por %p7718_p12, %p7717_p13 }
 0xdfc   : > { %p7720_p0 = pnand %p7719_p9, %p7713_p7 }
 0xdfe   : > { %7723 = shalt.err (!%p7720_p0)
}
 0xdff   : > { %6490 = dma.vmem_to_hbm [thread:$0]  (%p10856_p4), %s10390_s11, 2048, %s10388_s17, %s4474_s1, %s7809_s4, %s7809_s4, %s7810_s18  }
 0xe00 PF: > { %s10858_s20 = sld [smem:[#allocation23_spill]]  ;;  %s10859_s25 = sld [smem:[#allocation27_spill]] }
 0xe01   : > { %s10860_s7 = sld [smem:[#allocation26_spill]] }
 0xe06   : > { %s4530_s6 = sand.u32 1, %s10858_s20   ;;  %p10861_p8 = scmp.ne.s32.totalorder %s10859_s25, 0 }
 0xe07   : > { %p10862_p3 = scmp.ge.s32.totalorder %s10860_s7, 2  ;;  %s4531_s16 = scalar_lea.sflag [#allocation4], %s4530_s6 }
 0xe09   : > { %p6518_p11 = pnand %p10862_p3, %p10861_p8 }
 0xe0b   : > { %7765 = dma.done.wait (!%p6518_p11), %s4531_s16, 2048  }
 0xe0c   : > { %7767 = vsyncadd (!%p6518_p11), %s4531_s16, 4294965248  ;;  %s4540_s22 = scalar_lea.sflag [#allocation16], %s4530_s6 }
 0xe0d   : > { %7769 = dma.done.wait (!%p6518_p11), %s4540_s22, 8192  }
 0xe0e   : > { %7771 = vsyncadd (!%p6518_p11), %s4540_s22, 4294959104  ;;  %s38_s30 = sadd.s32 1, %s10860_s7   ;;  %s10863_s28 = sld [smem:[#allocation30_spill]] }
 0xe0f   : > { %p35_p2 = scmp.ge.s32.totalorder %s38_s30, 4   ;;  %s10864_s4 = sld [smem:[#allocation25_spill]] }
 0xe10   : > { %s10865_s29 = sld [smem:[#allocation28_spill]]  ;;  %s10866_s25 = smov %s7778_s26 }
 0xe11   : > { %s10867_s26 = smov %s7782_s27  ;;  %37 = sbr.rel (!%p35_p2) target bundleno = 23 (0x17), region = 183 }
 0xe14   : > { %s10868_s27 = smov %s10863_s28 }
 0xe15   : > { %s10869_s28 = smov %s10864_s4 }
 0xe18   :  { %4545 = vsyncpa [#allocation3], 1 }
 0xe19   :  { %4547 = vsyncpa [#allocation3 + $0x1], 1 }
 0xe1a   :  { %4548 = vsyncpa [#allocation6], 1 }
 0xe1b   :  { %4550 = vsyncpa [#allocation6 + $0x1], 1 }
 0xe1c   :  { %4551 = vsyncpa [#allocation9], 1 }
 0xe1d   :  { %4552 = vsyncpa [#allocation12], 1 }
 0xe1e   :  { %4553 = vsyncpa [#allocation4], 1 }
 0xe1f   :  { %4555 = vsyncpa [#allocation4 + $0x1], 1 }
 0xe20   :  { %4556 = vsyncpa [#allocation16], 1 }
 0xe21   :  { %4558 = vsyncpa [#allocation16 + $0x1], 1 }

</bundles_post_ra>
